<compile_context>
chip_gen: v5e
topology: v5e:2x2
jax: 0.10.0
libtpu: 0.0.40
codegen_flags: <defaults>
</compile_context>

<pallas_src>
import jax
import jax.numpy as jnp
from jax import lax
from jax.experimental import pallas as pl
from jax.experimental.pallas import tpu as pltpu

# ----------------------------- hyper-params ---------------------------------
N = 2          # batch
CIN = 8        # image channels (synthetic)
H = W = 16     # spatial
HW = H * W     # 256
NHW = N * HW   # 512: batch collapsed onto the 128-wide lane axis
C = 32         # backbone feature channels
D = 16         # feature dim (== dim_dense)
K = 64         # queue size
T = 0.07       # softmax temperature
M = 0.999      # momentum
INV_T = 1.0 / T
EPS = 1e-12
EPS2 = EPS * EPS

TQ = 128                     # query-row tile for the cosine/argmax/gather loop
GL = 128                     # lane-padded width of the global-logit slab

# packed weight slab layout (rows x cols) = (PACK_R, PACK_C) = (128, 64):
#   rows [ROW_BB, ROW_BB+2C) x cols [0, 2CIN): stacked backbone  (64, 16)
#   rows [ROW_D,  ROW_D+2D ) x cols [0, 2C)  : stacked dense head (32, 64)
#   rows [ROW_FC, ROW_FC+2D) x cols [0, 2C)  : stacked fc head    (32, 64)
# query weights sit in the top-left block of each region, key weights in the
# bottom-right block; everything else is zero.
ROW_BB = 0
ROW_D = 2 * C                # 64
ROW_FC = 2 * C + 2 * D       # 96
PACK_R = 2 * C + 4 * D       # 128
PACK_C = 2 * C               # 64


def _l2n0(x):
    """L2-normalize along axis 0 (== torch F.normalize over the channel dim).
    rsqrt lowers to the EUP slot instead of VPU sqrt + divide."""
    s = jnp.sum(x * x, axis=0, keepdims=True)
    return x * lax.rsqrt(jnp.maximum(s, EPS2))


# ------------------------------ fused kernel ---------------------------------
def moco_fused_kernel(ptr_ref, x_ref, wqtl_ref, wqbr_ref, wkbr_ref, qpack_ref,
                      glog_ref, dlog_ref, qpack_out_ref, wk_out_ref,
                      fqn_scr, dqn_scr):
    f32 = jnp.float32

    # ---- (1) momentum update: ONE elementwise op on the packed slab ----------
    wk_new = M * wkbr_ref[...] + (1.0 - M) * wqbr_ref[...]          # (128, 64)
    wk_out_ref[...] = wk_new

    # ---- (2) block-diagonal stacked encoder weights (no in-kernel concat) ----
    wstack = wqtl_ref[...] + wk_new                                  # (128, 64)
    wbb_s = wstack[ROW_BB:ROW_BB + 2 * C, 0:2 * CIN]                 # (2C, 2CIN)
    wd_s = wstack[ROW_D:ROW_D + 2 * D, 0:2 * C]                      # (2D, 2C)
    wfc_s = wstack[ROW_FC:ROW_FC + 2 * D, 0:2 * C]                   # (2D, 2C)

    # ---- (3) fused query+key encoder: x is [xq; xk] stacked on channels ------
    feat = jnp.maximum(
        jnp.dot(wbb_s, x_ref[...], preferred_element_type=f32), 0.0)  # (2C, NHW)
    dense = jnp.dot(wd_s, feat, preferred_element_type=f32)           # (2D, NHW)

    # ---- (4) per-sample global head, global logits, fused dequeue/enqueue ----
    ptr = ptr_ref[0]
    col_id = lax.broadcasted_iota(jnp.int32, (D, K), 1)
    q_top = qpack_ref[0:D, :]          # old queue        (negatives use this)
    q_bot = qpack_ref[D:2 * D, :]      # old queue_dense
    new_top = q_top
    new_bot = q_bot
    glog_ref[...] = jnp.zeros((N, GL), f32)
    for i in range(N):                                 # static, N = 2
        s = slice(i * HW, (i + 1) * HW)                # lane-aligned (mult of 128)
        pooled_i = jnp.sum(feat[:, s], axis=1, keepdims=True) * (1.0 / HW)  # (2C,1)
        qk_i = jnp.dot(wfc_s, pooled_i, preferred_element_type=f32)         # (2D,1)
        qn_i = _l2n0(qk_i[0:D, :])                                          # (D,1)
        kn_i = _l2n0(qk_i[D:2 * D, :])                                      # (D,1)
        # global contrastive logits, already scaled by 1/T
        lneg_i = lax.dot_general(qn_i, q_top, (((0,), (0,)), ((), ())),
                                 preferred_element_type=f32)                # (1,K)
        lpos_i = jnp.sum(qn_i * kn_i, axis=0, keepdims=True)                # (1,1)
        glog_ref[i:i + 1, 0:K] = lneg_i * INV_T
        glog_ref[i:i + 1, K:K + 1] = lpos_i * INV_T
        # enqueue keys (dense keys use the UN-normalized dense_k spatial mean)
        dkeys_i = _l2n0(
            jnp.sum(dense[D:2 * D, s], axis=1, keepdims=True) * (1.0 / HW))  # (D,1)
        hit = col_id == (ptr + i)      # K % N == 0 -> no mid-batch wraparound
        new_top = jnp.where(hit, kn_i, new_top)
        new_bot = jnp.where(hit, dkeys_i, new_bot)
    qpack_out_ref[0:D, :] = new_top
    qpack_out_ref[D:2 * D, :] = new_bot

    # ---- (5) channel-normalized feature / dense maps -------------------------
    fk_n = _l2n0(feat[C:2 * C, :])                                   # (C, NHW)
    dk_n = _l2n0(dense[D:2 * D, :])                                  # (D, NHW)
    dq_n = _l2n0(dense[0:D, :])                                      # (D, NHW)
    fqn_scr[...] = _l2n0(feat[0:C, :])                               # (C, NHW)
    dqn_scr[...] = dq_n

    # d_neg: (K, NHW), lane-dense rows 0:K of the dense-logit slab
    dlog_ref[0:K, :] = lax.dot_general(
        q_bot, dq_n, (((0,), (0,)), ((), ())),
        preferred_element_type=f32) * INV_T

    # ---- (6) cosine / argmax / gather / d_pos, row-tiled (128-row chunks) ----
    n_chunks = HW // TQ                                              # 2
    for b in range(N):                                               # static
        ks = slice(b * HW, (b + 1) * HW)
        fkb = fk_n[:, ks]                                            # (C, HW)
        dkb = dk_n[:, ks]                                            # (D, HW)

        def chunk_body(r, carry, fkb=fkb, dkb=dkb, base=b * HW):
            off = pl.multiple_of(base + r * TQ, TQ)
            fq_blk = fqn_scr[:, pl.ds(off, TQ)]                      # (C, TQ)
            cos = lax.dot_general(fq_blk, fkb, (((0,), (0,)), ((), ())),
                                  preferred_element_type=f32)        # (TQ, HW)
            cmax = jnp.max(cos, axis=-1, keepdims=True)              # (TQ, 1)
            bid = lax.broadcasted_iota(jnp.int32, (TQ, HW), 1)
            # lowest-index tie-break, matching torch.argmax semantics
            pos_idx = jnp.min(jnp.where(cos >= cmax, bid, HW),
                              axis=-1, keepdims=True)                # (TQ, 1)
            onehot = (bid == pos_idx).astype(f32)                    # (TQ, HW)
            gath = lax.dot_general(dkb, onehot, (((1,), (1,)), ((), ())),
                                   preferred_element_type=f32)       # (D, TQ)
            dq_blk = dqn_scr[:, pl.ds(off, TQ)]                      # (D, TQ)
            dlog_ref[K:K + 1, pl.ds(off, TQ)] = (
                jnp.sum(dq_blk * gath, axis=0, keepdims=True) * INV_T)
            return carry

        lax.fori_loop(0, n_chunks, chunk_body, 0)


# ------------------------------- pallas_call ---------------------------------
def _vspec(shape):
    return pl.BlockSpec(shape, lambda i: (0, 0))


_FUSED = pl.pallas_call(
    moco_fused_kernel,
    out_shape=(
        jax.ShapeDtypeStruct((N, GL), jnp.float32),          # global logits slab
        jax.ShapeDtypeStruct((K + 1, NHW), jnp.float32),     # dense logits slab
        jax.ShapeDtypeStruct((2 * D, K), jnp.float32),       # queue pack (updated)
        jax.ShapeDtypeStruct((PACK_R, PACK_C), jnp.float32), # key weights (updated)
    ),
    grid=(1,),
    in_specs=[
        pl.BlockSpec(memory_space=pltpu.MemorySpace.SMEM),   # 0: queue_ptr
        _vspec((2 * CIN, NHW)),                              # 1: stacked images
        _vspec((PACK_R, PACK_C)),                            # 2: query weights (top-left)
        _vspec((PACK_R, PACK_C)),                            # 3: query weights (bottom-right)
        _vspec((PACK_R, PACK_C)),                            # 4: key weights   (bottom-right)
        _vspec((2 * D, K)),                                  # 5: queue pack
    ],
    out_specs=(
        _vspec((N, GL)),
        _vspec((K + 1, NHW)),
        _vspec((2 * D, K)),
        _vspec((PACK_R, PACK_C)),
    ),
    scratch_shapes=[
        pltpu.VMEM((C, NHW), jnp.float32),                   # normalized feat_q
        pltpu.VMEM((D, NHW), jnp.float32),                   # normalized dense_q
    ],
    input_output_aliases={5: 2, 4: 3},                       # queue pack, key weights
    compiler_params=pltpu.CompilerParams(dimension_semantics=("arbitrary",)),
)


# ---------------------------- wrapper packing --------------------------------
def _pack_tl(w_bb, w_d, w_fc):
    p = jnp.zeros((PACK_R, PACK_C), jnp.float32)
    p = p.at[0:C, 0:CIN].set(w_bb)
    p = p.at[ROW_D:ROW_D + D, 0:C].set(w_d)
    p = p.at[ROW_FC:ROW_FC + D, 0:C].set(w_fc)
    return p


def _pack_br(w_bb, w_d, w_fc):
    p = jnp.zeros((PACK_R, PACK_C), jnp.float32)
    p = p.at[C:2 * C, CIN:2 * CIN].set(w_bb)
    p = p.at[ROW_D + D:ROW_D + 2 * D, C:2 * C].set(w_d)
    p = p.at[ROW_FC + D:ROW_FC + 2 * D, C:2 * C].set(w_fc)
    return p


def _unpack_br(p):
    return (p[C:2 * C, CIN:2 * CIN],
            p[ROW_D + D:ROW_D + 2 * D, C:2 * C],
            p[ROW_FC + D:ROW_FC + 2 * D, C:2 * C])


# -------------------------------- wrapper ------------------------------------
def moco_forward(im_q, im_k, params_q, params_k, queue, queue_dense, queue_ptr):
    """Full MoCo.forward.  Returns (logits, labels, logits_dense, labels_dense)
    plus the updated mutable state (params_k, queue, queue_dense, queue_ptr)."""
    n = im_q.shape[0]
    assert n == N and K % N == 0

    # collapse batch onto lanes and stack query/key channels: (2*CIN, N*HW)
    xq = im_q.reshape(N, CIN, HW).transpose(1, 0, 2).reshape(CIN, NHW)
    xk = im_k.reshape(N, CIN, HW).transpose(1, 0, 2).reshape(CIN, NHW)
    x = jnp.concatenate([xq, xk], axis=0)

    wq_tl = _pack_tl(*params_q)
    wq_br = _pack_br(*params_q)
    wk_br = _pack_br(*params_k)
    qpack = jnp.concatenate([queue, queue_dense], axis=0)     # (2D, K)

    glog, dlog, qpack_new, wk_new_pack = _FUSED(
        queue_ptr, x, wq_tl, wq_br, wk_br, qpack)

    # ---- layout plumbing back to the PyTorch output shapes (pure XLA glue) ---
    logits = jnp.concatenate([glog[:, K:K + 1], glog[:, :K]], axis=1)  # (N, 1+K)
    labels = jnp.zeros((N,), dtype=jnp.int32)

    dneg = dlog[:K]                                           # (K, NHW)
    dpos = dlog[K:K + 1]                                      # (1, NHW)
    logits_dense = jnp.concatenate(
        [dpos.reshape(1, N, HW).transpose(1, 0, 2),
         dneg.reshape(K, N, HW).transpose(1, 0, 2)], axis=1)  # (N, 1+K, HW)
    labels_dense = jnp.zeros((N, HW), dtype=jnp.int32)

    params_k_new = _unpack_br(wk_new_pack)
    queue_new = qpack_new[:D]
    qdense_new = qpack_new[D:]
    queue_ptr_new = (queue_ptr + N) % K

    return (logits, labels, logits_dense, labels_dense), \
           (params_k_new, queue_new, qdense_new, queue_ptr_new)


def l2_normalize(x, axis):
    return x / jnp.maximum(jnp.sqrt(jnp.sum(x * x, axis=axis, keepdims=True)), EPS)


# --------------------------------- main --------------------------------------
if __name__ == "__main__":
    key = jax.random.PRNGKey(0)
    k_img_q, k_img_k, k_wbb, k_wd, k_wfc, k_qu, k_qd = jax.random.split(key, 7)

    im_q = jax.random.normal(k_img_q, (N, CIN, H, W), dtype=jnp.float32)
    im_k = jax.random.normal(k_img_k, (N, CIN, H, W), dtype=jnp.float32)

    # deterministic encoder params; key encoder copies query encoder (as in __init__)
    w_bb = 0.1 * jax.random.normal(k_wbb, (C, CIN), dtype=jnp.float32)
    w_dense = 0.1 * jax.random.normal(k_wd, (D, C), dtype=jnp.float32)
    w_fc = 0.1 * jax.random.normal(k_wfc, (D, C), dtype=jnp.float32)
    params_q = (w_bb, w_dense, w_fc)
    params_k = tuple(p.copy() for p in params_q)

    # queues: randn normalized along dim 0
    queue = l2_normalize(jax.random.normal(k_qu, (D, K), dtype=jnp.float32), axis=0)
    queue_dense = l2_normalize(jax.random.normal(k_qd, (D, K), dtype=jnp.float32), axis=0)
    queue_ptr = jnp.zeros((1,), dtype=jnp.int32)

    fwd = jax.jit(moco_forward)
    (logits, labels, logits_dense, labels_dense), new_state = fwd(
        im_q, im_k, params_q, params_k, queue, queue_dense, queue_ptr)

    jax.block_until_ready((logits, labels, logits_dense, labels_dense, new_state))

    assert logits.shape == (N, 1 + K)
    assert labels.shape == (N,)
    assert logits_dense.shape == (N, 1 + K, HW)
    assert labels_dense.shape == (N, HW)
    assert new_state[1].shape == (D, K) and new_state[2].shape == (D, K)
    print("KERNEL_OK")
</pallas_src>

<mosaic_0001>
module attributes {stable_mosaic.version = 11 : i64} {
  func.func @moco_fused_kernel(%arg0: i32, %arg1: memref<1xi32, #tpu.memory_space<smem>>, %arg2: memref<16x512xf32, #tpu.memory_space<vmem>>, %arg3: memref<128x64xf32, #tpu.memory_space<vmem>>, %arg4: memref<128x64xf32, #tpu.memory_space<vmem>>, %arg5: memref<128x64xf32, #tpu.memory_space<vmem>>, %arg6: memref<32x64xf32, #tpu.memory_space<vmem>>, %arg7: memref<2x128xf32, #tpu.memory_space<vmem>>, %arg8: memref<65x512xf32, #tpu.memory_space<vmem>>, %arg9: memref<32x64xf32, #tpu.memory_space<vmem>>, %arg10: memref<128x64xf32, #tpu.memory_space<vmem>>, %arg11: memref<32x512xf32, #tpu.memory_space<vmem>>, %arg12: memref<16x512xf32, #tpu.memory_space<vmem>>) attributes {dimension_semantics = [#tpu.dimension_semantics<arbitrary>], iteration_bounds = array<i64: 1>, scalar_prefetch = 0 : i64, scratch_operands = 2 : i64, tpu.core_type = #tpu.core_type<tc>, window_params = [{transform_indices = @transform_0, window_bounds = array<i64: 1>}, {pipeline_mode = #tpu.pipeline_mode<synchronous>, transform_indices = @transform_1, window_bounds = array<i64: 16, 512>}, {pipeline_mode = #tpu.pipeline_mode<synchronous>, transform_indices = @transform_2, window_bounds = array<i64: 128, 64>}, {pipeline_mode = #tpu.pipeline_mode<synchronous>, transform_indices = @transform_3, window_bounds = array<i64: 128, 64>}, {pipeline_mode = #tpu.pipeline_mode<synchronous>, transform_indices = @transform_4, window_bounds = array<i64: 128, 64>}, {pipeline_mode = #tpu.pipeline_mode<synchronous>, transform_indices = @transform_5, window_bounds = array<i64: 32, 64>}, {pipeline_mode = #tpu.pipeline_mode<synchronous>, transform_indices = @transform_6, window_bounds = array<i64: 2, 128>}, {pipeline_mode = #tpu.pipeline_mode<synchronous>, transform_indices = @transform_7, window_bounds = array<i64: 65, 512>}, {pipeline_mode = #tpu.pipeline_mode<synchronous>, transform_indices = @transform_8, window_bounds = array<i64: 32, 64>}, {pipeline_mode = #tpu.pipeline_mode<synchronous>, transform_indices = @transform_9, window_bounds = array<i64: 128, 64>}]} {
    %c0 = arith.constant 0 : index
    %c0_0 = arith.constant 0 : index
    %0 = vector.load %arg5[%c0, %c0_0] : memref<128x64xf32, #tpu.memory_space<vmem>>, vector<128x64xf32>
    %cst = arith.constant 9.990000e-01 : f32
    %1 = vector.broadcast %cst : f32 to vector<128x64xf32>
    %2 = arith.mulf %1, %0 : vector<128x64xf32>
    %c0_1 = arith.constant 0 : index
    %c0_2 = arith.constant 0 : index
    %3 = vector.load %arg4[%c0_1, %c0_2] : memref<128x64xf32, #tpu.memory_space<vmem>>, vector<128x64xf32>
    %cst_3 = arith.constant 1.000000e-03 : f32
    %4 = vector.broadcast %cst_3 : f32 to vector<128x64xf32>
    %5 = arith.mulf %4, %3 : vector<128x64xf32>
    %6 = arith.addf %2, %5 : vector<128x64xf32>
    %c0_4 = arith.constant 0 : index
    %c0_5 = arith.constant 0 : index
    %7 = vector.load %arg10[%c0_4, %c0_5] : memref<128x64xf32, #tpu.memory_space<vmem>>, vector<128x64xf32>
    tpu.vector_store %arg10[%c0_4, %c0_5], %6 {strides = array<i32>} : memref<128x64xf32, #tpu.memory_space<vmem>>, vector<128x64xf32>,
    %c0_6 = arith.constant 0 : index
    %c0_7 = arith.constant 0 : index
    %8 = vector.load %arg3[%c0_6, %c0_7] : memref<128x64xf32, #tpu.memory_space<vmem>>, vector<128x64xf32>
    %9 = arith.addf %8, %6 : vector<128x64xf32>
    %10 = vector.extract_strided_slice %9 {offsets = [0, 0], sizes = [64, 16], strides = [1, 1]} : vector<128x64xf32> to vector<64x16xf32>
    %11 = vector.extract_strided_slice %9 {offsets = [64, 0], sizes = [32, 64], strides = [1, 1]} : vector<128x64xf32> to vector<32x64xf32>
    %12 = vector.extract_strided_slice %9 {offsets = [96, 0], sizes = [32, 64], strides = [1, 1]} : vector<128x64xf32> to vector<32x64xf32>
    %c0_8 = arith.constant 0 : index
    %c0_9 = arith.constant 0 : index
    %13 = vector.load %arg2[%c0_8, %c0_9] : memref<16x512xf32, #tpu.memory_space<vmem>>, vector<16x512xf32>
    %cst_10 = arith.constant dense<0.000000e+00> : vector<64x512xf32>
    %14 = tpu.matmul %10, %13, %cst_10 {dimension_numbers = #tpu.dot_dimension_numbers<[1], [0], [0], [1], [0, 0, 1, 1], [], []>} : vector<64x16xf32>, vector<16x512xf32>, vector<64x512xf32> -> vector<64x512xf32>
    %cst_11 = arith.constant 0.000000e+00 : f32
    %15 = vector.broadcast %cst_11 : f32 to vector<64x512xf32>
    %16 = arith.maximumf %14, %15 : vector<64x512xf32>
    %cst_12 = arith.constant dense<0.000000e+00> : vector<32x512xf32>
    %17 = tpu.matmul %11, %16, %cst_12 {dimension_numbers = #tpu.dot_dimension_numbers<[1], [0], [0], [1], [0, 0, 1, 1], [], []>} : vector<32x64xf32>, vector<64x512xf32>, vector<32x512xf32> -> vector<32x512xf32>
    %c0_13 = arith.constant 0 : index
    %18 = memref.load %arg1[%c0_13] : memref<1xi32, #tpu.memory_space<smem>>
    %19 = tpu.iota {dimensions = array<i32: 1>} : vector<16x64xi32>
    %c0_14 = arith.constant 0 : index
    %c0_15 = arith.constant 0 : index
    %20 = vector.load %arg6[%c0_14, %c0_15] : memref<32x64xf32, #tpu.memory_space<vmem>>, vector<16x64xf32>
    %c16 = arith.constant 16 : index
    %c0_16 = arith.constant 0 : index
    %21 = vector.load %arg6[%c16, %c0_16] : memref<32x64xf32, #tpu.memory_space<vmem>>, vector<16x64xf32>
    %cst_17 = arith.constant 0.000000e+00 : f32
    %22 = vector.broadcast %cst_17 : f32 to vector<2x128xf32>
    %c0_18 = arith.constant 0 : index
    %c0_19 = arith.constant 0 : index
    %23 = vector.load %arg7[%c0_18, %c0_19] : memref<2x128xf32, #tpu.memory_space<vmem>>, vector<2x128xf32>
    tpu.vector_store %arg7[%c0_18, %c0_19], %22 {strides = array<i32>} : memref<2x128xf32, #tpu.memory_space<vmem>>, vector<2x128xf32>,
    %24 = vector.extract_strided_slice %16 {offsets = [0, 0], sizes = [64, 256], strides = [1, 1]} : vector<64x512xf32> to vector<64x256xf32>
    %cst_20 = arith.constant dense<0.000000e+00> : vector<64xf32>
    %25 = vector.multi_reduction <add>, %24, %cst_20 [1] : vector<64x256xf32> to vector<64xf32>
    %26 = vector.shape_cast %25 : vector<64xf32> to vector<64x1xf32>
    %cst_21 = arith.constant 3.906250e-03 : f32
    %27 = vector.broadcast %cst_21 : f32 to vector<64x1xf32>
    %28 = arith.mulf %26, %27 : vector<64x1xf32>
    %cst_22 = arith.constant dense<0.000000e+00> : vector<32x1xf32>
    %29 = tpu.matmul %12, %28, %cst_22 {dimension_numbers = #tpu.dot_dimension_numbers<[1], [0], [0], [1], [0, 0, 1, 1], [], []>} : vector<32x64xf32>, vector<64x1xf32>, vector<32x1xf32> -> vector<32x1xf32>
    %30 = vector.extract_strided_slice %29 {offsets = [0, 0], sizes = [16, 1], strides = [1, 1]} : vector<32x1xf32> to vector<16x1xf32>
    %31 = arith.mulf %30, %30 : vector<16x1xf32>
    %cst_23 = arith.constant dense<0.000000e+00> : vector<1xf32>
    %32 = vector.multi_reduction <add>, %31, %cst_23 [0] : vector<16x1xf32> to vector<1xf32>
    %33 = vector.shape_cast %32 : vector<1xf32> to vector<1x1xf32>
    %cst_24 = arith.constant 1.000000e-24 : f32
    %34 = vector.broadcast %cst_24 : f32 to vector<1x1xf32>
    %35 = arith.maximumf %33, %34 : vector<1x1xf32>
    %36 = math.rsqrt %35 : vector<1x1xf32>
    %37 = vector.broadcast %36 : vector<1x1xf32> to vector<16x1xf32>
    %38 = arith.mulf %30, %37 : vector<16x1xf32>
    %39 = vector.extract_strided_slice %29 {offsets = [16, 0], sizes = [16, 1], strides = [1, 1]} : vector<32x1xf32> to vector<16x1xf32>
    %40 = arith.mulf %39, %39 : vector<16x1xf32>
    %cst_25 = arith.constant dense<0.000000e+00> : vector<1xf32>
    %41 = vector.multi_reduction <add>, %40, %cst_25 [0] : vector<16x1xf32> to vector<1xf32>
    %42 = vector.shape_cast %41 : vector<1xf32> to vector<1x1xf32>
    %cst_26 = arith.constant 1.000000e-24 : f32
    %43 = vector.broadcast %cst_26 : f32 to vector<1x1xf32>
    %44 = arith.maximumf %42, %43 : vector<1x1xf32>
    %45 = math.rsqrt %44 : vector<1x1xf32>
    %46 = vector.broadcast %45 : vector<1x1xf32> to vector<16x1xf32>
    %47 = arith.mulf %39, %46 : vector<16x1xf32>
    %cst_27 = arith.constant dense<0.000000e+00> : vector<1x64xf32>
    %48 = tpu.matmul %38, %20, %cst_27 {dimension_numbers = #tpu.dot_dimension_numbers<[0], [0], [1], [1], [0, 1, 1, 1], [], []>} : vector<16x1xf32>, vector<16x64xf32>, vector<1x64xf32> -> vector<1x64xf32>
    %49 = arith.mulf %38, %47 : vector<16x1xf32>
    %cst_28 = arith.constant dense<0.000000e+00> : vector<1xf32>
    %50 = vector.multi_reduction <add>, %49, %cst_28 [0] : vector<16x1xf32> to vector<1xf32>
    %51 = vector.shape_cast %50 : vector<1xf32> to vector<1x1xf32>
    %cst_29 = arith.constant 14.2857141 : f32
    %52 = vector.broadcast %cst_29 : f32 to vector<1x64xf32>
    %53 = arith.mulf %48, %52 : vector<1x64xf32>
    %c0_30 = arith.constant 0 : index
    %c0_31 = arith.constant 0 : index
    %54 = vector.load %arg7[%c0_30, %c0_31] : memref<2x128xf32, #tpu.memory_space<vmem>>, vector<1x64xf32>
    tpu.vector_store %arg7[%c0_30, %c0_31], %53 {strides = array<i32>} : memref<2x128xf32, #tpu.memory_space<vmem>>, vector<1x64xf32>,
    %cst_32 = arith.constant 14.2857141 : f32
    %55 = vector.broadcast %cst_32 : f32 to vector<1x1xf32>
    %56 = arith.mulf %51, %55 : vector<1x1xf32>
    %c0_33 = arith.constant 0 : index
    %c64 = arith.constant 64 : index
    %57 = vector.load %arg7[%c0_33, %c64] : memref<2x128xf32, #tpu.memory_space<vmem>>, vector<1x1xf32>
    tpu.vector_store %arg7[%c0_33, %c64], %56 {strides = array<i32>} : memref<2x128xf32, #tpu.memory_space<vmem>>, vector<1x1xf32>,
    %58 = vector.extract_strided_slice %17 {offsets = [16, 0], sizes = [16, 256], strides = [1, 1]} : vector<32x512xf32> to vector<16x256xf32>
    %cst_34 = arith.constant dense<0.000000e+00> : vector<16xf32>
    %59 = vector.multi_reduction <add>, %58, %cst_34 [1] : vector<16x256xf32> to vector<16xf32>
    %60 = vector.shape_cast %59 : vector<16xf32> to vector<16x1xf32>
    %cst_35 = arith.constant 3.906250e-03 : f32
    %61 = vector.broadcast %cst_35 : f32 to vector<16x1xf32>
    %62 = arith.mulf %60, %61 : vector<16x1xf32>
    %63 = arith.mulf %62, %62 : vector<16x1xf32>
    %cst_36 = arith.constant dense<0.000000e+00> : vector<1xf32>
    %64 = vector.multi_reduction <add>, %63, %cst_36 [0] : vector<16x1xf32> to vector<1xf32>
    %65 = vector.shape_cast %64 : vector<1xf32> to vector<1x1xf32>
    %cst_37 = arith.constant 1.000000e-24 : f32
    %66 = vector.broadcast %cst_37 : f32 to vector<1x1xf32>
    %67 = arith.maximumf %65, %66 : vector<1x1xf32>
    %68 = math.rsqrt %67 : vector<1x1xf32>
    %69 = vector.broadcast %68 : vector<1x1xf32> to vector<16x1xf32>
    %70 = arith.mulf %62, %69 : vector<16x1xf32>
    %c0_i32 = arith.constant 0 : i32
    %71 = arith.addi %18, %c0_i32 : i32
    %72 = vector.broadcast %71 : i32 to vector<16x64xi32>
    %73 = arith.cmpi eq, %19, %72 : vector<16x64xi32>
    %74 = vector.shape_cast %47 : vector<16x1xf32> to vector<16x1xf32>
    %75 = vector.broadcast %74 : vector<16x1xf32> to vector<16x64xf32>
    %76 = arith.select %73, %75, %20 : vector<16x64xi1>, vector<16x64xf32>
    %77 = vector.shape_cast %70 : vector<16x1xf32> to vector<16x1xf32>
    %78 = vector.broadcast %77 : vector<16x1xf32> to vector<16x64xf32>
    %79 = arith.select %73, %78, %21 : vector<16x64xi1>, vector<16x64xf32>
    %80 = vector.extract_strided_slice %16 {offsets = [0, 256], sizes = [64, 256], strides = [1, 1]} : vector<64x512xf32> to vector<64x256xf32>
    %cst_38 = arith.constant dense<0.000000e+00> : vector<64xf32>
    %81 = vector.multi_reduction <add>, %80, %cst_38 [1] : vector<64x256xf32> to vector<64xf32>
    %82 = vector.shape_cast %81 : vector<64xf32> to vector<64x1xf32>
    %cst_39 = arith.constant 3.906250e-03 : f32
    %83 = vector.broadcast %cst_39 : f32 to vector<64x1xf32>
    %84 = arith.mulf %82, %83 : vector<64x1xf32>
    %cst_40 = arith.constant dense<0.000000e+00> : vector<32x1xf32>
    %85 = tpu.matmul %12, %84, %cst_40 {dimension_numbers = #tpu.dot_dimension_numbers<[1], [0], [0], [1], [0, 0, 1, 1], [], []>} : vector<32x64xf32>, vector<64x1xf32>, vector<32x1xf32> -> vector<32x1xf32>
    %86 = vector.extract_strided_slice %85 {offsets = [0, 0], sizes = [16, 1], strides = [1, 1]} : vector<32x1xf32> to vector<16x1xf32>
    %87 = arith.mulf %86, %86 : vector<16x1xf32>
    %cst_41 = arith.constant dense<0.000000e+00> : vector<1xf32>
    %88 = vector.multi_reduction <add>, %87, %cst_41 [0] : vector<16x1xf32> to vector<1xf32>
    %89 = vector.shape_cast %88 : vector<1xf32> to vector<1x1xf32>
    %cst_42 = arith.constant 1.000000e-24 : f32
    %90 = vector.broadcast %cst_42 : f32 to vector<1x1xf32>
    %91 = arith.maximumf %89, %90 : vector<1x1xf32>
    %92 = math.rsqrt %91 : vector<1x1xf32>
    %93 = vector.broadcast %92 : vector<1x1xf32> to vector<16x1xf32>
    %94 = arith.mulf %86, %93 : vector<16x1xf32>
    %95 = vector.extract_strided_slice %85 {offsets = [16, 0], sizes = [16, 1], strides = [1, 1]} : vector<32x1xf32> to vector<16x1xf32>
    %96 = arith.mulf %95, %95 : vector<16x1xf32>
    %cst_43 = arith.constant dense<0.000000e+00> : vector<1xf32>
    %97 = vector.multi_reduction <add>, %96, %cst_43 [0] : vector<16x1xf32> to vector<1xf32>
    %98 = vector.shape_cast %97 : vector<1xf32> to vector<1x1xf32>
    %cst_44 = arith.constant 1.000000e-24 : f32
    %99 = vector.broadcast %cst_44 : f32 to vector<1x1xf32>
    %100 = arith.maximumf %98, %99 : vector<1x1xf32>
    %101 = math.rsqrt %100 : vector<1x1xf32>
    %102 = vector.broadcast %101 : vector<1x1xf32> to vector<16x1xf32>
    %103 = arith.mulf %95, %102 : vector<16x1xf32>
    %cst_45 = arith.constant dense<0.000000e+00> : vector<1x64xf32>
    %104 = tpu.matmul %94, %20, %cst_45 {dimension_numbers = #tpu.dot_dimension_numbers<[0], [0], [1], [1], [0, 1, 1, 1], [], []>} : vector<16x1xf32>, vector<16x64xf32>, vector<1x64xf32> -> vector<1x64xf32>
    %105 = arith.mulf %94, %103 : vector<16x1xf32>
    %cst_46 = arith.constant dense<0.000000e+00> : vector<1xf32>
    %106 = vector.multi_reduction <add>, %105, %cst_46 [0] : vector<16x1xf32> to vector<1xf32>
    %107 = vector.shape_cast %106 : vector<1xf32> to vector<1x1xf32>
    %cst_47 = arith.constant 14.2857141 : f32
    %108 = vector.broadcast %cst_47 : f32 to vector<1x64xf32>
    %109 = arith.mulf %104, %108 : vector<1x64xf32>
    %c1 = arith.constant 1 : index
    %c0_48 = arith.constant 0 : index
    %110 = vector.load %arg7[%c1, %c0_48] : memref<2x128xf32, #tpu.memory_space<vmem>>, vector<1x64xf32>
    tpu.vector_store %arg7[%c1, %c0_48], %109 {strides = array<i32>} : memref<2x128xf32, #tpu.memory_space<vmem>>, vector<1x64xf32>,
    %cst_49 = arith.constant 14.2857141 : f32
    %111 = vector.broadcast %cst_49 : f32 to vector<1x1xf32>
    %112 = arith.mulf %107, %111 : vector<1x1xf32>
    %c1_50 = arith.constant 1 : index
    %c64_51 = arith.constant 64 : index
    %113 = vector.load %arg7[%c1_50, %c64_51] : memref<2x128xf32, #tpu.memory_space<vmem>>, vector<1x1xf32>
    tpu.vector_store %arg7[%c1_50, %c64_51], %112 {strides = array<i32>} : memref<2x128xf32, #tpu.memory_space<vmem>>, vector<1x1xf32>,
    %114 = vector.extract_strided_slice %17 {offsets = [16, 256], sizes = [16, 256], strides = [1, 1]} : vector<32x512xf32> to vector<16x256xf32>
    %cst_52 = arith.constant dense<0.000000e+00> : vector<16xf32>
    %115 = vector.multi_reduction <add>, %114, %cst_52 [1] : vector<16x256xf32> to vector<16xf32>
    %116 = vector.shape_cast %115 : vector<16xf32> to vector<16x1xf32>
    %cst_53 = arith.constant 3.906250e-03 : f32
    %117 = vector.broadcast %cst_53 : f32 to vector<16x1xf32>
    %118 = arith.mulf %116, %117 : vector<16x1xf32>
    %119 = arith.mulf %118, %118 : vector<16x1xf32>
    %cst_54 = arith.constant dense<0.000000e+00> : vector<1xf32>
    %120 = vector.multi_reduction <add>, %119, %cst_54 [0] : vector<16x1xf32> to vector<1xf32>
    %121 = vector.shape_cast %120 : vector<1xf32> to vector<1x1xf32>
    %cst_55 = arith.constant 1.000000e-24 : f32
    %122 = vector.broadcast %cst_55 : f32 to vector<1x1xf32>
    %123 = arith.maximumf %121, %122 : vector<1x1xf32>
    %124 = math.rsqrt %123 : vector<1x1xf32>
    %125 = vector.broadcast %124 : vector<1x1xf32> to vector<16x1xf32>
    %126 = arith.mulf %118, %125 : vector<16x1xf32>
    %c1_i32 = arith.constant 1 : i32
    %127 = arith.addi %18, %c1_i32 : i32
    %128 = vector.broadcast %127 : i32 to vector<16x64xi32>
    %129 = arith.cmpi eq, %19, %128 : vector<16x64xi32>
    %130 = vector.shape_cast %103 : vector<16x1xf32> to vector<16x1xf32>
    %131 = vector.broadcast %130 : vector<16x1xf32> to vector<16x64xf32>
    %132 = arith.select %129, %131, %76 : vector<16x64xi1>, vector<16x64xf32>
    %133 = vector.shape_cast %126 : vector<16x1xf32> to vector<16x1xf32>
    %134 = vector.broadcast %133 : vector<16x1xf32> to vector<16x64xf32>
    %135 = arith.select %129, %134, %79 : vector<16x64xi1>, vector<16x64xf32>
    %c0_56 = arith.constant 0 : index
    %c0_57 = arith.constant 0 : index
    %136 = vector.load %arg9[%c0_56, %c0_57] : memref<32x64xf32, #tpu.memory_space<vmem>>, vector<16x64xf32>
    tpu.vector_store %arg9[%c0_56, %c0_57], %132 {strides = array<i32>} : memref<32x64xf32, #tpu.memory_space<vmem>>, vector<16x64xf32>,
    %c16_58 = arith.constant 16 : index
    %c0_59 = arith.constant 0 : index
    %137 = vector.load %arg9[%c16_58, %c0_59] : memref<32x64xf32, #tpu.memory_space<vmem>>, vector<16x64xf32>
    tpu.vector_store %arg9[%c16_58, %c0_59], %135 {strides = array<i32>} : memref<32x64xf32, #tpu.memory_space<vmem>>, vector<16x64xf32>,
    %138 = vector.extract_strided_slice %16 {offsets = [32, 0], sizes = [32, 512], strides = [1, 1]} : vector<64x512xf32> to vector<32x512xf32>
    %139 = arith.mulf %138, %138 : vector<32x512xf32>
    %cst_60 = arith.constant dense<0.000000e+00> : vector<512xf32>
    %140 = vector.multi_reduction <add>, %139, %cst_60 [0] : vector<32x512xf32> to vector<512xf32>
    %141 = vector.shape_cast %140 : vector<512xf32> to vector<1x512xf32>
    %cst_61 = arith.constant 1.000000e-24 : f32
    %142 = vector.broadcast %cst_61 : f32 to vector<1x512xf32>
    %143 = arith.maximumf %141, %142 : vector<1x512xf32>
    %144 = math.rsqrt %143 : vector<1x512xf32>
    %145 = vector.broadcast %144 : vector<1x512xf32> to vector<32x512xf32>
    %146 = arith.mulf %138, %145 : vector<32x512xf32>
    %147 = vector.extract_strided_slice %17 {offsets = [16, 0], sizes = [16, 512], strides = [1, 1]} : vector<32x512xf32> to vector<16x512xf32>
    %148 = arith.mulf %147, %147 : vector<16x512xf32>
    %cst_62 = arith.constant dense<0.000000e+00> : vector<512xf32>
    %149 = vector.multi_reduction <add>, %148, %cst_62 [0] : vector<16x512xf32> to vector<512xf32>
    %150 = vector.shape_cast %149 : vector<512xf32> to vector<1x512xf32>
    %cst_63 = arith.constant 1.000000e-24 : f32
    %151 = vector.broadcast %cst_63 : f32 to vector<1x512xf32>
    %152 = arith.maximumf %150, %151 : vector<1x512xf32>
    %153 = math.rsqrt %152 : vector<1x512xf32>
    %154 = vector.broadcast %153 : vector<1x512xf32> to vector<16x512xf32>
    %155 = arith.mulf %147, %154 : vector<16x512xf32>
    %156 = vector.extract_strided_slice %17 {offsets = [0, 0], sizes = [16, 512], strides = [1, 1]} : vector<32x512xf32> to vector<16x512xf32>
    %157 = arith.mulf %156, %156 : vector<16x512xf32>
    %cst_64 = arith.constant dense<0.000000e+00> : vector<512xf32>
    %158 = vector.multi_reduction <add>, %157, %cst_64 [0] : vector<16x512xf32> to vector<512xf32>
    %159 = vector.shape_cast %158 : vector<512xf32> to vector<1x512xf32>
    %cst_65 = arith.constant 1.000000e-24 : f32
    %160 = vector.broadcast %cst_65 : f32 to vector<1x512xf32>
    %161 = arith.maximumf %159, %160 : vector<1x512xf32>
    %162 = math.rsqrt %161 : vector<1x512xf32>
    %163 = vector.broadcast %162 : vector<1x512xf32> to vector<16x512xf32>
    %164 = arith.mulf %156, %163 : vector<16x512xf32>
    %165 = vector.extract_strided_slice %16 {offsets = [0, 0], sizes = [32, 512], strides = [1, 1]} : vector<64x512xf32> to vector<32x512xf32>
    %166 = arith.mulf %165, %165 : vector<32x512xf32>
    %cst_66 = arith.constant dense<0.000000e+00> : vector<512xf32>
    %167 = vector.multi_reduction <add>, %166, %cst_66 [0] : vector<32x512xf32> to vector<512xf32>
    %168 = vector.shape_cast %167 : vector<512xf32> to vector<1x512xf32>
    %cst_67 = arith.constant 1.000000e-24 : f32
    %169 = vector.broadcast %cst_67 : f32 to vector<1x512xf32>
    %170 = arith.maximumf %168, %169 : vector<1x512xf32>
    %171 = math.rsqrt %170 : vector<1x512xf32>
    %172 = vector.broadcast %171 : vector<1x512xf32> to vector<32x512xf32>
    %173 = arith.mulf %165, %172 : vector<32x512xf32>
    %c0_68 = arith.constant 0 : index
    %c0_69 = arith.constant 0 : index
    %174 = vector.load %arg11[%c0_68, %c0_69] : memref<32x512xf32, #tpu.memory_space<vmem>>, vector<32x512xf32>
    tpu.vector_store %arg11[%c0_68, %c0_69], %173 {strides = array<i32>} : memref<32x512xf32, #tpu.memory_space<vmem>>, vector<32x512xf32>,
    %c0_70 = arith.constant 0 : index
    %c0_71 = arith.constant 0 : index
    %175 = vector.load %arg12[%c0_70, %c0_71] : memref<16x512xf32, #tpu.memory_space<vmem>>, vector<16x512xf32>
    tpu.vector_store %arg12[%c0_70, %c0_71], %164 {strides = array<i32>} : memref<16x512xf32, #tpu.memory_space<vmem>>, vector<16x512xf32>,
    %cst_72 = arith.constant dense<0.000000e+00> : vector<64x512xf32>
    %176 = tpu.matmul %21, %164, %cst_72 {dimension_numbers = #tpu.dot_dimension_numbers<[0], [0], [1], [1], [0, 1, 1, 1], [], []>} : vector<16x64xf32>, vector<16x512xf32>, vector<64x512xf32> -> vector<64x512xf32>
    %cst_73 = arith.constant 14.2857141 : f32
    %177 = vector.broadcast %cst_73 : f32 to vector<64x512xf32>
    %178 = arith.mulf %176, %177 : vector<64x512xf32>
    %c0_74 = arith.constant 0 : index
    %c0_75 = arith.constant 0 : index
    %179 = vector.load %arg8[%c0_74, %c0_75] : memref<65x512xf32, #tpu.memory_space<vmem>>, vector<64x512xf32>
    tpu.vector_store %arg8[%c0_74, %c0_75], %178 {strides = array<i32>} : memref<65x512xf32, #tpu.memory_space<vmem>>, vector<64x512xf32>,
    %180 = vector.extract_strided_slice %146 {offsets = [0, 0], sizes = [32, 256], strides = [1, 1]} : vector<32x512xf32> to vector<32x256xf32>
    %181 = vector.extract_strided_slice %155 {offsets = [0, 0], sizes = [16, 256], strides = [1, 1]} : vector<16x512xf32> to vector<16x256xf32>
    %c0_i32_76 = arith.constant 0 : i32
    %c2_i32 = arith.constant 2 : i32
    %182 = arith.addi %c0_i32_76, %c2_i32 : i32
    %c1_i32_77 = arith.constant 1 : i32
    scf.for %arg13 = %c0_i32_76 to %182 step %c1_i32_77  : i32 {
      %c128_i32 = arith.constant 128 : i32
      %186 = arith.muli %arg13, %c128_i32 : i32
      %c0_i32_83 = arith.constant 0 : i32
      %187 = arith.addi %c0_i32_83, %186 : i32
      %188 = tpu.assume_multiple %187, 128 : i32
      %c0_84 = arith.constant 0 : index
      %189 = arith.index_cast %188 : i32 to index
      %190 = vector.load %arg11[%c0_84, %189] : memref<32x512xf32, #tpu.memory_space<vmem>>, vector<32x128xf32>
      %cst_85 = arith.constant dense<0.000000e+00> : vector<128x256xf32>
      %191 = tpu.matmul %190, %180, %cst_85 {dimension_numbers = #tpu.dot_dimension_numbers<[0], [0], [1], [1], [0, 1, 1, 1], [], []>} : vector<32x128xf32>, vector<32x256xf32>, vector<128x256xf32> -> vector<128x256xf32>
      %cst_86 = arith.constant dense<0xFF800000> : vector<128xf32>
      %192 = vector.multi_reduction <maximumf>, %191, %cst_86 [1] : vector<128x256xf32> to vector<128xf32>
      %193 = vector.shape_cast %192 : vector<128xf32> to vector<128x1xf32>
      %194 = tpu.iota {dimensions = array<i32: 1>} : vector<128x256xi32>
      %195 = vector.broadcast %193 : vector<128x1xf32> to vector<128x256xf32>
      %196 = arith.cmpf oge, %191, %195 : vector<128x256xf32>
      %c256_i32 = arith.constant 256 : i32
      %197 = vector.broadcast %c256_i32 : i32 to vector<128x256xi32>
      %198 = arith.select %196, %194, %197 : vector<128x256xi1>, vector<128x256xi32>
      %cst_87 = arith.constant dense<2147483647> : vector<128xi32>
      %199 = vector.multi_reduction <minsi>, %198, %cst_87 [1] : vector<128x256xi32> to vector<128xi32>
      %200 = vector.shape_cast %199 : vector<128xi32> to vector<128x1xi32>
      %201 = vector.broadcast %200 : vector<128x1xi32> to vector<128x256xi32>
      %202 = arith.cmpi eq, %194, %201 : vector<128x256xi32>
      %203 = arith.extui %202 : vector<128x256xi1> to vector<128x256xi32>
      %204 = arith.sitofp %203 : vector<128x256xi32> to vector<128x256xf32>
      %cst_88 = arith.constant dense<0.000000e+00> : vector<16x128xf32>
      %205 = tpu.matmul %181, %204, %cst_88 {dimension_numbers = #tpu.dot_dimension_numbers<[1], [1], [0], [0], [0, 0, 1, 0], [], []>} : vector<16x256xf32>, vector<128x256xf32>, vector<16x128xf32> -> vector<16x128xf32>
      %c0_89 = arith.constant 0 : index
      %206 = arith.index_cast %188 : i32 to index
      %207 = vector.load %arg12[%c0_89, %206] : memref<16x512xf32, #tpu.memory_space<vmem>>, vector<16x128xf32>
      %208 = arith.mulf %207, %205 : vector<16x128xf32>
      %cst_90 = arith.constant dense<0.000000e+00> : vector<128xf32>
      %209 = vector.multi_reduction <add>, %208, %cst_90 [0] : vector<16x128xf32> to vector<128xf32>
      %210 = vector.shape_cast %209 : vector<128xf32> to vector<1x128xf32>
      %cst_91 = arith.constant 14.2857141 : f32
      %211 = vector.broadcast %cst_91 : f32 to vector<1x128xf32>
      %212 = arith.mulf %210, %211 : vector<1x128xf32>
      %c64_92 = arith.constant 64 : index
      %213 = arith.index_cast %188 : i32 to index
      %214 = vector.load %arg8[%c64_92, %213] : memref<65x512xf32, #tpu.memory_space<vmem>>, vector<1x128xf32>
      tpu.vector_store %arg8[%c64_92, %213], %212 {strides = array<i32>} : memref<65x512xf32, #tpu.memory_space<vmem>>, vector<1x128xf32>,
    }
    %c2_i32_78 = arith.constant 2 : i32
    %183 = vector.extract_strided_slice %146 {offsets = [0, 256], sizes = [32, 256], strides = [1, 1]} : vector<32x512xf32> to vector<32x256xf32>
    %184 = vector.extract_strided_slice %155 {offsets = [0, 256], sizes = [16, 256], strides = [1, 1]} : vector<16x512xf32> to vector<16x256xf32>
    %c0_i32_79 = arith.constant 0 : i32
    %c2_i32_80 = arith.constant 2 : i32
    %185 = arith.addi %c0_i32_79, %c2_i32_80 : i32
    %c1_i32_81 = arith.constant 1 : i32
    scf.for %arg13 = %c0_i32_79 to %185 step %c1_i32_81  : i32 {
      %c128_i32 = arith.constant 128 : i32
      %186 = arith.muli %arg13, %c128_i32 : i32
      %c256_i32 = arith.constant 256 : i32
      %187 = arith.addi %c256_i32, %186 : i32
      %188 = tpu.assume_multiple %187, 128 : i32
      %c0_83 = arith.constant 0 : index
      %189 = arith.index_cast %188 : i32 to index
      %190 = vector.load %arg11[%c0_83, %189] : memref<32x512xf32, #tpu.memory_space<vmem>>, vector<32x128xf32>
      %cst_84 = arith.constant dense<0.000000e+00> : vector<128x256xf32>
      %191 = tpu.matmul %190, %183, %cst_84 {dimension_numbers = #tpu.dot_dimension_numbers<[0], [0], [1], [1], [0, 1, 1, 1], [], []>} : vector<32x128xf32>, vector<32x256xf32>, vector<128x256xf32> -> vector<128x256xf32>
      %cst_85 = arith.constant dense<0xFF800000> : vector<128xf32>
      %192 = vector.multi_reduction <maximumf>, %191, %cst_85 [1] : vector<128x256xf32> to vector<128xf32>
      %193 = vector.shape_cast %192 : vector<128xf32> to vector<128x1xf32>
      %194 = tpu.iota {dimensions = array<i32: 1>} : vector<128x256xi32>
      %195 = vector.broadcast %193 : vector<128x1xf32> to vector<128x256xf32>
      %196 = arith.cmpf oge, %191, %195 : vector<128x256xf32>
      %c256_i32_86 = arith.constant 256 : i32
      %197 = vector.broadcast %c256_i32_86 : i32 to vector<128x256xi32>
      %198 = arith.select %196, %194, %197 : vector<128x256xi1>, vector<128x256xi32>
      %cst_87 = arith.constant dense<2147483647> : vector<128xi32>
      %199 = vector.multi_reduction <minsi>, %198, %cst_87 [1] : vector<128x256xi32> to vector<128xi32>
      %200 = vector.shape_cast %199 : vector<128xi32> to vector<128x1xi32>
      %201 = vector.broadcast %200 : vector<128x1xi32> to vector<128x256xi32>
      %202 = arith.cmpi eq, %194, %201 : vector<128x256xi32>
      %203 = arith.extui %202 : vector<128x256xi1> to vector<128x256xi32>
      %204 = arith.sitofp %203 : vector<128x256xi32> to vector<128x256xf32>
      %cst_88 = arith.constant dense<0.000000e+00> : vector<16x128xf32>
      %205 = tpu.matmul %184, %204, %cst_88 {dimension_numbers = #tpu.dot_dimension_numbers<[1], [1], [0], [0], [0, 0, 1, 0], [], []>} : vector<16x256xf32>, vector<128x256xf32>, vector<16x128xf32> -> vector<16x128xf32>
      %c0_89 = arith.constant 0 : index
      %206 = arith.index_cast %188 : i32 to index
      %207 = vector.load %arg12[%c0_89, %206] : memref<16x512xf32, #tpu.memory_space<vmem>>, vector<16x128xf32>
      %208 = arith.mulf %207, %205 : vector<16x128xf32>
      %cst_90 = arith.constant dense<0.000000e+00> : vector<128xf32>
      %209 = vector.multi_reduction <add>, %208, %cst_90 [0] : vector<16x128xf32> to vector<128xf32>
      %210 = vector.shape_cast %209 : vector<128xf32> to vector<1x128xf32>
      %cst_91 = arith.constant 14.2857141 : f32
      %211 = vector.broadcast %cst_91 : f32 to vector<1x128xf32>
      %212 = arith.mulf %210, %211 : vector<1x128xf32>
      %c64_92 = arith.constant 64 : index
      %213 = arith.index_cast %188 : i32 to index
      %214 = vector.load %arg8[%c64_92, %213] : memref<65x512xf32, #tpu.memory_space<vmem>>, vector<1x128xf32>
      tpu.vector_store %arg8[%c64_92, %213], %212 {strides = array<i32>} : memref<65x512xf32, #tpu.memory_space<vmem>>, vector<1x128xf32>,
    }
    %c2_i32_82 = arith.constant 2 : i32
    return
  }
  func.func @transform_0(%arg0: i32) -> i32 {
    %c0_i32 = arith.constant 0 : i32
    %c0_i32_0 = arith.constant 0 : i32
    return %c0_i32 : i32
  }
  func.func @transform_1(%arg0: i32) -> (i32, i32) {
    %c0_i32 = arith.constant 0 : i32
    %c0_i32_0 = arith.constant 0 : i32
    %c0_i32_1 = arith.constant 0 : i32
    return %c0_i32, %c0_i32_0 : i32, i32
  }
  func.func @transform_2(%arg0: i32) -> (i32, i32) {
    %c0_i32 = arith.constant 0 : i32
    %c0_i32_0 = arith.constant 0 : i32
    %c0_i32_1 = arith.constant 0 : i32
    return %c0_i32, %c0_i32_0 : i32, i32
  }
  func.func @transform_3(%arg0: i32) -> (i32, i32) {
    %c0_i32 = arith.constant 0 : i32
    %c0_i32_0 = arith.constant 0 : i32
    %c0_i32_1 = arith.constant 0 : i32
    return %c0_i32, %c0_i32_0 : i32, i32
  }
  func.func @transform_4(%arg0: i32) -> (i32, i32) {
    %c0_i32 = arith.constant 0 : i32
    %c0_i32_0 = arith.constant 0 : i32
    %c0_i32_1 = arith.constant 0 : i32
    return %c0_i32, %c0_i32_0 : i32, i32
  }
  func.func @transform_5(%arg0: i32) -> (i32, i32) {
    %c0_i32 = arith.constant 0 : i32
    %c0_i32_0 = arith.constant 0 : i32
    %c0_i32_1 = arith.constant 0 : i32
    return %c0_i32, %c0_i32_0 : i32, i32
  }
  func.func @transform_6(%arg0: i32) -> (i32, i32) {
    %c0_i32 = arith.constant 0 : i32
    %c0_i32_0 = arith.constant 0 : i32
    %c0_i32_1 = arith.constant 0 : i32
    return %c0_i32, %c0_i32_0 : i32, i32
  }
  func.func @transform_7(%arg0: i32) -> (i32, i32) {
    %c0_i32 = arith.constant 0 : i32
    %c0_i32_0 = arith.constant 0 : i32
    %c0_i32_1 = arith.constant 0 : i32
    return %c0_i32, %c0_i32_0 : i32, i32
  }
  func.func @transform_8(%arg0: i32) -> (i32, i32) {
    %c0_i32 = arith.constant 0 : i32
    %c0_i32_0 = arith.constant 0 : i32
    %c0_i32_1 = arith.constant 0 : i32
    return %c0_i32, %c0_i32_0 : i32, i32
  }
  func.func @transform_9(%arg0: i32) -> (i32, i32) {
    %c0_i32 = arith.constant 0 : i32
    %c0_i32_0 = arith.constant 0 : i32
    %c0_i32_1 = arith.constant 0 : i32
    return %c0_i32, %c0_i32_0 : i32, i32
  }
}

</mosaic_0001>

<bundles_post_ra>
// kernel: moco_forward.1
= control target key start
LH: loop header
LB: loop body
LE: loop exit
PB: predicated region body
PF: predicated region fallthrough
CT: control target
= control target key end

     0   :  { %vm108_vm0 = vcmask 523264   ;;  %vm165_vm1 = vcmask 130048   ;;  %s3638_s25 = smov 64   ;;  %s4752_s10 = smov 0   ;;  %s5685_s1 = inlined_call_operand.vmem [shape: f32[16,512], index: 1, kind: input, shape index: {}]   ;;  %s5686_s3 = inlined_call_operand.vmem [shape: f32[128,64], index: 3, kind: input, shape index: {}]   ;;  %s5687_s4 = inlined_call_operand.vmem [shape: f32[128,64], index: 4, kind: input, shape index: {}, may-alias: {4,9}]   ;;  %s5688_s2 = inlined_call_operand.vmem [shape: f32[128,64], index: 2, kind: input, shape index: {}]   ;;  %s5689_s9 = inlined_call_operand.vmem [shape: f32[128,64], index: 9, kind: output, shape index: {3}, may-alias: {4,9}]   ;;  %s5690_s5 = inlined_call_operand.vmem [shape: f32[32,64], index: 5, kind: input, shape index: {}, may-alias: {5,8}]   ;;  %s5691_s0 = inlined_call_operand.<no memory space> [shape: s32[1], index: 0, kind: input, shape index: {}]   ;;  %s5692_s8 = inlined_call_operand.vmem [shape: f32[32,64], index: 8, kind: output, shape index: {2}, may-alias: {5,8}]   ;;  %s5693_s6 = inlined_call_operand.vmem [shape: f32[2,128], index: 6, kind: output, shape index: {0}]   ;;  %s5694_s7 = inlined_call_operand.vmem [shape: f32[65,512], index: 7, kind: output, shape index: {1}]  }
   0x1   :  { %v161_v0 = vld [vmem:[%s5685_s1 + $0x20] sm:$0xff]  ;;  %v163_v1 = vld [vmem:[%s5685_s1 + $0x30] sm:$0xff]  ;;  %v35_v8 = vld [vmem:[%s5687_s4 + $0x38] sm:$0xff]  ;;  %s979_s28 = sadd.s32 1, %s5691_s0 }
   0x2   :  { %v157_v2 = vld [vmem:[%s5685_s1] sm:$0xff]  ;;  %204 = vmatpush.msra.mxu0 %v161_v0  ;;  %3545 = vmatpush.msra.mxu1 %v161_v0  ;;  %v159_v3 = vld [vmem:[%s5685_s1 + $0x10] sm:$0xff]  ;;  %v51_v10 = vmul.f32 0.999, %v35_v8  ;;  %v67_v11 = vld [vmem:[%s5686_s3 + $0x38] sm:$0xff] }
   0x3   :  { %v28_v4 = vld [vmem:[%s5687_s4] sm:$0xff]  ;;  %286 = vmatpush.msra.mxu2 %v163_v1  ;;  %3547 = vmatpush.msra.mxu3 %v163_v1  ;;  %v162_v12 = vld [vmem:[%s5685_s1 + $0x28] sm:$0xff]  ;;  %v83_v14 = vmul.f32 0.001, %v67_v11  ;;  %v164_v15 = vld [vmem:[%s5685_s1 + $0x38] sm:$0xff] }
   0x4   :  { %v60_v5 = vld [vmem:[%s5686_s3] sm:$0xff]  ;;  %v44_v6 = vmul.f32 0.999, %v28_v4  ;;  %205 = vmatpush.msra.mxu0 %v157_v2  ;;  %3546 = vmatpush.msra.mxu1 %v157_v2  ;;  %v158_v16 = vld [vmem:[%s5685_s1 + $0x8] sm:$0xff]  ;;  %v160_v17 = vld [vmem:[%s5685_s1 + $0x18] sm:$0xff] }
   0x5   :  { %v76_v7 = vmul.f32 0.001, %v60_v5  ;;  %v125_v9 = vld [vmem:[%s5688_s2] sm:$0xff]  ;;  %287 = vmatpush.msra.mxu2 %v159_v3  ;;  %3548 = vmatpush.msra.mxu3 %v159_v3  ;;  %v132_v18 = vld [vmem:[%s5688_s2 + $0x38] sm:$0xff]  ;;  %v29_v19 = vld [vmem:[%s5687_s4 + $0x8] sm:$0xff]  ;;  %v99_v22 = vadd.f32 %v83_v14, %v51_v10 }
   0x6   :  { %245 = vmatpush.msrb.mxu1 %v162_v12  ;;  %v61_v20 = vld [vmem:[%s5686_s3 + $0x8] sm:$0xff]  ;;  %v45_v23 = vmul.f32 0.999, %v29_v19  ;;  %v62_v27 = vld [vmem:[%s5686_s3 + $0x10] sm:$0xff]  ;;  %v63_v33 = vld [vmem:[%s5686_s3 + $0x18] sm:$0xff] }
   0x7   :  { %v92_v13 = vadd.f32 %v76_v7, %v44_v6  ;;  %327 = vmatpush.msrb.mxu3 %v164_v15  ;;  %v77_v24 = vmul.f32 0.001, %v61_v20  ;;  %v3758_v29 = vadd.f32 %v132_v18, %v99_v22  ;;  %v78_v31 = vmul.f32 0.001, %v62_v27  ;;  %v126_v34 = vld [vmem:[%s5688_s2 + $0x8] sm:$0xff]  ;;  %v64_v37 = vld [vmem:[%s5686_s3 + $0x20] sm:$0xff] }
   0x8   :  { %246 = vmatpush.msrb.mxu1 %v158_v16  ;;  %v79_v35 = vmul.f32 0.001, %v63_v33  ;;  %v80_v40 = vmul.f32 0.001, %v64_v37  ;;  %v65_v43 = vld [vmem:[%s5686_s3 + $0x28] sm:$0xff]  ;;  %v127_v49 = vld [vmem:[%s5688_s2 + $0x10] sm:$0xff] }
   0x9   :  { %109 = vst.msk [vmem:[%s5689_s9] sm:$0xff] %vm108_vm0, %v92_v13  ;;  %v141_v21 = vadd.f32 %v125_v9, %v92_v13  ;;  %328 = vmatpush.msrb.mxu3 %v160_v17  ;;  %v93_v30 = vadd.f32 %v77_v24, %v45_v23  ;;  %3262 = vmatmul.msk.f32.vlgmr.msra.gmra.mxu1 %vm165_vm1, %v3758_v29  ;;  %v81_v47 = vmul.f32 0.001, %v65_v43  ;;  %v66_v51 = vld [vmem:[%s5686_s3 + $0x30] sm:$0xff]  ;;  %v128_v56 = vld [vmem:[%s5688_s2 + $0x18] sm:$0xff]  ;;  %v129_v58 = vld [vmem:[%s5688_s2 + $0x20] sm:$0xff] }
   0xa   :  { %3278 = vmatmul.msk.f32.vlgmr.msra.gmra.mxu3 %vm165_vm1, %v3758_v29  ;;  %v82_v53 = vmul.f32 0.001, %v66_v51  ;;  %v130_v60 = vld [vmem:[%s5688_s2 + $0x28] sm:$0xff]  ;;  %v131_v62 = vld [vmem:[%s5688_s2 + $0x30] sm:$0xff] }
   0xb   :  { %3255 = vmatmul.msk.f32.vlgmr.msra.gmra.mxu0 %vm165_vm1, %v141_v21  ;;  %3271 = vmatmul.msk.f32.vlgmr.msra.gmra.mxu2 %vm165_vm1, %v141_v21  ;;  %v142_v44 = vadd.f32 %v126_v34, %v93_v30 }
  0x10   :  { %v30_v25 = vld [vmem:[%s5687_s4 + $0x10] sm:$0xff]  ;;  %v31_v28 = vld [vmem:[%s5687_s4 + $0x18] sm:$0xff] }
  0x11   :  { %v46_v26 = vmul.f32 0.999, %v30_v25  ;;  %116 = vst.msk [vmem:[%s5689_s9 + $0x38] sm:$0xff] %vm108_vm0, %v99_v22  ;;  %v47_v32 = vmul.f32 0.999, %v31_v28  ;;  %3263 = vmatmul.msk.f32.vlgmr.msrb.gmra.mxu1 %vm165_vm1, %v141_v21 }
  0x12   :  { %3279 = vmatmul.msk.f32.vlgmr.msrb.gmra.mxu3 %vm165_vm1, %v141_v21 }
  0x13   :  { %v94_v38 = vadd.f32 %v78_v31, %v46_v26  ;;  %v95_v41 = vadd.f32 %v79_v35, %v47_v32  ;;  %3256 = vmatmul.msk.f32.gmra.mxu0 %vm165_vm1, %v142_v44  ;;  %3272 = vmatmul.msk.f32.gmra.mxu2 %vm165_vm1, %v142_v44 }
  0x15   :  { %v143_v54 = vadd.f32 %v127_v49, %v94_v38  ;;  %v144_v57 = vadd.f32 %v128_v56, %v95_v41 }
  0x18   :  { %v32_v36 = vld [vmem:[%s5687_s4 + $0x20] sm:$0xff] }
  0x19   :  { %110 = vst.msk [vmem:[%s5689_s9 + $0x8] sm:$0xff] %vm108_vm0, %v93_v30  ;;  %v48_v39 = vmul.f32 0.999, %v32_v36  ;;  %3264 = vmatmul.msk.f32.gmra.mxu1 %vm165_vm1, %v142_v44 }
  0x1a   :  { %3280 = vmatmul.msk.f32.gmra.mxu3 %vm165_vm1, %v142_v44 }
  0x1b   :  { %v96_v45 = vadd.f32 %v80_v40, %v48_v39  ;;  %3257 = vmatmul.msk.f32.gmra.mxu0 %vm165_vm1, %v143_v54  ;;  %3273 = vmatmul.msk.f32.gmra.mxu2 %vm165_vm1, %v143_v54 }
  0x1d   :  { %v145_v59 = vadd.f32 %v129_v58, %v96_v45 }
  0x20   :  { %v33_v42 = vld [vmem:[%s5687_s4 + $0x28] sm:$0xff] }
  0x21   :  { %111 = vst.msk [vmem:[%s5689_s9 + $0x10] sm:$0xff] %vm108_vm0, %v94_v38  ;;  %v49_v46 = vmul.f32 0.999, %v33_v42  ;;  %3265 = vmatmul.msk.f32.gmra.mxu1 %vm165_vm1, %v143_v54 }
  0x22   :  { %112 = vst.msk [vmem:[%s5689_s9 + $0x18] sm:$0xff] %vm108_vm0, %v95_v41  ;;  %3281 = vmatmul.msk.f32.gmra.mxu3 %vm165_vm1, %v143_v54 }
  0x23   :  { %113 = vst.msk [vmem:[%s5689_s9 + $0x20] sm:$0xff] %vm108_vm0, %v96_v45  ;;  %v97_v48 = vadd.f32 %v81_v47, %v49_v46  ;;  %3258 = vmatmul.msk.f32.gmra.mxu0 %vm165_vm1, %v144_v57  ;;  %3274 = vmatmul.msk.f32.gmra.mxu2 %vm165_vm1, %v144_v57 }
  0x25   :  { %114 = vst.msk [vmem:[%s5689_s9 + $0x28] sm:$0xff] %vm108_vm0, %v97_v48  ;;  %v146_v61 = vadd.f32 %v130_v60, %v97_v48 }
  0x29   :  { %3266 = vmatmul.msk.f32.gmra.mxu1 %vm165_vm1, %v144_v57 }
  0x2a   :  { %3282 = vmatmul.msk.f32.gmra.mxu3 %vm165_vm1, %v144_v57 }
  0x2b   :  { %3259 = vmatmul.msk.f32.gmra.mxu0 %vm165_vm1, %v145_v59  ;;  %3275 = vmatmul.msk.f32.gmra.mxu2 %vm165_vm1, %v145_v59 }
  0x2c   :  { %v34_v50 = vld [vmem:[%s5687_s4 + $0x30] sm:$0xff] }
  0x2d   :  { %v50_v52 = vmul.f32 0.999, %v34_v50 }
  0x2f   :  { %v98_v55 = vadd.f32 %v82_v53, %v50_v52 }
  0x31   :  { %115 = vst.msk [vmem:[%s5689_s9 + $0x30] sm:$0xff] %vm108_vm0, %v98_v55  ;;  %3267 = vmatmul.msk.f32.gmra.mxu1 %vm165_vm1, %v145_v59  ;;  %v147_v63 = vadd.f32 %v131_v62, %v98_v55 }
  0x32   :  { %3283 = vmatmul.msk.f32.gmra.mxu3 %vm165_vm1, %v145_v59 }
  0x33   :  { %3260 = vmatmul.msk.f32.gmra.mxu0 %vm165_vm1, %v146_v61  ;;  %3276 = vmatmul.msk.f32.gmra.mxu2 %vm165_vm1, %v146_v61 }
  0x39   :  { %3268 = vmatmul.msk.f32.gmra.mxu1 %vm165_vm1, %v146_v61 }
  0x3a   :  { %3284 = vmatmul.msk.f32.gmra.mxu3 %vm165_vm1, %v146_v61 }
  0x3b   :  { %3261 = vmatmul.msk.f32.gmra.mxu0 %vm165_vm1, %v147_v63  ;;  %3277 = vmatmul.msk.f32.gmra.mxu2 %vm165_vm1, %v147_v63 }
  0x41   :  { %3269 = vmatmul.msk.f32.gmra.mxu1 %vm165_vm1, %v147_v63 }
  0x42   :  { %3285 = vmatmul.msk.f32.gmra.mxu3 %vm165_vm1, %v147_v63 }
  0x49   :  { %3270 = vmatmul.msk.f32.gmra.mxu1 %vm165_vm1, %v3758_v29 }
  0x4a   :  { %3286 = vmatmul.msk.f32.gmra.mxu3 %vm165_vm1, %v3758_v29 }
  0x86   :  { %v228_v1 = vpop.f32.mrf.mxu1 }
  0x87   :  { %v3858_v2 = vmax.f32 %v228_v1, 0.0 }
  0x88   :  { %v207_v0 = vpop.f32.mrf.mxu0 }
  0x89   :  { %406 = vmatpush.msrb.mxu0 %v3858_v2  ;;  %v3864_v8 = vmax.f32 %v207_v0, 0.0 }
  0x8b   :  { %v1288_v13 = vmul.f32 %v3864_v8, %v3864_v8 }
  0x8d   :  { %v310_v4 = vpop.f32.mrf.mxu3 }
  0x8e   :  { %v289_v3 = vpop.f32.mrf.mxu2  ;;  %v3861_v6 = vmax.f32 %v310_v4, 0.0  ;;  %v248_v7 = vpop.f32.mrf.mxu1 }
  0x8f   :  { %v3876_v19 = vmax.f32 %v289_v3, 0.0  ;;  %v3880_v22 = vmax.f32 %v248_v7, 0.0 }
  0x90   :  { %v210_v5 = vpop.f32.mrf.mxu0  ;;  %464 = vmatpush.msrb.mxu2 %v3861_v6 }
  0x91   :  { %v3866_v9 = vmax.f32 %v210_v5, 0.0  ;;  %v1290_v29 = vmul.f32 %v3876_v19, %v3876_v19  ;;  %v1289_v33 = vmul.f32 %v3880_v22, %v3880_v22 }
  0x93   :  { %v1292_v14 = vmul.f32 %v3866_v9, %v3866_v9 }
  0x95   :  { %v330_v11 = vpop.f32.mrf.mxu3  ;;  %v1304_v17 = vadd.f32 %v1292_v14, %v1288_v13 }
  0x96   :  { %v292_v10 = vpop.f32.mrf.mxu2  ;;  %v251_v16 = vpop.f32.mrf.mxu1  ;;  %v3904_v42 = vmax.f32 %v330_v11, 0.0 }
  0x97   :  { %v3878_v20 = vmax.f32 %v292_v10, 0.0  ;;  %v3882_v23 = vmax.f32 %v251_v16, 0.0 }
  0x98   :  { %v213_v12 = vpop.f32.mrf.mxu0  ;;  %v1291_v58 = vmul.f32 %v3904_v42, %v3904_v42 }
  0x99   :  { %v3872_v15 = vmax.f32 %v213_v12, 0.0  ;;  %v1294_v30 = vmul.f32 %v3878_v20, %v3878_v20  ;;  %v1293_v34 = vmul.f32 %v3882_v23, %v3882_v23 }
  0x9b   :  { %v1296_v18 = vmul.f32 %v3872_v15, %v3872_v15  ;;  %v1322_v38 = vadd.f32 %v1294_v30, %v1290_v29  ;;  %v1313_v43 = vadd.f32 %v1293_v34, %v1289_v33 }
  0x9d   :  { %v333_v25 = vpop.f32.mrf.mxu3  ;;  %v1305_v27 = vadd.f32 %v1304_v17, %v1296_v18 }
  0x9e   :  { %v295_v21 = vpop.f32.mrf.mxu2  ;;  %v254_v31 = vpop.f32.mrf.mxu1  ;;  %v3906_v45 = vmax.f32 %v333_v25, 0.0 }
  0x9f   :  { %v3884_v24 = vmax.f32 %v295_v21, 0.0  ;;  %v3900_v37 = vmax.f32 %v254_v31, 0.0 }
  0xa0   :  { %v216_v26 = vpop.f32.mrf.mxu0  ;;  %v1295_v55 = vmul.f32 %v3906_v45, %v3906_v45 }
  0xa1   :  { %v3886_v28 = vmax.f32 %v216_v26, 0.0  ;;  %v1298_v35 = vmul.f32 %v3884_v24, %v3884_v24  ;;  %v1297_v49 = vmul.f32 %v3900_v37, %v3900_v37 }
  0xa2   :  { %v1331_v7 = vadd.f32 %v1295_v55, %v1291_v58 }
  0xa3   :  { %v1300_v32 = vmul.f32 %v3886_v28, %v3886_v28  ;;  %v1323_v44 = vadd.f32 %v1322_v38, %v1298_v35  ;;  %v1314_v60 = vadd.f32 %v1313_v43, %v1297_v49 }
  0xa5   :  { %v1306_v36 = vadd.f32 %v1305_v27, %v1300_v32  ;;  %v336_v46 = vpop.f32.mrf.mxu3 }
  0xa6   :  { %v298_v39 = vpop.f32.mrf.mxu2  ;;  %v3912_v51 = vmax.f32 %v336_v46, 0.0  ;;  %v257_v52 = vpop.f32.mrf.mxu1 }
  0xa7   :  { %v1307_v40 = vrot.slane %v1306_v36, 4  ;;  %v3902_v41 = vmax.f32 %v298_v39, 0.0  ;;  %v3916_v56 = vmax.f32 %v257_v52, 0.0 }
  0xa8   :  { %v219_v47 = vpop.f32.mrf.mxu0  ;;  %v772_v57 = vadd.f32 %v3912_v51, %v3884_v24  ;;  %v1299_v62 = vmul.f32 %v3912_v51, %v3912_v51 }
  0xa9   :  { %v1308_v48 = vadd.f32 %v1307_v40, %v1306_v36  ;;  %v1302_v50 = vmul.f32 %v3902_v41, %v3902_v41  ;;  %v3924_v63 = vmax.f32 %v219_v47, 0.0  ;;  %v1301_v0 = vmul.f32 %v3916_v56, %v3916_v56 }
  0xaa   :  { %773 = vadd.xlane.f32.xlu2 %v772_v57  ;;  %v3930_v3 = vadd.f32 %v3916_v56, %v3886_v28  ;;  %v1332_v17 = vadd.f32 %v1331_v7, %v1299_v62 }
  0xab   :  { %v1309_v53 = vrot.slane %v1308_v48, 2  ;;  %v1324_v54 = vadd.f32 %v1323_v44, %v1302_v50  ;;  %v1315_v10 = vadd.f32 %v1314_v60, %v1301_v0  ;;  %v1000_v18 = vmul.f32 %v3924_v63, %v3924_v63 }
  0xad   :  { %v1310_v59 = vadd.f32 %v1309_v53, %v1308_v48  ;;  %v1325_v61 = vrot.slane %v1324_v54, 4  ;;  %v339_v11 = vpop.f32.mrf.mxu3  ;;  %v1316_v21 = vrot.slane %v1315_v10, 4 }
  0xae   :  { %v301_v1 = vpop.f32.mrf.mxu2  ;;  %v3932_v16 = vmax.f32 %v339_v11, 0.0  ;;  %v260_v26 = vpop.f32.mrf.mxu1 }
  0xaf   :  { %v1311_v4 = vrot.slane %v1310_v59, 1  ;;  %v1326_v5 = vadd.f32 %v1325_v61, %v1324_v54  ;;  %v3940_v30 = vmax.f32 %v301_v1, 0.0  ;;  %v1317_v32 = vadd.f32 %v1316_v21, %v1315_v10 }
  0xb0   :  { %v222_v12 = vpop.f32.mrf.mxu0  ;;  %v1303_v31 = vmul.f32 %v3932_v16, %v3932_v16  ;;  %v775_v34 = vadd.f32 %v3932_v16, %v3902_v41  ;;  %v3953_v49 = vmax.f32 %v260_v26, 0.0 }
  0xb1   :  { %v1312_v13 = vadd.f32 %v1311_v4, %v1310_v59  ;;  %v1327_v14 = vrot.slane %v1326_v5, 2  ;;  %v3936_v25 = vmax.f32 %v222_v12, 0.0  ;;  %v1318_v38 = vrot.slane %v1317_v32, 2 }
  0xb2   :  { %v1333_v36 = vadd.f32 %v1332_v17, %v1303_v31  ;;  %776 = vadd.xlane.f32.xlu2 %v775_v34  ;;  %v1002_v44 = vmul.f32 %v3940_v30, %v3940_v30 }
  0xb3   :  { %v3938_v27 = vmax.f32 %v1312_v13, 1e-24  ;;  %v1328_v29 = vadd.f32 %v1327_v14, %v1326_v5  ;;  %v1004_v33 = vmul.f32 %v3936_v25, %v3936_v25  ;;  %v1319_v48 = vadd.f32 %v1318_v38, %v1317_v32 }
  0xb4   :  { %v1334_v46 = vrot.slane %v1333_v36, 4  ;;  %v1001_v5 = vmul.f32 %v3953_v49, %v3953_v49  ;;  %v1012_v13 = vmul.f32 %v3858_v2, %v3858_v2  ;;  %v1014_v14 = vmul.f32 %v3861_v6, %v3861_v6 }
  0xb5   :  { %3575 = vrsqrt.f32 %v3938_v27  ;;  %v1329_v35 = vrot.slane %v1328_v29, 1  ;;  %v1016_v39 = vadd.f32 %v1004_v33, %v1000_v18  ;;  %v342_v50 = vpop.f32.mrf.mxu3  ;;  %v1320_v58 = vrot.slane %v1319_v48, 1 }
  0xb6   :  { %v304_v40 = vpop.f32.mrf.mxu2  ;;  %v1335_v54 = vadd.f32 %v1334_v46, %v1333_v36  ;;  %v3959_v57 = vmax.f32 %v342_v50, 0.0  ;;  %v263_v60 = vpop.f32.mrf.mxu1  ;;  %vm1350_vm2 = vweird.f32 %v3938_v27 }
  0xb7   :  { %v1330_v43 = vadd.f32 %v1329_v35, %v1328_v29  ;;  %v3951_v47 = vmax.f32 %v304_v40, 0.0  ;;  %v1321_v4 = vadd.f32 %v1320_v58, %v1319_v48  ;;  %v3970_v11 = vmax.f32 %v263_v60, 0.0 }
  0xb8   :  { %v225_v52 = vpop.f32.mrf.mxu0  ;;  %v1336_v62 = vrot.slane %v1335_v54, 2  ;;  %v778_v12 = vadd.f32 %v3959_v57, %v3940_v30  ;;  %v1003_v46 = vmul.f32 %v3959_v57, %v3959_v57 }
  0xb9   :  { %v3955_v53 = vmax.f32 %v1330_v43, 1e-24  ;;  %v1006_v55 = vmul.f32 %v3951_v47, %v3951_v47  ;;  %v3961_v59 = vmax.f32 %v225_v52, 0.0  ;;  %v3978_v18 = vmax.f32 %v1321_v4, 1e-24 }
  0xba   :  { %v1337_v7 = vadd.f32 %v1336_v62, %v1335_v54  ;;  %v1005_v31 = vmul.f32 %v3970_v11, %v3970_v11  ;;  %779 = vadd.xlane.f32.xlu1 %v778_v12 }
  0xbb   :  { %v3576_v61 = vpop.eup %3575  ;;  %3577 = vrsqrt.f32 %v3955_v53  ;;  %v1034_v0 = vadd.f32 %v1006_v55, %v1002_v44  ;;  %407 = vmatpush.msrb.mxu0 %v3961_v59  ;;  %v1008_v10 = vmul.f32 %v3961_v59, %v3961_v59  ;;  %vm1370_vm6 = vweird.f32 %v3955_v53 }
  0xbc   :  { %v1345_v1 = vmul.f32 %v3576_v61, %v3938_v27  ;;  %v1338_v26 = vrot.slane %v1337_v7, 1  ;;  %vm1351_vm3 = vweird.f32 %v3576_v61  ;;  %3579 = vrsqrt.f32 %v3978_v18 }
  0xbd   :  { %408 = vmatpush.msrb.mxu0 %v3936_v25  ;;  %v1017_v29 = vadd.f32 %v1016_v39, %v1008_v10  ;;  %v345_v34 = vpop.f32.mrf.mxu3  ;;  %v1025_v39 = vadd.f32 %v1005_v31, %v1001_v5  ;;  %vm4003_vm4 = vmor %vm1350_vm2, %vm1351_vm3  ;;  %vm1360_vm9 = vweird.f32 %v3978_v18 }
  0xbe   :  { %v1346_v17 = vmul.f32 %v3576_v61, %v1345_v1  ;;  %v307_v21 = vpop.f32.mrf.mxu2  ;;  %v1339_v36 = vadd.f32 %v1338_v26, %v1337_v7  ;;  %v3997_v48 = vmax.f32 %v345_v34, 0.0  ;;  %v266_v50 = vpop.f32.mrf.mxu1 }
  0xbf   :  { %v3983_v32 = vmax.f32 %v307_v21, 0.0  ;;  %409 = vmatpush.msrb.mxu0 %v3924_v63  ;;  %v1018_v38 = vadd.f32 %v1017_v29, %v1012_v13  ;;  %v4009_v60 = vmax.f32 %v266_v50, 0.0 }
  0xc0   :  { %v1347_v33 = vmul.f32 0.5, %v1346_v17  ;;  %v4007_v54 = vmax.f32 %v1339_v36, 1e-24  ;;  %v1007_v4 = vmul.f32 %v3997_v48, %v3997_v48  ;;  %v781_v27 = vadd.f32 %v3997_v48, %v3951_v47 }
  0xc1   :  { %v3988_v35 = vpop.eup %3577  ;;  %v1010_v40 = vmul.f32 %v3983_v32, %v3983_v32  ;;  %465 = vmatpush.msrb.mxu2 %v3983_v32  ;;  %410 = vmatpush.msrb.mxu0 %v3886_v28  ;;  %v1019_v55 = vrot.slane %v1018_v38, 4  ;;  %v1009_v21 = vmul.f32 %v4009_v60, %v4009_v60 }
  0xc2   :  { %v1348_v43 = vsub.f32 1.5, %v1347_v33  ;;  %v1365_v44 = vmul.f32 %v3988_v35, %v3955_v53  ;;  %3581 = vrsqrt.f32 %v4007_v54  ;;  %v4022_v10 = vpop.eup %3579  ;;  %v1043_v17 = vadd.f32 %v1007_v4, %v1003_v46  ;;  %782 = vadd.xlane.f32.xlu1 %v781_v27 }
  0xc3   :  { %v1035_v58 = vadd.f32 %v1034_v0, %v1010_v40  ;;  %466 = vmatpush.msrb.mxu2 %v3951_v47  ;;  %411 = vmatpush.msrb.mxu0 %v3872_v15  ;;  %v1020_v5 = vadd.f32 %v1019_v55, %v1018_v38  ;;  %v769_v0 = vadd.f32 %v3906_v45, %v3878_v20  ;;  %vm1371_vm5 = vweird.f32 %v3988_v35 }
  0xc4   :  { %v1349_v62 = vmul.f32 %v3576_v61, %v1348_v43  ;;  %v1366_v1 = vmul.f32 %v3988_v35, %v1365_v44  ;;  %v1026_v40 = vadd.f32 %v1025_v39, %v1009_v21  ;;  %v540_v43 = vadd.f32 %v4009_v60, %v3961_v59  ;;  %vm1372_vm7 = vmor %vm1370_vm6, %vm1371_vm5 }
  0xc5   :  { %v1036_v7 = vadd.f32 %v1035_v58, %v1014_v14  ;;  %467 = vmatpush.msrb.mxu2 %v3940_v30  ;;  %412 = vmatpush.msrb.mxu0 %v3866_v9  ;;  %v1021_v34 = vrot.slane %v1020_v5, 2  ;;  %v348_v36 = vpop.f32.mrf.mxu3  ;;  %vm1361_vm8 = vweird.f32 %v4022_v10  ;;  %vm1380_vm12 = vweird.f32 %v4007_v54 }
  0xc6   :  { %v1353_v12 = vsel %vm4003_vm4, %v3576_v61, %v1349_v62  ;;  %v1367_v13 = vmul.f32 0.5, %v1366_v1  ;;  %v1355_v61 = vmul.f32 %v4022_v10, %v3978_v18  ;;  %v4040_v44 = vmax.f32 %v348_v36, 0.0  ;;  %v269_v52 = vpop.f32.mrf.mxu1  ;;  %541 = vadd.xlane.f32.xlu2 %v540_v43  ;;  %vm1362_vm10 = vmor %vm1360_vm9, %vm1361_vm8 }
  0xc7   :  { %v1384_v26 = vmul.f32 %v1353_v12, %v3864_v8  ;;  %v1388_v14 = vmul.f32 %v1353_v12, %v3866_v9  ;;  %v1392_v29 = vmul.f32 %v1353_v12, %v3872_v15  ;;  %v1396_v31 = vmul.f32 %v1353_v12, %v3886_v28  ;;  %413 = vmatpush.msrb.mxu0 %v3864_v8 }
  0xc8   :  { %v1368_v33 = vsub.f32 1.5, %v1367_v13  ;;  %468 = vmatpush.msrb.mxu2 %v3902_v41  ;;  %v1037_v38 = vrot.slane %v1036_v7, 4  ;;  %v1356_v46 = vmul.f32 %v4022_v10, %v1355_v61  ;;  %v1022_v50 = vadd.f32 %v1021_v34, %v1020_v5  ;;  %v4046_v55 = vpop.eup %3581 }
  0xc9   :  { %1400 = vst [vmem:[#allocation2] sm:$0xff] %v1384_v26  ;;  %v1011_v58 = vmul.f32 %v4040_v44, %v4040_v44  ;;  %v4052_v62 = vmax.f32 %v269_v52, 0.0  ;;  %v784_v53 = vadd.f32 %v4040_v44, %v3983_v32  ;;  %v1375_v27 = vmul.f32 %v4046_v55, %v4007_v54 }
  0xca   :  { %1404 = vst [vmem:[#allocation2 + $0x20] sm:$0xff] %v1388_v14  ;;  %v1369_v28 = vmul.f32 %v3988_v35, %v1368_v33  ;;  %469 = vmatpush.msrb.mxu2 %v3884_v24  ;;  %v1038_v39 = vadd.f32 %v1037_v38, %v1036_v7  ;;  %v1357_v4 = vmul.f32 0.5, %v1356_v46  ;;  %v1023_v26 = vrot.slane %v1022_v50, 1  ;;  %770 = vadd.xlane.f32.xlu1 %v769_v0 }
  0xcb   :  { %1408 = vst [vmem:[#allocation2 + $0x40] sm:$0xff] %v1392_v29  ;;  %785 = vadd.xlane.f32.xlu0 %v784_v53  ;;  %435 = vmatpush.msra.mxu1 %v4052_v62  ;;  %v1044_v29 = vadd.f32 %v1043_v17, %v1011_v58  ;;  %vm1381_vm11 = vweird.f32 %v4046_v55  ;;  %v534_v17 = vadd.f32 %v3953_v49, %v3924_v63 }
  0xcc   :  { %1412 = vst [vmem:[#allocation2 + $0x60] sm:$0xff] %v1396_v31  ;;  %v1373_v1 = vsel %vm1372_vm7, %v3988_v35, %v1369_v28  ;;  %470 = vmatpush.msrb.mxu2 %v3878_v20  ;;  %v1358_v21 = vsub.f32 1.5, %v1357_v4  ;;  %v1376_v35 = vmul.f32 %v4046_v55, %v1375_v27  ;;  %v1039_v14 = vrot.slane %v1038_v39, 2  ;;  %vm1382_vm13 = vmor %vm1380_vm12, %vm1381_vm11 }
  0xcd   :  { %v1386_v5 = vmul.f32 %v1373_v1, %v3876_v19  ;;  %v1390_v7 = vmul.f32 %v1373_v1, %v3878_v20  ;;  %v1394_v12 = vmul.f32 %v1373_v1, %v3884_v24  ;;  %v1398_v13 = vmul.f32 %v1373_v1, %v3902_v41  ;;  %436 = vmatpush.msra.mxu1 %v4009_v60  ;;  %v351_v61 = vpop.f32.mrf.mxu3 }
  0xce   :  { %471 = vmatpush.msrb.mxu2 %v3876_v19  ;;  %v1013_v20 = vmul.f32 %v4052_v62, %v4052_v62  ;;  %v1359_v24 = vmul.f32 %v4022_v10, %v1358_v21  ;;  %v1377_v41 = vmul.f32 0.5, %v1376_v35  ;;  %v1024_v31 = vadd.f32 %v1023_v26, %v1022_v50  ;;  %535 = vadd.xlane.f32.xlu2 %v534_v17 }
  0xcf   :  { %1402 = vst [vmem:[#allocation2 + $0x10] sm:$0xff] %v1386_v5  ;;  %v1040_v33 = vadd.f32 %v1039_v14, %v1038_v39  ;;  %v4078_v0 = vmax.f32 %v351_v61, 0.0  ;;  %437 = vmatpush.msra.mxu1 %v3970_v11  ;;  %v537_v4 = vadd.f32 %v3970_v11, %v3936_v25  ;;  %v543_v17 = vadd.f32 %v4052_v62, %v3858_v2 }
  0xd0   :  { %1406 = vst [vmem:[#allocation2 + $0x30] sm:$0xff] %v1390_v7  ;;  %v1027_v18 = vadd.f32 %v1026_v40, %v1013_v20  ;;  %v1363_v34 = vsel %vm1362_vm10, %v4022_v10, %v1359_v24  ;;  %v1378_v36 = vsub.f32 1.5, %v1377_v41  ;;  %v4081_v38 = vmax.f32 %v1024_v31, 1e-24  ;;  %v36_v24 = vld [vmem:[%s5687_s4 + $0x40] sm:$0xff] }
  0xd1   :  { %1410 = vst [vmem:[#allocation2 + $0x50] sm:$0xff] %v1394_v12  ;;  %v1041_v43 = vrot.slane %v1040_v33, 1  ;;  %v1385_v28 = vmul.f32 %v1363_v34, %v3880_v22  ;;  %v1389_v46 = vmul.f32 %v1363_v34, %v3882_v23  ;;  %v1393_v40 = vmul.f32 %v1363_v34, %v3900_v37  ;;  %438 = vmatpush.msra.mxu1 %v3953_v49 }
  0xd2   :  { %1414 = vst [vmem:[#allocation2 + $0x70] sm:$0xff] %v1398_v13  ;;  %v1397_v50 = vmul.f32 %v1363_v34, %v3916_v56  ;;  %v1379_v52 = vmul.f32 %v4046_v55, %v1378_v36  ;;  %3583 = vrsqrt.f32 %v4081_v38  ;;  %493 = vmatpush.msra.mxu3 %v4078_v0  ;;  %v1028_v39 = vrot.slane %v1027_v18, 4  ;;  %538 = vadd.xlane.f32.xlu1 %v537_v4  ;;  %v133_v34 = vld [vmem:[%s5688_s2 + $0x40] sm:$0xff] }
  0xd3   :  { %v1042_v10 = vadd.f32 %v1041_v43, %v1040_v33  ;;  %1401 = vst [vmem:[#allocation2 + $0x8] sm:$0xff] %v1385_v28  ;;  %v1015_v54 = vmul.f32 %v4078_v0, %v4078_v0  ;;  %v787_v58 = vadd.f32 %v4078_v0, %v3861_v6  ;;  %439 = vmatpush.msra.mxu1 %v3916_v56  ;;  %v52_v31 = vmul.f32 0.999, %v36_v24 }
  0xd4   :  { %1405 = vst [vmem:[#allocation2 + $0x28] sm:$0xff] %v1389_v46  ;;  %v1383_v53 = vsel %vm1382_vm13, %v4046_v55, %v1379_v52  ;;  %494 = vmatpush.msra.mxu3 %v4040_v44  ;;  %v1029_v55 = vadd.f32 %v1028_v39, %v1027_v18  ;;  %v525_v56 = vadd.f32 %v3882_v23, %v3866_v9  ;;  %v68_v9 = vld [vmem:[%s5686_s3 + $0x40] sm:$0xff]  ;;  %vm1062_vm15 = vweird.f32 %v4081_v38 }
  0xd5   :  { %v4100_v1 = vmax.f32 %v1042_v10, 1e-24  ;;  %1409 = vst [vmem:[#allocation2 + $0x48] sm:$0xff] %v1393_v40  ;;  %v1387_v27 = vmul.f32 %v1383_v53, %v3904_v42  ;;  %v1391_v5 = vmul.f32 %v1383_v53, %v3906_v45  ;;  %v1395_v7 = vmul.f32 %v1383_v53, %v3912_v51  ;;  %788 = vadd.xlane.f32.xlu0 %v787_v58 }
  0xd6   :  { %v1399_v12 = vmul.f32 %v1383_v53, %v3932_v16  ;;  %1413 = vst [vmem:[#allocation2 + $0x68] sm:$0xff] %v1397_v50  ;;  %v1045_v13 = vadd.f32 %v1044_v29, %v1015_v54  ;;  %440 = vmatpush.msra.mxu1 %v3900_v37  ;;  %495 = vmatpush.msra.mxu3 %v3997_v48  ;;  %v1030_v35 = vrot.slane %v1029_v55, 2  ;;  %v84_v33 = vmul.f32 0.001, %v68_v9 }
  0xd7   :  { %3585 = vrsqrt.f32 %v4100_v1  ;;  %1403 = vst [vmem:[#allocation2 + $0x18] sm:$0xff] %v1387_v27  ;;  %526 = vadd.xlane.f32.xlu2 %v525_v56  ;;  %v528_v28 = vadd.f32 %v3900_v37, %v3872_v15  ;;  %vm1082_vm4 = vweird.f32 %v4100_v1 }
  0xd8   :  { %v3584_v21 = vpop.eup %3583  ;;  %1407 = vst [vmem:[#allocation2 + $0x38] sm:$0xff] %v1391_v5  ;;  %v1046_v26 = vrot.slane %v1045_v13, 4  ;;  %441 = vmatpush.msra.mxu1 %v3882_v23  ;;  %v1031_v29 = vadd.f32 %v1030_v35, %v1029_v55  ;;  %496 = vmatpush.msra.mxu3 %v3959_v57  ;;  %v100_v46 = vadd.f32 %v84_v33, %v52_v31 }
  0xd9   :  { %1411 = vst [vmem:[#allocation2 + $0x58] sm:$0xff] %v1395_v7  ;;  %v1057_v14 = vmul.f32 %v3584_v21, %v4081_v38  ;;  %vm1063_vm14 = vweird.f32 %v3584_v21 }
  0xda   :  { %1415 = vst [vmem:[#allocation2 + $0x78] sm:$0xff] %v1399_v12  ;;  %v1047_v20 = vadd.f32 %v1046_v26, %v1045_v13  ;;  %442 = vmatpush.msra.mxu1 %v3880_v22  ;;  %v1032_v23 = vrot.slane %v1031_v29, 1  ;;  %497 = vmatpush.msra.mxu3 %v3932_v16  ;;  %v149_v10 = vadd.f32 %v133_v34, %v100_v46  ;;  %vm1064_vm2 = vmor %vm1062_vm15, %vm1063_vm14 }
  0xdb   :  { %v1058_v41 = vmul.f32 %v3584_v21, %v1057_v14  ;;  %529 = vadd.xlane.f32.xlu1 %v528_v28  ;;  %117 = vst.msk [vmem:[%s5689_s9 + $0x40] sm:$0xff] %vm108_vm0, %v100_v46  ;;  %v71_v28 = vld [vmem:[%s5686_s3 + $0x58] sm:$0xff] }
  0xdc   :  { %v1048_v18 = vrot.slane %v1047_v20, 2  ;;  %v1033_v40 = vadd.f32 %v1032_v23, %v1031_v29  ;;  %498 = vmatpush.msra.mxu3 %v3912_v51  ;;  %3295 = vmatmul.msk.f32.vlgmr.msrb.gmra.mxu2 %vm108_vm0, %v149_v10  ;;  %v522_v29 = vadd.f32 %v3880_v22, %v3864_v8  ;;  %v134_v8 = vld [vmem:[%s5688_s2 + $0x48] sm:$0xff] }
  0xdd   :  { %v3586_v61 = vpop.eup %3585  ;;  %v1059_v36 = vmul.f32 0.5, %v1058_v41  ;;  %544 = vadd.xlane.f32.xlu0 %v543_v17  ;;  %3287 = vmatmul.msk.f32.vlgmr.msrb.gmra.mxu0 %vm108_vm0, %v149_v10 }
  0xde   :  { %v1077_v43 = vmul.f32 %v3586_v61, %v4100_v1  ;;  %v1049_v50 = vadd.f32 %v1048_v18, %v1047_v20  ;;  %v1053_v39 = vmax.f32 %v1033_v40, 1e-24  ;;  %499 = vmatpush.msra.mxu3 %v3906_v45  ;;  %3291 = vmatmul.msk.f32.vlgmr.msra.gmra.mxu1 %vm108_vm0, %v149_v10  ;;  %vm1083_vm3 = vweird.f32 %v3586_v61 }
  0xdf   :  { %v1060_v16 = vsub.f32 1.5, %v1059_v36  ;;  %v766_v45 = vadd.f32 %v3904_v42, %v3876_v19  ;;  %vm1084_vm5 = vmor %vm1082_vm4, %vm1083_vm3  ;;  %v87_v40 = vmul.f32 0.001, %v71_v28 }
  0xe0   :  { %v1078_v52 = vmul.f32 %v3586_v61, %v1077_v43  ;;  %v1050_v54 = vrot.slane %v1049_v50, 1  ;;  %3587 = vrsqrt.f32 %v1053_v39  ;;  %500 = vmatpush.msra.mxu3 %v3904_v42  ;;  %vm1072_vm7 = vweird.f32 %v1053_v39 }
  0xe1   :  { %v1061_v15 = vmul.f32 %v3584_v21, %v1060_v16  ;;  %3299 = vmatmul.msk.f32.vlgmr.msra.gmra.mxu3 %vm108_vm0, %v149_v10  ;;  %v136_v16 = vld [vmem:[%s5688_s2 + $0x58] sm:$0xff]  ;;  %v519_v10 = vld [vmem:[%s5690_s5 + $0x10] sm:$0xff] }
  0xe2   :  { %v1079_v37 = vmul.f32 0.5, %v1078_v52  ;;  %v1051_v51 = vadd.f32 %v1050_v54, %v1049_v50 }
  0xe3   :  { %v1065_v58 = vsel %vm1064_vm2, %v3584_v21, %v1061_v15 }
  0xe4   :  { %v1080_v53 = vsub.f32 1.5, %v1079_v37  ;;  %v4149_v38 = vmul.f32 %v1065_v58, %v3924_v63  ;;  %v4152_v4 = vmul.f32 %v1065_v58, %v3936_v25  ;;  %v4155_v27 = vmul.f32 %v1065_v58, %v3961_v59  ;;  %v72_v37 = vld [vmem:[%s5686_s3 + $0x60] sm:$0xff] }
  0xe5   :  { %v4158_v5 = vmul.f32 %v1065_v58, %v3858_v2  ;;  %v1055_v12 = vmax.f32 %v1051_v51, 1e-24  ;;  %767 = vadd.xlane.f32.xlu0 %v766_v45 }
  0xe6   :  { %5697 = vst [vmem:[#allocation5_spill] sm:$0xff] %v4152_v4  ;;  %v1081_v7 = vmul.f32 %v3586_v61, %v1080_v53  ;;  %v3588_v42 = vpop.eup %3587  ;;  %v88_v53 = vmul.f32 0.001, %v72_v37 }
  0xe7   :  { %5698 = vst [vmem:[#allocation6_spill] sm:$0xff] %v4155_v27  ;;  %3589 = vrsqrt.f32 %v1055_v12  ;;  %v1067_v55 = vmul.f32 %v3588_v42, %v1053_v39  ;;  %vm1073_vm6 = vweird.f32 %v3588_v42  ;;  %vm1092_vm10 = vweird.f32 %v1055_v12  ;;  %v520_v39 = vld [vmem:[%s5690_s5 + $0x18] sm:$0xff] }
  0xe8   :  { %5699 = vst [vmem:[#allocation7_spill] sm:$0xff] %v4158_v5  ;;  %v1085_v19 = vsel %vm1084_vm5, %v3586_v61, %v1081_v7  ;;  %vm1074_vm8 = vmor %vm1072_vm7, %vm1073_vm6 }
  0xe9   :  { %v4162_v63 = vmul.f32 %v1085_v19, %v3940_v30  ;;  %v4165_v25 = vmul.f32 %v1085_v19, %v3951_v47  ;;  %v4168_v59 = vmul.f32 %v1085_v19, %v3983_v32  ;;  %v4171_v2 = vmul.f32 %v1085_v19, %v3861_v6  ;;  %v37_v32 = vld [vmem:[%s5687_s4 + $0x48] sm:$0xff] }
  0xea   :  { %v1068_v1 = vmul.f32 %v3588_v42, %v1067_v55  ;;  %v69_v6 = vld [vmem:[%s5686_s3 + $0x48] sm:$0xff] }
  0xeb   :  { %v85_v20 = vmul.f32 0.001, %v69_v6 }
  0xec   :  { %v1069_v56 = vmul.f32 0.5, %v1068_v1 }
  0xed   :  { %v3590_v13 = vpop.eup %3589  ;;  %532 = vadd.xlane.f32.xlu0 %v3930_v3  ;;  %v53_v3 = vmul.f32 0.999, %v37_v32 }
  0xee   :  { %v1087_v21 = vmul.f32 %v3590_v13, %v1055_v12  ;;  %v1070_v35 = vsub.f32 1.5, %v1069_v56  ;;  %vm1093_vm9 = vweird.f32 %v3590_v13 }
  0xef   :  { %v101_v61 = vadd.f32 %v85_v20, %v53_v3  ;;  %vm1094_vm11 = vmor %vm1092_vm10, %vm1093_vm9 }
  0xf0   :  { %v1088_v30 = vmul.f32 %v3590_v13, %v1087_v21  ;;  %v1071_v26 = vmul.f32 %v3588_v42, %v1070_v35  ;;  %v74_v35 = vld [vmem:[%s5686_s3 + $0x70] sm:$0xff] }
  0xf1   :  { %118 = vst.msk [vmem:[%s5689_s9 + $0x48] sm:$0xff] %vm108_vm0, %v101_v61  ;;  %v90_v32 = vmul.f32 0.001, %v74_v35 }
  0xf2   :  { %v1089_v47 = vmul.f32 0.5, %v1088_v30  ;;  %v1075_v14 = vsel %vm1074_vm8, %v3588_v42, %v1071_v26  ;;  %v73_v42 = vld [vmem:[%s5686_s3 + $0x68] sm:$0xff] }
  0xf3   :  { %v4183_v24 = vmul.f32 %v1075_v14, %v3953_v49  ;;  %v4186_v9 = vmul.f32 %v1075_v14, %v3970_v11  ;;  %v4189_v41 = vmul.f32 %v1075_v14, %v4009_v60  ;;  %v4192_v31 = vmul.f32 %v1075_v14, %v4052_v62 }
  0xf4   :  { %v1090_v33 = vsub.f32 1.5, %v1089_v47  ;;  %v150_v49 = vadd.f32 %v134_v8, %v101_v61  ;;  %v89_v1 = vmul.f32 0.001, %v73_v42  ;;  %v75_v8 = vld [vmem:[%s5686_s3 + $0x78] sm:$0xff] }
  0xf5   :  { %5700 = vst [vmem:[#allocation8_spill] sm:$0xff] %v4183_v24  ;;  %523 = vadd.xlane.f32.xlu0 %v522_v29  ;;  %v140_v42 = vld [vmem:[%s5688_s2 + $0x78] sm:$0xff] }
  0xf6   :  { %5701 = vst [vmem:[#allocation9_spill] sm:$0xff] %v4186_v9  ;;  %v1091_v22 = vmul.f32 %v3590_v13, %v1090_v33  ;;  %3296 = vmatmul.msk.f32.gmra.mxu2 %vm108_vm0, %v150_v49  ;;  %3288 = vmatmul.msk.f32.gmra.mxu0 %vm108_vm0, %v150_v49 }
  0xf7   :  { %3300 = vmatmul.msk.f32.gmra.mxu3 %vm108_vm0, %v150_v49  ;;  %3292 = vmatmul.msk.f32.gmra.mxu1 %vm108_vm0, %v150_v49 }
  0xf8   :  { %v1095_v11 = vsel %vm1094_vm11, %v3590_v13, %v1091_v22  ;;  %v38_v17 = vld [vmem:[%s5687_s4 + $0x50] sm:$0xff] }
  0xf9   :  { %v4204_v60 = vmul.f32 %v1095_v11, %v3959_v57  ;;  %v4207_v62 = vmul.f32 %v1095_v11, %v3997_v48  ;;  %v4210_v23 = vmul.f32 %v1095_v11, %v4040_v44  ;;  %v4213_v18 = vmul.f32 %v1095_v11, %v4078_v0  ;;  %v70_v57 = vld [vmem:[%s5686_s3 + $0x50] sm:$0xff] }
  0xfa   :  { %v54_v48 = vmul.f32 0.999, %v38_v17  ;;  %v86_v34 = vmul.f32 0.001, %v70_v57  ;;  %v135_v44 = vld [vmem:[%s5688_s2 + $0x50] sm:$0xff] }
  0xfb   :  { %v91_v11 = vmul.f32 0.001, %v75_v8 }
  0xfc   :  { %v102_v36 = vadd.f32 %v86_v34, %v54_v48 }
  0xfe   :  { %119 = vst.msk [vmem:[%s5689_s9 + $0x50] sm:$0xff] %vm108_vm0, %v102_v36  ;;  %v151_v0 = vadd.f32 %v135_v44, %v102_v36 }
 0x100   :  { %3297 = vmatmul.msk.f32.gmra.mxu2 %vm108_vm0, %v151_v0  ;;  %3289 = vmatmul.msk.f32.gmra.mxu0 %vm108_vm0, %v151_v0 }
 0x101   :  { %3301 = vmatmul.msk.f32.gmra.mxu3 %vm108_vm0, %v151_v0  ;;  %3293 = vmatmul.msk.f32.gmra.mxu1 %vm108_vm0, %v151_v0 }
 0x105   :  { %v39_v43 = vld [vmem:[%s5687_s4 + $0x58] sm:$0xff] }
 0x106   :  { %v55_v46 = vmul.f32 0.999, %v39_v43 }
 0x108   :  { %v103_v50 = vadd.f32 %v87_v40, %v55_v46  ;;  %v137_v46 = vld [vmem:[%s5688_s2 + $0x60] sm:$0xff] }
 0x10a   :  { %120 = vst.msk [vmem:[%s5689_s9 + $0x58] sm:$0xff] %vm108_vm0, %v103_v50  ;;  %v152_v52 = vadd.f32 %v136_v16, %v103_v50 }
 0x10c   :  { %3298 = vmatmul.msk.f32.gmra.mxu2 %vm108_vm0, %v152_v52  ;;  %3290 = vmatmul.msk.f32.gmra.mxu0 %vm108_vm0, %v152_v52 }
 0x10d   :  { %3302 = vmatmul.msk.f32.gmra.mxu3 %vm108_vm0, %v152_v52  ;;  %3294 = vmatmul.msk.f32.gmra.mxu1 %vm108_vm0, %v152_v52 }
 0x111   :  { %v40_v15 = vld [vmem:[%s5687_s4 + $0x60] sm:$0xff] }
 0x112   :  { %v56_v58 = vmul.f32 0.999, %v40_v15 }
 0x114   :  { %v104_v45 = vadd.f32 %v88_v53, %v56_v58 }
 0x116   :  { %121 = vst.msk [vmem:[%s5689_s9 + $0x60] sm:$0xff] %vm108_vm0, %v104_v45  ;;  %v153_v16 = vadd.f32 %v137_v46, %v104_v45  ;;  %v139_v45 = vld [vmem:[%s5688_s2 + $0x70] sm:$0xff] }
 0x11d   :  { %v774_v51 = vpop.xlane.xlu2 %773  ;;  %v41_v19 = vld [vmem:[%s5687_s4 + $0x68] sm:$0xff] }
 0x11e   :  { %1424 = vxpose.xlu0.b32.start [1/2] (short) (narrow) %v519_v10, 64  ;;  %v57_v55 = vmul.f32 0.999, %v41_v19  ;;  %v792_v36 = vmul.f32 0.00390625, %v774_v51  ;;  %v138_v10 = vld [vmem:[%s5688_s2 + $0x68] sm:$0xff] }
 0x120   :  { %v105_v56 = vadd.f32 %v89_v1, %v57_v55 }
 0x122   :  { %122 = vst.msk [vmem:[%s5689_s9 + $0x68] sm:$0xff] %vm108_vm0, %v105_v56  ;;  %v154_v15 = vadd.f32 %v138_v10, %v105_v56 }
 0x125   :  { %v777_v13 = vpop.xlane.xlu2 %776 }
 0x126   :  { %1425 = vxpose.xlu0.b32.end [2/2] (short) (narrow) %v520_v39, 64  ;;  %v793_v17 = vmul.f32 0.00390625, %v777_v13 }
 0x129   :  { %v42_v21 = vld [vmem:[%s5687_s4 + $0x70] sm:$0xff] }
 0x12a   :  { %v58_v47 = vmul.f32 0.999, %v42_v21 }
 0x12c   :  { %v106_v29 = vadd.f32 %v90_v32, %v58_v47 }
 0x12d   :  { %v780_v54 = vpop.xlane.xlu1 %779 }
 0x12e   :  { %123 = vst.msk [vmem:[%s5689_s9 + $0x70] sm:$0xff] %vm108_vm0, %v106_v29  ;;  %v794_v33 = vmul.f32 0.00390625, %v780_v54 }
 0x135   :  { %v783_v7 = vpop.xlane.xlu1 %782  ;;  %v43_v61 = vld [vmem:[%s5687_s4 + $0x78] sm:$0xff] }
 0x136   :  { %v795_v20 = vmul.f32 0.00390625, %v783_v7  ;;  %v59_v49 = vmul.f32 0.999, %v43_v61 }
 0x138   :  { %v107_v34 = vadd.f32 %v91_v11, %v59_v49 }
 0x139   :  { %v542_v14 = vpop.xlane.xlu2 %541 }
 0x13a   :  { %v552_v44 = vmul.f32 0.00390625, %v542_v14  ;;  %124 = vst.msk [vmem:[%s5689_s9 + $0x78] sm:$0xff] %vm108_vm0, %v107_v34  ;;  %v156_v55 = vadd.f32 %v140_v42, %v107_v34 }
 0x13d   :  { %v771_v30 = vpop.xlane.xlu1 %770 }
 0x13e   :  { %v786_v12 = vpop.xlane.xlu0 %785  ;;  %v791_v43 = vmul.f32 0.00390625, %v771_v30 }
 0x13f   :  { %v796_v3 = vmul.f32 0.00390625, %v786_v12  ;;  %v155_v12 = vadd.f32 %v139_v45, %v106_v29 }
 0x141   :  { %v536_v0 = vpop.xlane.xlu2 %535 }
 0x142   :  { %v550_v40 = vmul.f32 0.00390625, %v536_v0 }
 0x145   :  { %v539_v48 = vpop.xlane.xlu1 %538 }
 0x146   :  { %v551_v28 = vmul.f32 0.00390625, %v539_v48 }
 0x148   :  { %v789_v26 = vpop.xlane.xlu0 %788 }
 0x149   :  { %v797_v6 = vmul.f32 0.00390625, %v789_v26 }
 0x14a   :  { %v527_v51 = vpop.xlane.xlu2 %526 }
 0x14b   :  { %806 = vmatpush.msra.mxu2 %v797_v6  ;;  %v547_v53 = vmul.f32 0.00390625, %v527_v51 }
 0x14d   :  { %807 = vmatpush.msra.mxu2 %v796_v3 }
 0x14e   :  { %v530_v39 = vpop.xlane.xlu1 %529 }
 0x14f   :  { %808 = vmatpush.msra.mxu2 %v795_v20  ;;  %v548_v58 = vmul.f32 0.00390625, %v530_v39 }
 0x150   :  { %v545_v22 = vpop.xlane.xlu0 %544 }
 0x151   :  { %v553_v57 = vmul.f32 0.00390625, %v545_v22  ;;  %809 = vmatpush.msra.mxu2 %v794_v33 }
 0x153   :  { %574 = vmatpush.msra.mxu0 %v553_v57  ;;  %810 = vmatpush.msra.mxu2 %v793_v17 }
 0x155   :  { %575 = vmatpush.msra.mxu0 %v552_v44  ;;  %811 = vmatpush.msra.mxu2 %v792_v36 }
 0x157   :  { %576 = vmatpush.msra.mxu0 %v551_v28  ;;  %812 = vmatpush.msra.mxu2 %v791_v43 }
 0x158   :  { %v768_v50 = vpop.xlane.xlu0 %767 }
 0x159   :  { %v790_v52 = vmul.f32 0.00390625, %v768_v50  ;;  %577 = vmatpush.msra.mxu0 %v550_v40 }
 0x15a   :  { %v4316_v47 = vpop.f32.mrf.mxu0 }
 0x15b   :  { %813 = vmatpush.msra.mxu2 %v790_v52  ;;  %v1200_v20 = vmul.f32 %v4316_v47, %v4316_v47 }
 0x15c   :  { %3308 = vmatmul.msk.f32.vlgmr.msra.gmra.mxu2 %vm108_vm0, %v153_v16 }
 0x15f   :  { %v473_v1 = vpop.f32.mrf.mxu2 }
 0x160   :  { %v533_v54 = vpop.xlane.xlu0 %532  ;;  %v1202_v13 = vmul.f32 %v473_v1, %v473_v1 }
 0x161   :  { %v549_v37 = vmul.f32 0.00390625, %v533_v54 }
 0x163   :  { %578 = vmatpush.msra.mxu0 %v549_v37 }
 0x164   :  { %3309 = vmatmul.msk.f32.gmra.mxu2 %vm108_vm0, %v154_v15 }
 0x165   :  { %579 = vmatpush.msra.mxu0 %v548_v58 }
 0x167   :  { %580 = vmatpush.msra.mxu0 %v547_v53 }
 0x168   :  { %v524_v7 = vpop.xlane.xlu0 %523 }
 0x169   :  { %v546_v19 = vmul.f32 0.00390625, %v524_v7 }
 0x16b   :  { %581 = vmatpush.msra.mxu0 %v546_v19 }
 0x16c   :  { %3303 = vmatmul.msk.f32.vlgmr.msra.gmra.mxu0 %vm108_vm0, %v153_v16  ;;  %3310 = vmatmul.msk.f32.gmra.mxu2 %vm108_vm0, %v155_v12 }
 0x173   :  { %v4323_v33 = vpop.f32.mrf.mxu0 }
 0x174   :  { %3304 = vmatmul.msk.f32.gmra.mxu0 %vm108_vm0, %v154_v15  ;;  %3311 = vmatmul.msk.f32.gmra.mxu2 %vm108_vm0, %v156_v55  ;;  %v1204_v22 = vmul.f32 %v4323_v33, %v4323_v33 }
 0x176   :  { %v1208_v11 = vadd.f32 %v1204_v22, %v1200_v20 }
 0x178   :  { %v1209_v57 = vrot.slane %v1208_v11, 4 }
 0x179   :  { %v476_v56 = vpop.f32.mrf.mxu2 }
 0x17a   :  { %v1206_v21 = vmul.f32 %v476_v56, %v476_v56  ;;  %v1210_v34 = vadd.f32 %v1209_v57, %v1208_v11 }
 0x17c   :  { %3305 = vmatmul.msk.f32.gmra.mxu0 %vm108_vm0, %v155_v12  ;;  %v1222_v35 = vadd.f32 %v1206_v21, %v1202_v13  ;;  %v1211_v43 = vrot.slane %v1210_v34, 2 }
 0x17d   :  { %v4333_v44 = vpop.f32.mrf.mxu0 }
 0x17e   :  { %v1223_v30 = vrot.slane %v1222_v35, 4  ;;  %v1212_v40 = vadd.f32 %v1211_v43, %v1210_v34  ;;  %v1112_v37 = vmul.f32 %v4333_v44, %v4333_v44 }
 0x180   :  { %v1224_v26 = vadd.f32 %v1223_v30, %v1222_v35  ;;  %v1213_v52 = vrot.slane %v1212_v40, 1  ;;  %v4341_v30 = vpop.f32.mrf.mxu3 }
 0x182   :  { %v1225_v32 = vrot.slane %v1224_v26, 2  ;;  %v1214_v54 = vadd.f32 %v1213_v52, %v1212_v40  ;;  %v4352_v52 = vld [vmem:[%s5690_s5 + $0x8] sm:$0xff] }
 0x183   :  { %v4319_v6 = vpop.f32.mrf.mxu2  ;;  %693 = vmatpush.msrb.mxu1 %v4352_v52  ;;  %924 = vmatpush.msrb.mxu3 %v4352_v52 }
 0x184   :  { %3306 = vmatmul.msk.f32.gmra.mxu0 %vm108_vm0, %v156_v55  ;;  %v1226_v14 = vadd.f32 %v1225_v32, %v1224_v26  ;;  %v1114_v8 = vmul.f32 %v4319_v6, %v4319_v6  ;;  %v1236_v53 = vmax.f32 %v1214_v54, 1e-24 }
 0x186   :  { %v1227_v29 = vrot.slane %v1226_v14, 1  ;;  %vm1246_vm15 = vweird.f32 %v1236_v53 }
 0x188   :  { %v1228_v3 = vadd.f32 %v1227_v29, %v1226_v14 }
 0x189   :  { %v4337_v58 = vpop.f32.mrf.mxu0 }
 0x18a   :  { %v1238_v61 = vmax.f32 %v1228_v3, 1e-24  ;;  %v1116_v7 = vmul.f32 %v4337_v58, %v4337_v58 }
 0x18c   :  { %3591 = vrsqrt.f32 %v1238_v61  ;;  %vm1266_vm12 = vweird.f32 %v1238_v61  ;;  %v1120_v42 = vadd.f32 %v1116_v7, %v1112_v37  ;;  %v4358_v37 = vpop.f32.mrf.mxu1 }
 0x18d   :  { %3593 = vrsqrt.f32 %v1236_v53 }
 0x18e   :  { %v1121_v35 = vrot.slane %v1120_v42, 4 }
 0x18f   :  { %v4329_v49 = vpop.f32.mrf.mxu2 }
 0x190   :  { %v1118_v17 = vmul.f32 %v4329_v49, %v4329_v49  ;;  %v1122_v26 = vadd.f32 %v1121_v35, %v1120_v42 }
 0x192   :  { %v1134_v48 = vadd.f32 %v1118_v17, %v1114_v8  ;;  %v3592_v0 = vpop.eup %3591  ;;  %v1123_v29 = vrot.slane %v1122_v26, 2  ;;  %v4345_v17 = vpop.f32.mrf.mxu3 }
 0x193   :  { %v1261_v46 = vmul.f32 %v3592_v0, %v1238_v61  ;;  %vm1267_vm13 = vweird.f32 %v3592_v0  ;;  %v3594_v32 = vpop.eup %3593  ;;  %v1207_v57 = vmul.f32 %v4345_v17, %v4345_v17 }
 0x194   :  { %v1135_v36 = vrot.slane %v1134_v48, 4  ;;  %vm1268_vm14 = vmor %vm1266_vm12, %vm1267_vm13  ;;  %v1241_v14 = vmul.f32 %v3594_v32, %v1236_v53  ;;  %v1124_v8 = vadd.f32 %v1123_v29, %v1122_v26  ;;  %vm1247_vm2 = vweird.f32 %v3594_v32  ;;  %v4375_v26 = vpop.f32.mrf.mxu1 }
 0x195   :  { %v1262_v16 = vmul.f32 %v3592_v0, %v1261_v46  ;;  %vm1248_vm5 = vmor %vm1246_vm15, %vm1247_vm2 }
 0x196   :  { %v1136_v28 = vadd.f32 %v1135_v36, %v1134_v48  ;;  %v1242_v20 = vmul.f32 %v3594_v32, %v1241_v14  ;;  %v1125_v11 = vrot.slane %v1124_v8, 1 }
 0x197   :  { %v1263_v39 = vmul.f32 0.5, %v1262_v16 }
 0x198   :  { %v1137_v50 = vrot.slane %v1136_v28, 2  ;;  %v1126_v36 = vadd.f32 %v1125_v11, %v1124_v8 }
 0x199   :  { %v1264_v51 = vsub.f32 1.5, %v1263_v39 }
 0x19a   :  { %v1138_v10 = vadd.f32 %v1137_v50, %v1136_v28  ;;  %v1148_v46 = vmax.f32 %v1126_v36, 1e-24  ;;  %v4373_v42 = vpop.f32.mrf.mxu3 }
 0x19b   :  { %v1265_v12 = vmul.f32 %v3592_v0, %v1264_v51  ;;  %v4363_v51 = vld [vmem:[%s5690_s5] sm:$0xff] }
 0x19c   :  { %v1139_v15 = vrot.slane %v1138_v10, 1  ;;  %694 = vmatpush.msrb.mxu1 %v4363_v51  ;;  %925 = vmatpush.msrb.mxu3 %v4363_v51  ;;  %vm1158_vm7 = vweird.f32 %v1148_v46 }
 0x19d   :  { %v1269_v55 = vsel %vm1268_vm14, %v3592_v0, %v1265_v12 }
 0x19e   :  { %v1140_v45 = vadd.f32 %v1139_v15, %v1138_v10  ;;  %v1282_v13 = vmul.f32 %v1269_v55, %v473_v1  ;;  %v1286_v21 = vmul.f32 %v1269_v55, %v476_v56  ;;  %v1203_v1 = vmul.f32 %v4341_v30, %v4341_v30 }
 0x19f   :  { %v1243_v56 = vmul.f32 0.5, %v1242_v20 }
 0x1a0   :  { %v1150_v19 = vmax.f32 %v1140_v45, 1e-24  ;;  %1418 = vst [vmem:[#allocation3 + $0x10] sm:$0xff] %v1282_v13  ;;  %1576 = vmatpush.msrb.mxu0 %v1286_v21  ;;  %v1229_v0 = vadd.f32 %v1207_v57, %v1203_v1 }
 0x1a1   :  { %1422 = vst [vmem:[#allocation3 + $0x30] sm:$0xff] %v1286_v21  ;;  %v1244_v48 = vsub.f32 1.5, %v1243_v56 }
 0x1a2   :  { %3595 = vrsqrt.f32 %v1150_v19  ;;  %1577 = vmatpush.msrb.mxu0 %v1282_v13  ;;  %vm1178_vm3 = vweird.f32 %v1150_v19  ;;  %v1230_v40 = vrot.slane %v1229_v0, 4  ;;  %v4385_v8 = vpop.f32.mrf.mxu3 }
 0x1a3   :  { %v1245_v43 = vmul.f32 %v3594_v32, %v1244_v48  ;;  %3597 = vrsqrt.f32 %v1148_v46  ;;  %v1119_v56 = vmul.f32 %v4385_v8, %v4385_v8  ;;  %v1201_v48 = vmul.f32 %v4358_v37, %v4358_v37 }
 0x1a4   :  { %v1231_v54 = vadd.f32 %v1230_v40, %v1229_v0 }
 0x1a5   :  { %v1249_v50 = vsel %vm1248_vm5, %v3594_v32, %v1245_v43  ;;  %v1205_v43 = vmul.f32 %v4375_v26, %v4375_v26  ;;  %vm597_vm5 = vcmask 7168  }
 0x1a6   :  { %v1280_v10 = vmul.f32 %v1249_v50, %v4316_v47  ;;  %v1284_v39 = vmul.f32 %v1249_v50, %v4323_v33  ;;  %v1232_v33 = vrot.slane %v1231_v54, 2 }
 0x1a7   :  { %v1215_v40 = vadd.f32 %v1205_v43, %v1201_v48 }
 0x1a8   :  { %v3596_v3 = vpop.eup %3595  ;;  %1416 = vst [vmem:[#allocation3] sm:$0xff] %v1280_v10  ;;  %1494 = vmatpush.msra.mxu1 %v1284_v39  ;;  %v1233_v45 = vadd.f32 %v1232_v33, %v1231_v54 }
 0x1a9   :  { %v1173_v61 = vmul.f32 %v3596_v3, %v1150_v19  ;;  %vm1179_vm4 = vweird.f32 %v3596_v3  ;;  %1420 = vst [vmem:[#allocation3 + $0x20] sm:$0xff] %v1284_v39  ;;  %v3598_v7 = vpop.eup %3597 }
 0x1aa   :  { %vm1180_vm6 = vmor %vm1178_vm3, %vm1179_vm4  ;;  %1495 = vmatpush.msra.mxu1 %v1280_v10  ;;  %v1153_v12 = vmul.f32 %v3598_v7, %v1148_v46  ;;  %v1234_v19 = vrot.slane %v1233_v45, 1  ;;  %vm1159_vm8 = vweird.f32 %v3598_v7  ;;  %v1216_v10 = vrot.slane %v1215_v40, 4 }
 0x1ab   :  { %v1174_v22 = vmul.f32 %v3596_v3, %v1173_v61  ;;  %vm1160_vm9 = vmor %vm1158_vm7, %vm1159_vm8 }
 0x1ac   :  { %v1154_v55 = vmul.f32 %v3598_v7, %v1153_v12  ;;  %v1235_v13 = vadd.f32 %v1234_v19, %v1233_v45  ;;  %v1217_v54 = vadd.f32 %v1216_v10, %v1215_v40 }
 0x1ad   :  { %v1175_v34 = vmul.f32 0.5, %v1174_v22  ;;  %v4389_v22 = vpop.f32.mrf.mxu1 }
 0x1ae   :  { %v1155_v21 = vmul.f32 0.5, %v1154_v55  ;;  %v1239_v35 = vmax.f32 %v1235_v13, 1e-24  ;;  %v720_v57 = vadd.f32 %v4389_v22, %v4333_v44  ;;  %v1218_v12 = vrot.slane %v1217_v54, 2 }
 0x1af   :  { %v1176_v28 = vsub.f32 1.5, %v1175_v34 }
 0x1b0   :  { %v1156_v32 = vsub.f32 1.5, %v1155_v21  ;;  %3599 = vrsqrt.f32 %v1239_v35  ;;  %vm1276_vm10 = vweird.f32 %v1239_v35  ;;  %v1219_v55 = vadd.f32 %v1218_v12, %v1217_v54 }
 0x1b1   :  { %v1177_v16 = vmul.f32 %v3596_v3, %v1176_v28 }
 0x1b2   :  { %v1157_v14 = vmul.f32 %v3598_v7, %v1156_v32  ;;  %v1220_v21 = vrot.slane %v1219_v55, 1 }
 0x1b3   :  { %v1181_v15 = vsel %vm1180_vm6, %v3596_v3, %v1177_v16  ;;  %v1115_v3 = vmul.f32 %v4373_v42, %v4373_v42 }
 0x1b4   :  { %v4366_v53 = vmul.f32 %v1181_v15, %v4319_v6  ;;  %v4369_v47 = vmul.f32 %v1181_v15, %v4329_v49  ;;  %v1161_v29 = vsel %vm1160_vm9, %v3598_v7, %v1157_v14 }
 0x1b5   :  { %v4380_v20 = vmul.f32 %v1161_v29, %v4333_v44  ;;  %v4383_v61 = vmul.f32 %v1161_v29, %v4337_v58  ;;  %v1141_v34 = vadd.f32 %v1119_v56, %v1115_v3 }
 0x1b6   :  { %v3600_v1 = vpop.eup %3599 }
 0x1b7   :  { %v1271_v11 = vmul.f32 %v3600_v1, %v1239_v35  ;;  %v1142_v0 = vrot.slane %v1141_v34, 4  ;;  %vm1277_vm11 = vweird.f32 %v3600_v1  ;;  %v1221_v35 = vadd.f32 %v1220_v21, %v1219_v55 }
 0x1b8   :  { %vm1278_vm12 = vmor %vm1276_vm10, %vm1277_vm11 }
 0x1b9   :  { %v1272_v36 = vmul.f32 %v3600_v1, %v1271_v11  ;;  %v1143_v46 = vadd.f32 %v1142_v0, %v1141_v34  ;;  %v1237_v32 = vmax.f32 %v1221_v35, 1e-24 }
 0x1bb   :  { %v1273_v28 = vmul.f32 0.5, %v1272_v36  ;;  %v1144_v16 = vrot.slane %v1143_v46, 2  ;;  %vm1256_vm2 = vweird.f32 %v1237_v32 }
 0x1bd   :  { %v1274_v50 = vsub.f32 1.5, %v1273_v28  ;;  %v1145_v39 = vadd.f32 %v1144_v16, %v1143_v46 }
 0x1bf   :  { %v1275_v44 = vmul.f32 %v3600_v1, %v1274_v50  ;;  %v1146_v7 = vrot.slane %v1145_v39, 1 }
 0x1c1   :  { %v1279_v15 = vsel %vm1278_vm12, %v3600_v1, %v1275_v44  ;;  %v1147_v19 = vadd.f32 %v1146_v7, %v1145_v39 }
 0x1c2   :  { %v1283_v33 = vmul.f32 %v1279_v15, %v4341_v30  ;;  %v1287_v45 = vmul.f32 %v1279_v15, %v4345_v17 }
 0x1c3   :  { %v1151_v13 = vmax.f32 %v1147_v19, 1e-24 }
 0x1c4   :  { %1419 = vst [vmem:[#allocation3 + $0x18] sm:$0xff] %v1283_v33  ;;  %1617 = vmatpush.msrb.mxu2 %v1287_v45 }
 0x1c5   :  { %1423 = vst [vmem:[#allocation3 + $0x38] sm:$0xff] %v1287_v45  ;;  %3601 = vrsqrt.f32 %v1151_v13  ;;  %vm1188_vm13 = vweird.f32 %v1151_v13 }
 0x1c6   :  { %1618 = vmatpush.msrb.mxu2 %v1283_v33  ;;  %3603 = vrsqrt.f32 %v1237_v32 }
 0x1c7   :  { %721 = vadd.xlane.f32.xlu0 %v720_v57 }
 0x1cb   :  { %v3602_v14 = vpop.eup %3601 }
 0x1cc   :  { %v1183_v29 = vmul.f32 %v3602_v14, %v1151_v13  ;;  %v3604_v30 = vpop.eup %3603  ;;  %vm1189_vm14 = vweird.f32 %v3602_v14 }
 0x1cd   :  { %v1251_v56 = vmul.f32 %v3604_v30, %v1237_v32  ;;  %vm1190_vm15 = vmor %vm1188_vm13, %vm1189_vm14  ;;  %vm1257_vm3 = vweird.f32 %v3604_v30 }
 0x1ce   :  { %v1184_v3 = vmul.f32 %v3602_v14, %v1183_v29  ;;  %vm1258_vm4 = vmor %vm1256_vm2, %vm1257_vm3  ;;  %v1113_v29 = vmul.f32 %v4389_v22, %v4389_v22 }
 0x1cf   :  { %v1252_v57 = vmul.f32 %v3604_v30, %v1251_v56 }
 0x1d0   :  { %v1185_v17 = vmul.f32 0.5, %v1184_v3 }
 0x1d1   :  { %v1253_v34 = vmul.f32 0.5, %v1252_v57 }
 0x1d2   :  { %v1186_v11 = vsub.f32 1.5, %v1185_v17  ;;  %v4433_v17 = vpop.f32.mrf.mxu1 }
 0x1d3   :  { %v1254_v0 = vsub.f32 1.5, %v1253_v34  ;;  %v1117_v57 = vmul.f32 %v4433_v17, %v4433_v17 }
 0x1d4   :  { %v1187_v48 = vmul.f32 %v3602_v14, %v1186_v11 }
 0x1d5   :  { %v1255_v40 = vmul.f32 %v3604_v30, %v1254_v0 }
 0x1d6   :  { %v1191_v36 = vsel %vm1190_vm15, %v3602_v14, %v1187_v48 }
 0x1d7   :  { %v4404_v28 = vmul.f32 %v1191_v36, %v4373_v42  ;;  %v4407_v46 = vmul.f32 %v1191_v36, %v4385_v8  ;;  %v1259_v10 = vsel %vm1258_vm4, %v3604_v30, %v1255_v40  ;;  %v4441_v36 = vpop.trf.xlu0 }
 0x1d8   :  { %v1281_v54 = vmul.f32 %v1259_v10, %v4358_v37  ;;  %v1285_v15 = vmul.f32 %v1259_v10, %v4375_v26  ;;  %3329 = vmatmul.msk.f32.vlgmr.msrb.gmra.mxu0 %vm165_vm1, %v4441_v36  ;;  %3337 = vmatmul.msk.f32.vlgmr.msrb.gmra.mxu2 %vm165_vm1, %v4441_v36 }
 0x1d9   :  { %5702 = vst [vmem:[#allocation10_spill] sm:$0xff] %v4407_v46 }
 0x1da   :  { %1417 = vst [vmem:[#allocation3 + $0x8] sm:$0xff] %v1281_v54  ;;  %1535 = vmatpush.msra.mxu3 %v1285_v15 }
 0x1db   :  { %1421 = vst [vmem:[#allocation3 + $0x28] sm:$0xff] %v1285_v15 }
 0x1dc   :  { %1536 = vmatpush.msra.mxu3 %v1281_v54 }
 0x1df   :  { %v4399_v1 = vpop.f32.mrf.mxu2 }
 0x1e0   :  { %v827_v43 = vmul.f32 %v4399_v1, %v4399_v1 }
 0x1e2   :  { %v829_v39 = vsel %vm597_vm5, %v827_v43, 0.0 }
 0x1e7   :  { %v4409_v50 = vpop.f32.mrf.mxu2 }
 0x1e8   :  { %v828_v16 = vmul.f32 %v4409_v50, %v4409_v50 }
 0x1e9   :  { %v4413_v44 = vpop.f32.mrf.mxu0 }
 0x1ea   :  { %v830_v33 = vsel %vm597_vm5, %v828_v16, 0.0  ;;  %v595_v12 = vmul.f32 %v4413_v44, %v4413_v44  ;;  %v1127_v16 = vadd.f32 %v1117_v57, %v1113_v29 }
 0x1eb   :  { %v831_v45 = vadd.f32 %v830_v33, %v829_v39 }
 0x1ec   :  { %v598_v37 = vsel %vm597_vm5, %v595_v12, 0.0  ;;  %v1128_v15 = vrot.slane %v1127_v16, 4 }
 0x1ed   :  { %v832_v7 = vrot.slane %v831_v45, 4 }
 0x1ef   :  { %v833_v19 = vadd.f32 %v832_v7, %v831_v45  ;;  %v4421_v55 = vpop.f32.mrf.mxu2  ;;  %v1129_v7 = vadd.f32 %v1128_v15, %v1127_v16 }
 0x1f0   :  { %v851_v3 = vmul.f32 %v4421_v55, %v4421_v55 }
 0x1f1   :  { %v834_v13 = vrot.slane %v833_v19, 2  ;;  %v4423_v21 = vpop.f32.mrf.mxu0 }
 0x1f2   :  { %v596_v26 = vmul.f32 %v4423_v21, %v4423_v21  ;;  %v853_v43 = vsel %vm597_vm5, %v851_v3, 0.0 }
 0x1f3   :  { %v835_v35 = vadd.f32 %v834_v13, %v833_v19 }
 0x1f4   :  { %v599_v32 = vsel %vm597_vm5, %v596_v26, 0.0 }
 0x1f5   :  { %v836_v14 = vrot.slane %v835_v35, 1  ;;  %v600_v30 = vadd.f32 %v599_v32, %v598_v37  ;;  %v1130_v37 = vrot.slane %v1129_v7, 2 }
 0x1f7   :  { %v837_v56 = vadd.f32 %v836_v14, %v835_v35  ;;  %v601_v11 = vrot.slane %v600_v30, 4  ;;  %v4437_v48 = vpop.f32.mrf.mxu2  ;;  %v4453_v35 = vpop.trf.xlu0  ;;  %v1131_v29 = vadd.f32 %v1130_v37, %v1129_v7 }
 0x1f8   :  { %v852_v34 = vmul.f32 %v4437_v48, %v4437_v48  ;;  %3330 = vmatmul.msk.f32.gmra.mxu0 %vm165_vm1, %v4453_v35  ;;  %3338 = vmatmul.msk.f32.gmra.mxu2 %vm165_vm1, %v4453_v35 }
 0x1f9   :  { %v838_v0 = vmax.f32 %v837_v56, 1e-24  ;;  %v602_v40 = vadd.f32 %v601_v11, %v600_v30  ;;  %v4444_v10 = vpop.f32.mrf.mxu0 }
 0x1fa   :  { %v854_v39 = vsel %vm597_vm5, %v852_v34, 0.0  ;;  %v620_v19 = vmul.f32 %v4444_v10, %v4444_v10 }
 0x1fb   :  { %3605 = vrsqrt.f32 %v838_v0  ;;  %v603_v54 = vrot.slane %v602_v40, 2  ;;  %v855_v33 = vadd.f32 %v854_v39, %v853_v43  ;;  %v1132_v43 = vrot.slane %v1131_v29, 1 }
 0x1fc   :  { %v622_v11 = vsel %vm597_vm5, %v620_v19, 0.0  ;;  %vm845_vm7 = vweird.f32 %v838_v0 }
 0x1fd   :  { %v604_v45 = vadd.f32 %v603_v54, %v602_v40  ;;  %v856_v12 = vrot.slane %v855_v33, 4  ;;  %v1133_v54 = vadd.f32 %v1132_v43, %v1131_v29 }
 0x1ff   :  { %v605_v13 = vrot.slane %v604_v45, 1  ;;  %v857_v26 = vadd.f32 %v856_v12, %v855_v33  ;;  %v1149_v7 = vmax.f32 %v1133_v54, 1e-24  ;;  %v4465_v19 = vpop.trf.xlu0 }
 0x200   :  { %3331 = vmatmul.msk.f32.gmra.mxu0 %vm165_vm1, %v4465_v19  ;;  %3339 = vmatmul.msk.f32.gmra.mxu2 %vm165_vm1, %v4465_v19 }
 0x201   :  { %v3606_v32 = vpop.eup %3605  ;;  %v606_v14 = vadd.f32 %v605_v13, %v604_v45  ;;  %v4455_v3 = vpop.f32.mrf.mxu0  ;;  %v858_v56 = vrot.slane %v857_v26, 2  ;;  %vm1168_vm11 = vweird.f32 %v1149_v7 }
 0x202   :  { %v840_v30 = vmul.f32 %v3606_v32, %v838_v0  ;;  %v621_v57 = vmul.f32 %v4455_v3, %v4455_v3  ;;  %vm846_vm6 = vweird.f32 %v3606_v32 }
 0x203   :  { %v607_v34 = vmax.f32 %v606_v14, 1e-24  ;;  %v859_v16 = vadd.f32 %v858_v56, %v857_v26  ;;  %vm847_vm8 = vmor %vm845_vm7, %vm846_vm6 }
 0x204   :  { %v841_v40 = vmul.f32 %v3606_v32, %v840_v30  ;;  %v623_v39 = vsel %vm597_vm5, %v621_v57, 0.0 }
 0x205   :  { %3607 = vrsqrt.f32 %v607_v34  ;;  %v624_v15 = vadd.f32 %v623_v39, %v622_v11  ;;  %v860_v45 = vrot.slane %v859_v16, 1  ;;  %vm614_vm10 = vweird.f32 %v607_v34 }
 0x206   :  { %v842_v33 = vmul.f32 0.5, %v841_v40  ;;  %3609 = vrsqrt.f32 %v1149_v7 }
 0x207   :  { %v625_v12 = vrot.slane %v624_v15, 4  ;;  %v861_v37 = vadd.f32 %v860_v45, %v859_v16 }
 0x208   :  { %v843_v13 = vsub.f32 1.5, %v842_v33  ;;  %v4472_v33 = vpop.trf.xlu0 }
 0x209   :  { %v626_v46 = vadd.f32 %v625_v12, %v624_v15  ;;  %v862_v14 = vmax.f32 %v861_v37, 1e-24  ;;  %3332 = vmatmul.msk.f32.gmra.mxu0 %vm165_vm1, %v4472_v33  ;;  %3340 = vmatmul.msk.f32.gmra.mxu2 %vm165_vm1, %v4472_v33 }
 0x20a   :  { %v844_v26 = vmul.f32 %v3606_v32, %v843_v13 }
 0x20b   :  { %v3608_v29 = vpop.eup %3607  ;;  %v627_v30 = vrot.slane %v626_v46, 2  ;;  %3611 = vrsqrt.f32 %v862_v14  ;;  %vm869_vm15 = vweird.f32 %v862_v14 }
 0x20c   :  { %v848_v56 = vsel %vm847_vm8, %v3606_v32, %v844_v26  ;;  %v609_v11 = vmul.f32 %v3608_v29, %v607_v34  ;;  %v3610_v16 = vpop.eup %3609  ;;  %vm615_vm9 = vweird.f32 %v3608_v29  ;;  %vm711_vm8 = vcmask 516096  }
 0x20d   :  { %v628_v57 = vadd.f32 %v627_v30, %v626_v46  ;;  %v849_v43 = vmul.f32 %v848_v56, %v4399_v1  ;;  %v1163_v15 = vmul.f32 %v3610_v16, %v1149_v7  ;;  %vm1169_vm12 = vweird.f32 %v3610_v16  ;;  %vm616_vm13 = vmor %vm614_vm10, %vm615_vm9 }
 0x20e   :  { %v610_v40 = vmul.f32 %v3608_v29, %v609_v11  ;;  %v850_v26 = vmul.f32 %v848_v56, %v4409_v50  ;;  %vm1170_vm14 = vmor %vm1168_vm11, %vm1169_vm12  ;;  %vm718_vm9 = vcmask 524800  }
 0x20f   :  { %v629_v39 = vrot.slane %v628_v57, 1  ;;  %875 = vxpose.xlu1.b32.start [1/2] (short) (narrow) %v849_v43, 8  ;;  %v1164_v46 = vmul.f32 %v3610_v16, %v1163_v15 }
 0x210   :  { %v611_v54 = vmul.f32 0.5, %v610_v40 }
 0x211   :  { %v630_v45 = vadd.f32 %v629_v39, %v628_v57  ;;  %v3612_v0 = vpop.eup %3611  ;;  %v1165_v37 = vmul.f32 0.5, %v1164_v46 }
 0x212   :  { %v612_v32 = vsub.f32 1.5, %v611_v54  ;;  %v864_v1 = vmul.f32 %v3612_v0, %v862_v14  ;;  %vm870_vm2 = vweird.f32 %v3612_v0  ;;  %v4480_v54 = vpop.trf.xlu0 }
 0x213   :  { %v631_v12 = vmax.f32 %v630_v45, 1e-24  ;;  %v1166_v57 = vsub.f32 1.5, %v1165_v37  ;;  %3333 = vmatmul.msk.f32.gmra.mxu0 %vm165_vm1, %v4480_v54  ;;  %vm871_vm3 = vmor %vm869_vm15, %vm870_vm2  ;;  %3341 = vmatmul.msk.f32.gmra.mxu2 %vm165_vm1, %v4480_v54 }
 0x214   :  { %v613_v13 = vmul.f32 %v3608_v29, %v612_v32  ;;  %v865_v30 = vmul.f32 %v3612_v0, %v864_v1 }
 0x215   :  { %3613 = vrsqrt.f32 %v631_v12  ;;  %v1167_v39 = vmul.f32 %v3610_v16, %v1166_v57  ;;  %vm638_vm4 = vweird.f32 %v631_v12 }
 0x216   :  { %v617_v11 = vsel %vm616_vm13, %v3608_v29, %v613_v13  ;;  %v866_v40 = vmul.f32 0.5, %v865_v30 }
 0x217   :  { %876 = vxpose.xlu1.b32.end [2/2] (short) (narrow) %v850_v26, 8  ;;  %v618_v34 = vmul.f32 %v617_v11, %v4413_v44  ;;  %v1171_v50 = vsel %vm1170_vm14, %v3610_v16, %v1167_v39  ;;  %v619_v1 = vmul.f32 %v617_v11, %v4423_v21 }
 0x218   :  { %v867_v15 = vsub.f32 1.5, %v866_v40  ;;  %v4487_v14 = vmul.f32 %v1171_v50, %v4389_v22  ;;  %v4490_v29 = vmul.f32 %v1171_v50, %v4433_v17 }
 0x219   :  { %644 = vxpose.xlu2.b32.start [1/2] (short) (narrow) %v618_v34, 8 }
 0x21a   :  { %v868_v44 = vmul.f32 %v3612_v0, %v867_v15  ;;  %v4498_v30 = vpop.trf.xlu0 }
 0x21b   :  { %v3614_v7 = vpop.eup %3613  ;;  %3334 = vmatmul.msk.f32.gmra.mxu0 %vm165_vm1, %v4498_v30  ;;  %3342 = vmatmul.msk.f32.gmra.mxu2 %vm165_vm1, %v4498_v30 }
 0x21c   :  { %v633_v56 = vmul.f32 %v3614_v7, %v631_v12  ;;  %v872_v45 = vsel %vm871_vm3, %v3612_v0, %v868_v44  ;;  %vm639_vm6 = vweird.f32 %v3614_v7 }
 0x21d   :  { %v4493_v32 = vmul.f32 %v872_v45, %v4421_v55  ;;  %v874_v46 = vmul.f32 %v872_v45, %v4437_v48  ;;  %vm640_vm7 = vmor %vm638_vm4, %vm639_vm6 }
 0x21e   :  { %v634_v16 = vmul.f32 %v3614_v7, %v633_v56 }
 0x21f   :  { %v931_v13 = vmul.f32 %v874_v46, %v850_v26  ;;  %v930_v22 = vmul.f32 %v4493_v32, %v849_v43 }
 0x220   :  { %v635_v37 = vmul.f32 0.5, %v634_v16 }
 0x221   :  { %645 = vxpose.xlu2.b32.end [2/2] (short) (narrow) %v619_v1, 8  ;;  %v933_v55 = vsel %vm597_vm5, %v931_v13, 0.0  ;;  %v932_v48 = vsel %vm597_vm5, %v930_v22, 0.0 }
 0x222   :  { %v636_v0 = vsub.f32 1.5, %v635_v37  ;;  %v934_v21 = vadd.f32 %v933_v55, %v932_v48  ;;  %v1446_v57 = vpop.trf.xlu0 }
 0x223   :  { %3335 = vmatmul.msk.f32.gmra.mxu0 %vm165_vm1, %v1446_v57  ;;  %3343 = vmatmul.msk.f32.gmra.mxu2 %vm165_vm1, %v1446_v57 }
 0x224   :  { %v637_v12 = vmul.f32 %v3614_v7, %v636_v0  ;;  %v935_v16 = vrot.slane %v934_v21, 4 }
 0x226   :  { %v641_v26 = vsel %vm640_vm7, %v3614_v7, %v637_v12  ;;  %v936_v37 = vadd.f32 %v935_v16, %v934_v21 }
 0x227   :  { %v642_v43 = vmul.f32 %v641_v26, %v4444_v10  ;;  %v643_v11 = vmul.f32 %v641_v26, %v4455_v3  ;;  %v3637_v10 = vmov 0   ;;  %v723_v3 = vadd.f32 %v4433_v17, %v4337_v58 }
 0x228   :  { %3574 = vset.pattern.permute.xlu0 %v3637_v10  ;;  %v937_v55 = vrot.slane %v936_v37, 2 }
 0x229   :  { %v700_v40 = vmul.f32 %v643_v11, %v619_v1  ;;  %v699_v39 = vmul.f32 %v642_v43, %v618_v34  ;;  %989 = vperm.xlu0 %3574, %v874_v46   ;;  %v949_v34 = vadd.f32 %v4373_v42, %v4319_v6  ;;  %v952_v42 = vadd.f32 %v4385_v8, %v4329_v49 }
 0x22a   :  { %v1447_v56 = vpop.trf.xlu0  ;;  %v938_v0 = vadd.f32 %v937_v55, %v936_v37  ;;  %v515_v49 = vlaneseq }
 0x22b   :  { %v702_v15 = vsel %vm597_vm5, %v700_v40, 0.0  ;;  %v701_v50 = vsel %vm597_vm5, %v699_v39, 0.0  ;;  %3336 = vmatmul.msk.f32.gmra.mxu0 %vm165_vm1, %v1447_v56  ;;  %3344 = vmatmul.msk.f32.gmra.mxu2 %vm165_vm1, %v1447_v56 }
 0x22c   :  { %v703_v44 = vadd.f32 %v702_v15, %v701_v50  ;;  %v939_v58 = vrot.slane %v938_v0, 1 }
 0x22e   :  { %v704_v7 = vrot.slane %v703_v44, 4  ;;  %v940_v6 = vadd.f32 %v939_v58, %v938_v0 }
 0x230   :  { %v705_v45 = vadd.f32 %v704_v7, %v703_v44  ;;  %v943_v21 = vmul.f32 14.285714, %v940_v6 }
 0x232   :  { %v706_v1 = vrot.slane %v705_v45, 2 }
 0x234   :  { %v707_v13 = vadd.f32 %v706_v1, %v705_v45 }
 0x236   :  { %v708_v22 = vrot.slane %v707_v13, 1 }
 0x238   :  { %v709_v46 = vadd.f32 %v708_v22, %v707_v13 }
 0x23a   :  { %v713_v48 = vmul.f32 14.285714, %v709_v46  ;;  %v722_v8 = vpop.xlane.xlu0 %721 }
 0x23b   :  { %v4580_v40 = vmul.f32 0.00390625, %v722_v8 }
 0x25b   :  { %v1620_v13 = vpop.f32.mrf.mxu2 }
 0x25c   :  { %v1647_v37 = vmul.f32 14.285714, %v1620_v13 }
 0x25e   :  { %1679 = vst [vmem:[%s5694_s7 + $0x18] sm:$0xff] %v1647_v37 }
 0x26a   :  { %3572 = vset.pattern.permute.xlu1 %v3637_v10 }
 0x277   :  { %724 = vadd.xlane.f32.xlu1 %v723_v3 }
 0x283   :  { %3573 = vset.pattern.permute.xlu2 %v3637_v10 }
 0x290   :  { %759 = vperm.xlu1 %3572, %v643_v11  }
 0x292   :  { %950 = vadd.xlane.f32.xlu2 %v949_v34  ;;  %v1579_v34 = vpop.f32.mrf.mxu0 }
 0x293   :  { %v1646_v45 = vmul.f32 14.285714, %v1579_v34 }
 0x295   :  { %1678 = vst [vmem:[%s5694_s7 + $0x10] sm:$0xff] %v1646_v45 }
 0x29a   :  { %v1582_v22 = vpop.f32.mrf.mxu0 }
 0x29b   :  { %v1650_v46 = vmul.f32 14.285714, %v1582_v22 }
 0x29d   :  { %1682 = vst [vmem:[%s5694_s7 + $0x30] sm:$0xff] %v1650_v46 }
 0x2aa   :  { %754 = vperm.xlu2 %3573, %v642_v43  }
 0x2b2   :  { %v660_v17 = vpop.trf.xlu2  ;;  %715 = vrot.lane.b32.xlu2 %v713_v48, %s3638_s25 }
 0x2b3   :  { %v891_v12 = vpop.trf.xlu1  ;;  %3307 = vmatmul.msk.f32.vlgmr.msrb.gmra.mxu1 %vm165_vm1, %v660_v17 }
 0x2b4   :  { %3312 = vmatmul.msk.f32.vlgmr.msrb.gmra.mxu3 %vm165_vm1, %v891_v12  ;;  %v1623_v12 = vpop.f32.mrf.mxu2 }
 0x2b5   :  { %v1651_v6 = vmul.f32 14.285714, %v1623_v12 }
 0x2b7   :  { %1683 = vst [vmem:[%s5694_s7 + $0x38] sm:$0xff] %v1651_v6 }
 0x2ba   :  { %953 = vadd.xlane.f32.xlu1 %v952_v42  ;;  %945 = vrot.lane.b32.xlu2 %v943_v21, %s3638_s25  ;;  %v1585_v42 = vpop.f32.mrf.mxu0 }
 0x2bb   :  { %3313 = vmatmul.msk.f32.vlgmr.msra.gmra.mxu1 %vm165_vm1, %v4441_v36 }
 0x2bc   :  { %3321 = vmatmul.msk.f32.vlgmr.msra.gmra.mxu3 %vm165_vm1, %v4441_v36 }
 0x2c2   :  { %984 = vperm.xlu2 %3573, %v4493_v32   ;;  %v990_v32 = vpop.permute.xlu0 %989 }
 0x2c3   :  { %3314 = vmatmul.msk.f32.gmra.mxu1 %vm165_vm1, %v4453_v35 }
 0x2c4   :  { %3322 = vmatmul.msk.f32.gmra.mxu3 %vm165_vm1, %v4453_v35  ;;  %v4554_v35 = vand.u32 127, %v515_v49  ;;  %v1654_v49 = vmul.f32 14.285714, %v1585_v42 }
 0x2c6   :  { %1686 = vst [vmem:[%s5694_s7 + $0x50] sm:$0xff] %v1654_v49 }
 0x2cb   :  { %3315 = vmatmul.msk.f32.gmra.mxu1 %vm165_vm1, %v4465_v19 }
 0x2cc   :  { %3323 = vmatmul.msk.f32.gmra.mxu3 %vm165_vm1, %v4465_v19  ;;  %v750_v19 = vstv %s5691_s0 }
 0x2cd   :  { %vm4562_vm5 = vcmp.eq.s32.totalorder %v4554_v35, %v750_v19 }
 0x2d3   :  { %3316 = vmatmul.msk.f32.gmra.mxu1 %vm165_vm1, %v4472_v33 }
 0x2d4   :  { %3324 = vmatmul.msk.f32.gmra.mxu3 %vm165_vm1, %v4472_v33  ;;  %v4559_v33 = vstv %s979_s28 }
 0x2db   :  { %3317 = vmatmul.msk.f32.gmra.mxu1 %vm165_vm1, %v4480_v54 }
 0x2dc   :  { %3325 = vmatmul.msk.f32.gmra.mxu3 %vm165_vm1, %v4480_v54 }
 0x2e3   :  { %3318 = vmatmul.msk.f32.gmra.mxu1 %vm165_vm1, %v4498_v30 }
 0x2e4   :  { %3326 = vmatmul.msk.f32.gmra.mxu3 %vm165_vm1, %v4498_v30 }
 0x2ea   :  { %v725_v36 = vpop.xlane.xlu1 %724 }
 0x2eb   :  { %3319 = vmatmul.msk.f32.gmra.mxu1 %vm165_vm1, %v1446_v57 }
 0x2ec   :  { %3327 = vmatmul.msk.f32.gmra.mxu3 %vm165_vm1, %v1446_v57  ;;  %v4578_v57 = vmul.f32 0.00390625, %v725_v36 }
 0x2ee   :  { %v729_v39 = vmul.f32 %v4578_v57, %v4578_v57 }
 0x2f3   :  { %3320 = vmatmul.msk.f32.gmra.mxu1 %vm165_vm1, %v1447_v56 }
 0x2f4   :  { %3328 = vmatmul.msk.f32.gmra.mxu3 %vm165_vm1, %v1447_v56  ;;  %vm981_vm1 = vcmp.eq.s32.totalorder %v4554_v35, %v4559_v33  ;;  %v3639_v56 = vmov 0.0  }
 0x2f5   :  { %521 = vst [vmem:[%s5693_s6] sm:$0x3] %v3639_v56 }
 0x302   :  { %v760_v30 = vpop.permute.xlu1 %759 }
 0x303   :  { %v763_v26 = vsel %vm4562_vm5, %v760_v30, %v4352_v52  ;;  %v728_v52 = vmul.f32 %v4580_v40, %v4580_v40 }
 0x304   :  { %v993_v43 = vsel %vm981_vm1, %v990_v32, %v763_v26 }
 0x305   :  { %v951_v11 = vpop.xlane.xlu2 %950  ;;  %997 = vst.msk [vmem:[%s5692_s8 + $0x8] sm:$0xff] %vm108_vm0, %v993_v43  ;;  %v730_v50 = vadd.f32 %v729_v39, %v728_v52  ;;  %v1626_v43 = vpop.f32.mrf.mxu2 }
 0x306   :  { %v1655_v39 = vmul.f32 14.285714, %v1626_v43 }
 0x307   :  { %v731_v44 = vrot.slane %v730_v50, 4 }
 0x308   :  { %1687 = vst [vmem:[%s5694_s7 + $0x58] sm:$0xff] %v1655_v39 }
 0x309   :  { %v732_v3 = vadd.f32 %v731_v44, %v730_v50 }
 0x30b   :  { %v733_v7 = vrot.slane %v732_v3, 2 }
 0x30d   :  { %v755_v15 = vpop.permute.xlu2 %754  ;;  %v734_v1 = vadd.f32 %v733_v7, %v732_v3  ;;  %v1629_v37 = vpop.f32.mrf.mxu2 }
 0x30e   :  { %v762_v0 = vsel %vm4562_vm5, %v755_v15, %v4363_v51  ;;  %v4610_v51 = vmul.f32 0.00390625, %v951_v11  ;;  %v1588_v15 = vpop.f32.mrf.mxu0  ;;  %v1659_v22 = vmul.f32 14.285714, %v1629_v37 }
 0x30f   :  { %v735_v55 = vrot.slane %v734_v1, 1  ;;  %v1658_v50 = vmul.f32 14.285714, %v1588_v15 }
 0x310   :  { %v957_v19 = vmul.f32 %v4610_v51, %v4610_v51  ;;  %1691 = vst [vmem:[%s5694_s7 + $0x78] sm:$0xff] %v1659_v22 }
 0x311   :  { %v736_v17 = vadd.f32 %v735_v55, %v734_v1  ;;  %1690 = vst [vmem:[%s5694_s7 + $0x70] sm:$0xff] %v1658_v50 }
 0x313   :  { %v4608_v21 = vmax.f32 %v736_v17, 1e-24 }
 0x315   :  { %v716_v10 = vpop.permute.xlu2 %715  ;;  %3615 = vrsqrt.f32 %v4608_v21  ;;  %vm744_vm11 = vweird.f32 %v4608_v21 }
 0x316   :  { %v1591_v55 = vpop.f32.mrf.mxu0 }
 0x31b   :  { %v3616_v44 = vpop.eup %3615 }
 0x31c   :  { %v739_v1 = vmul.f32 %v3616_v44, %v4608_v21  ;;  %vm745_vm10 = vweird.f32 %v3616_v44 }
 0x31d   :  { %v946_v16 = vpop.permute.xlu2 %945  ;;  %vm746_vm12 = vmor %vm744_vm11, %vm745_vm10 }
 0x325   :  { %v985_v48 = vpop.permute.xlu2 %984 }
 0x326   :  { %v992_v58 = vsel %vm981_vm1, %v985_v48, %v762_v0  ;;  %v1662_v0 = vmul.f32 14.285714, %v1591_v55  ;;  %v740_v48 = vmul.f32 %v3616_v44, %v739_v1 }
 0x327   :  { %996 = vst.msk [vmem:[%s5692_s8] sm:$0xff] %vm108_vm0, %v992_v58 }
 0x328   :  { %1694 = vst [vmem:[%s5694_s7 + $0x90] sm:$0xff] %v1662_v0  ;;  %v741_v42 = vmul.f32 0.5, %v740_v48 }
 0x32d   :  { %v954_v8 = vpop.xlane.xlu1 %953 }
 0x32e   :  { %v4615_v36 = vmul.f32 0.00390625, %v954_v8  ;;  %v1632_v8 = vpop.f32.mrf.mxu2 }
 0x330   :  { %v958_v32 = vmul.f32 %v4615_v36, %v4615_v36  ;;  %v696_v30 = vpop.f32.mrf.mxu1 }
 0x331   :  { %v710_v26 = vmul.f32 14.285714, %v696_v30 }
 0x332   :  { %v959_v11 = vadd.f32 %v958_v32, %v957_v19  ;;  %v1663_v19 = vmul.f32 14.285714, %v1632_v8  ;;  %v1594_v32 = vpop.f32.mrf.mxu0  ;;  %v3620_v8 = vld [vmem:[%s5690_s5 + $0x18] sm:$0xff] }
 0x333   :  { %712 = vst.msk [vmem:[%s5693_s6] sm:$0x1] %vm711_vm8, %v710_v26  ;;  %v1666_v30 = vmul.f32 14.285714, %v1594_v32  ;;  %v742_v26 = vsub.f32 1.5, %v741_v42  ;;  %v3619_v42 = vld [vmem:[%s5690_s5 + $0x10] sm:$0xff] }
 0x334   :  { %v960_v52 = vrot.slane %v959_v11, 4  ;;  %719 = vst.msk [vmem:[%s5693_s6] sm:$0x1] %vm718_vm9, %v716_v10 }
 0x335   :  { %1695 = vst [vmem:[%s5694_s7 + $0x98] sm:$0xff] %v1663_v19 }
 0x336   :  { %v961_v56 = vadd.f32 %v960_v52, %v959_v11  ;;  %1698 = vst [vmem:[%s5694_s7 + $0xb0] sm:$0xff] %v1666_v30  ;;  %v743_v52 = vmul.f32 %v3616_v44, %v742_v26 }
 0x337   :  { %v927_v3 = vpop.f32.mrf.mxu3 }
 0x338   :  { %v962_v34 = vrot.slane %v961_v56, 2  ;;  %v941_v7 = vmul.f32 14.285714, %v927_v3  ;;  %v1497_v45 = vpop.f32.mrf.mxu1  ;;  %v1635_v3 = vpop.f32.mrf.mxu2 }
 0x339   :  { %v1644_v13 = vmul.f32 14.285714, %v1497_v45 }
 0x33a   :  { %v963_v10 = vadd.f32 %v962_v34, %v961_v56  ;;  %942 = vst.msk [vmem:[%s5693_s6 + $0x1] sm:$0x1] %vm711_vm8, %v941_v7  ;;  %v1667_v34 = vmul.f32 14.285714, %v1635_v3  ;;  %v1597_v45 = vpop.f32.mrf.mxu0 }
 0x33b   :  { %948 = vst.msk [vmem:[%s5693_s6 + $0x1] sm:$0x1] %vm718_vm9, %v946_v16  ;;  %v1670_v1 = vmul.f32 14.285714, %v1597_v45 }
 0x33c   :  { %v964_v46 = vrot.slane %v963_v10, 1  ;;  %1676 = vst [vmem:[%s5694_s7] sm:$0xff] %v1644_v13  ;;  %v747_v13 = vsel %vm746_vm12, %v3616_v44, %v743_v52 }
 0x33d   :  { %1699 = vst [vmem:[%s5694_s7 + $0xb8] sm:$0xff] %v1667_v34  ;;  %v748_v22 = vmul.f32 %v747_v13, %v4580_v40  ;;  %v749_v0 = vmul.f32 %v747_v13, %v4578_v57 }
 0x33e   :  { %v965_v58 = vadd.f32 %v964_v46, %v963_v10  ;;  %1702 = vst [vmem:[%s5694_s7 + $0xd0] sm:$0xff] %v1670_v1 }
 0x33f   :  { %v1538_v17 = vpop.f32.mrf.mxu3 }
 0x340   :  { %v966_v12 = vmax.f32 %v965_v58, 1e-24  ;;  %v1645_v16 = vmul.f32 14.285714, %v1538_v17  ;;  %v1500_v6 = vpop.f32.mrf.mxu1  ;;  %v1638_v17 = vpop.f32.mrf.mxu2 }
 0x341   :  { %v1648_v49 = vmul.f32 14.285714, %v1500_v6  ;;  %v1671_v44 = vmul.f32 14.285714, %v1638_v17 }
 0x342   :  { %3617 = vrsqrt.f32 %v966_v12  ;;  %1677 = vst [vmem:[%s5694_s7 + $0x8] sm:$0xff] %v1645_v16  ;;  %vm973_vm14 = vweird.f32 %v966_v12  ;;  %v1600_v40 = vpop.f32.mrf.mxu0 }
 0x343   :  { %1680 = vst [vmem:[%s5694_s7 + $0x20] sm:$0xff] %v1648_v49  ;;  %v764_v49 = vsel %vm4562_vm5, %v748_v22, %v3619_v42 }
 0x344   :  { %1703 = vst [vmem:[%s5694_s7 + $0xd8] sm:$0xff] %v1671_v44 }
 0x347   :  { %v1541_v43 = vpop.f32.mrf.mxu3 }
 0x348   :  { %v3618_v11 = vpop.eup %3617  ;;  %v1649_v39 = vmul.f32 14.285714, %v1541_v43  ;;  %v1503_v15 = vpop.f32.mrf.mxu1 }
 0x349   :  { %v968_v50 = vmul.f32 %v3618_v11, %v966_v12  ;;  %v1652_v56 = vmul.f32 14.285714, %v1503_v15  ;;  %vm974_vm13 = vweird.f32 %v3618_v11  ;;  %v1674_v12 = vmul.f32 14.285714, %v1600_v40  ;;  %v1641_v33 = vpop.f32.mrf.mxu2 }
 0x34a   :  { %1681 = vst [vmem:[%s5694_s7 + $0x28] sm:$0xff] %v1649_v39  ;;  %vm975_vm15 = vmor %vm973_vm14, %vm974_vm13  ;;  %v1675_v43 = vmul.f32 14.285714, %v1641_v33 }
 0x34b   :  { %v969_v7 = vmul.f32 %v3618_v11, %v968_v50  ;;  %1684 = vst [vmem:[%s5694_s7 + $0x40] sm:$0xff] %v1652_v56 }
 0x34c   :  { %1706 = vst [vmem:[%s5694_s7 + $0xf0] sm:$0xff] %v1674_v12 }
 0x34d   :  { %v970_v37 = vmul.f32 0.5, %v969_v7  ;;  %1707 = vst [vmem:[%s5694_s7 + $0xf8] sm:$0xff] %v1675_v43 }
 0x34f   :  { %v971_v10 = vsub.f32 1.5, %v970_v37  ;;  %v1544_v21 = vpop.f32.mrf.mxu3 }
 0x350   :  { %v1653_v55 = vmul.f32 14.285714, %v1544_v21  ;;  %v1506_v46 = vpop.f32.mrf.mxu1 }
 0x351   :  { %v972_v48 = vmul.f32 %v3618_v11, %v971_v10  ;;  %v1656_v58 = vmul.f32 14.285714, %v1506_v46 }
 0x352   :  { %1685 = vst [vmem:[%s5694_s7 + $0x48] sm:$0xff] %v1653_v55 }
 0x353   :  { %v976_v16 = vsel %vm975_vm15, %v3618_v11, %v972_v48  ;;  %1688 = vst [vmem:[%s5694_s7 + $0x60] sm:$0xff] %v1656_v58 }
 0x354   :  { %v977_v6 = vmul.f32 %v976_v16, %v4610_v51  ;;  %v978_v57 = vmul.f32 %v976_v16, %v4615_v36  ;;  %v765_v51 = vsel %vm4562_vm5, %v749_v0, %v3620_v8 }
 0x356   :  { %v994_v36 = vsel %vm981_vm1, %v977_v6, %v764_v49  ;;  %v995_v19 = vsel %vm981_vm1, %v978_v57, %v765_v51 }
 0x357   :  { %998 = vst.msk [vmem:[%s5692_s8 + $0x10] sm:$0xff] %vm108_vm0, %v994_v36  ;;  %v1547_v32 = vpop.f32.mrf.mxu3 }
 0x358   :  { %999 = vst.msk [vmem:[%s5692_s8 + $0x18] sm:$0xff] %vm108_vm0, %v995_v19  ;;  %v1657_v54 = vmul.f32 14.285714, %v1547_v32  ;;  %v1509_v30 = vpop.f32.mrf.mxu1 }
 0x359   :  { %v1660_v26 = vmul.f32 14.285714, %v1509_v30 }
 0x35a   :  { %1689 = vst [vmem:[%s5694_s7 + $0x68] sm:$0xff] %v1657_v54 }
 0x35b   :  { %1692 = vst [vmem:[%s5694_s7 + $0x80] sm:$0xff] %v1660_v26 }
 0x35f   :  { %v1550_v11 = vpop.f32.mrf.mxu3 }
 0x360   :  { %v1661_v39 = vmul.f32 14.285714, %v1550_v11  ;;  %v1512_v15 = vpop.f32.mrf.mxu1 }
 0x361   :  { %v1664_v52 = vmul.f32 14.285714, %v1512_v15 }
 0x362   :  { %1693 = vst [vmem:[%s5694_s7 + $0x88] sm:$0xff] %v1661_v39 }
 0x363   :  { %1696 = vst [vmem:[%s5694_s7 + $0xa0] sm:$0xff] %v1664_v52 }
 0x367   :  { %v1553_v50 = vpop.f32.mrf.mxu3 }
 0x368   :  { %v1665_v56 = vmul.f32 14.285714, %v1553_v50  ;;  %v1515_v3 = vpop.f32.mrf.mxu1 }
 0x369   :  { %v1668_v34 = vmul.f32 14.285714, %v1515_v3 }
 0x36a   :  { %1697 = vst [vmem:[%s5694_s7 + $0xa8] sm:$0xff] %v1665_v56 }
 0x36b   :  { %1700 = vst [vmem:[%s5694_s7 + $0xc0] sm:$0xff] %v1668_v34 }
 0x36f   :  { %v1556_v7 = vpop.f32.mrf.mxu3 }
 0x370   :  { %v1669_v45 = vmul.f32 14.285714, %v1556_v7  ;;  %v1518_v1 = vpop.f32.mrf.mxu1 }
 0x371   :  { %v1672_v13 = vmul.f32 14.285714, %v1518_v1 }
 0x372   :  { %1701 = vst [vmem:[%s5694_s7 + $0xc8] sm:$0xff] %v1669_v45 }
 0x373   :  { %1704 = vst [vmem:[%s5694_s7 + $0xe0] sm:$0xff] %v1672_v13 }
 0x377   :  { %v1559_v37 = vpop.f32.mrf.mxu3 }
 0x378   :  { %v1673_v10 = vmul.f32 14.285714, %v1559_v37 }
 0x37a   :  { %1705 = vst [vmem:[%s5694_s7 + $0xe8] sm:$0xff] %v1673_v10 }
 0x37b LB: > { %v5705_v5 = vld [vmem:[#allocation7_spill] sm:$0xff]  ;;  %1881 = vmatpush.msra.mxu1 %v4192_v31  ;;  %s3345_s11 = sshll.u32 %s3631_s10, 7  ;;  %v5706_v27 = vld [vmem:[#allocation6_spill] sm:$0xff]  ;;  %v5707_v4 = vld [vmem:[#allocation5_spill] sm:$0xff]  ;;  %vm1755_vm0 = vcmask 261120   ;;  %s1713_s10 = sadd.s32 1, %s3631_s10   ;;  %s3631_s10 = sphi %s4752_s10, %s1713_s10  }
 0x37c   : > { %1816 = vmatpush.msra.mxu0 %v5705_v5  ;;  %s1715_s12 = sshra.s32 %s3345_s11, 7  ;;  %v5708_v9 = vld [vmem:[#allocation9_spill] sm:$0xff]  ;;  %v5709_v24 = vld [vmem:[#allocation8_spill] sm:$0xff]  ;;  %p1710_p0 = scmp.ge.s32.totalorder %s1713_s10, 2  }
 0x37d   : > { %1882 = vmatpush.msra.mxu1 %v4189_v41  ;;  %s4762_s13 = sshll.u32 %s1715_s12, 3  ;;  %s5224_s4 = smov (%p1710_p0), 0  }
 0x37e   : > { %1817 = vmatpush.msra.mxu0 %v5706_v27  ;;  %s1718_s14 = scalar_lea.vmem [#allocation2], %s4762_s13  ;;  %s2446_s15 = scalar_lea.vmem [#allocation3], %s4762_s13 }
 0x37f   : > { %1883 = vmatpush.msra.mxu1 %v5708_v9  ;;  %v1719_v21 = vld [vmem:[%s1718_s14] sm:$0xff]  ;;  %s2460_s5 = scalar_lea.vmem %s5694_s7, %s4762_s13 }
 0x380   : > { %1818 = vmatpush.msra.mxu0 %v5707_v4  ;;  %1723 = vxpose.xlu0.b32.start [1/4] (short) %v1719_v21, 128  ;;  %v1720_v22 = vld [vmem:[%s1718_s14 + $0x20] sm:$0xff] }
 0x381   : > { %1884 = vmatpush.msra.mxu1 %v5709_v24  ;;  %v1721_v55 = vld [vmem:[%s1718_s14 + $0x40] sm:$0xff] }
 0x382   : > { %1819 = vmatpush.msra.mxu0 %v4149_v38  ;;  %v1722_v46 = vld [vmem:[%s1718_s14 + $0x60] sm:$0xff] }
 0x388   : > { %1724 = vxpose.xlu0.b32.cont [2/4] (short) %v1720_v22, 128 }
 0x390   : > { %1725 = vxpose.xlu0.b32.cont [3/4] (short) %v1721_v55, 128 }
 0x398   : > { %1726 = vxpose.xlu0.b32.end [4/4] (short) %v1722_v46, 128 }
 0x424   : > { %v1739_v0 = vpop.trf.xlu0 }
 0x425   : > { %3347 = vmatmul.msk.f32.vlgmr.msra.gmra.mxu0 %vm1755_vm0, %v1739_v0  ;;  %3363 = vmatmul.msk.f32.vlgmr.msra.gmra.mxu1 %vm1755_vm0, %v1739_v0 }
 0x42c   : > { %v1740_v48 = vpop.trf.xlu0 }
 0x42d   : > { %3348 = vmatmul.msk.f32.gmra.mxu0 %vm1755_vm0, %v1740_v48  ;;  %3364 = vmatmul.msk.f32.gmra.mxu1 %vm1755_vm0, %v1740_v48 }
 0x434   : > { %v1741_v58 = vpop.trf.xlu0 }
 0x435   : > { %3349 = vmatmul.msk.f32.gmra.mxu0 %vm1755_vm0, %v1741_v58  ;;  %3365 = vmatmul.msk.f32.gmra.mxu1 %vm1755_vm0, %v1741_v58 }
 0x43c   : > { %v1742_v17 = vpop.trf.xlu0 }
 0x43d   : > { %3350 = vmatmul.msk.f32.gmra.mxu0 %vm1755_vm0, %v1742_v17  ;;  %3366 = vmatmul.msk.f32.gmra.mxu1 %vm1755_vm0, %v1742_v17 }
 0x444   : > { %v1743_v44 = vpop.trf.xlu0 }
 0x445   : > { %3351 = vmatmul.msk.f32.gmra.mxu0 %vm1755_vm0, %v1743_v44  ;;  %3367 = vmatmul.msk.f32.gmra.mxu1 %vm1755_vm0, %v1743_v44 }
 0x44c   : > { %v1744_v16 = vpop.trf.xlu0 }
 0x44d   : > { %3352 = vmatmul.msk.f32.gmra.mxu0 %vm1755_vm0, %v1744_v16  ;;  %3368 = vmatmul.msk.f32.gmra.mxu1 %vm1755_vm0, %v1744_v16 }
 0x454   : > { %v1745_v40 = vpop.trf.xlu0 }
 0x455   : > { %3353 = vmatmul.msk.f32.gmra.mxu0 %vm1755_vm0, %v1745_v40  ;;  %3369 = vmatmul.msk.f32.gmra.mxu1 %vm1755_vm0, %v1745_v40 }
 0x45c   : > { %v1746_v6 = vpop.trf.xlu0 }
 0x45d   : > { %3354 = vmatmul.msk.f32.gmra.mxu0 %vm1755_vm0, %v1746_v6  ;;  %3370 = vmatmul.msk.f32.gmra.mxu1 %vm1755_vm0, %v1746_v6 }
 0x464   : > { %v1747_v57 = vpop.trf.xlu0 }
 0x465   : > { %3355 = vmatmul.msk.f32.gmra.mxu0 %vm1755_vm0, %v1747_v57  ;;  %3371 = vmatmul.msk.f32.gmra.mxu1 %vm1755_vm0, %v1747_v57 }
 0x46c   : > { %v1748_v12 = vpop.trf.xlu0 }
 0x46d   : > { %3356 = vmatmul.msk.f32.gmra.mxu0 %vm1755_vm0, %v1748_v12  ;;  %3372 = vmatmul.msk.f32.gmra.mxu1 %vm1755_vm0, %v1748_v12 }
 0x474   : > { %v1749_v42 = vpop.trf.xlu0 }
 0x475   : > { %3357 = vmatmul.msk.f32.gmra.mxu0 %vm1755_vm0, %v1749_v42  ;;  %3373 = vmatmul.msk.f32.gmra.mxu1 %vm1755_vm0, %v1749_v42 }
 0x47c   : > { %v1750_v49 = vpop.trf.xlu0 }
 0x47d   : > { %3358 = vmatmul.msk.f32.gmra.mxu0 %vm1755_vm0, %v1750_v49  ;;  %3374 = vmatmul.msk.f32.gmra.mxu1 %vm1755_vm0, %v1750_v49 }
 0x484   : > { %v1751_v8 = vpop.trf.xlu0 }
 0x485   : > { %3359 = vmatmul.msk.f32.gmra.mxu0 %vm1755_vm0, %v1751_v8  ;;  %3375 = vmatmul.msk.f32.gmra.mxu1 %vm1755_vm0, %v1751_v8 }
 0x48c   : > { %v1752_v51 = vpop.trf.xlu0 }
 0x48d   : > { %3360 = vmatmul.msk.f32.gmra.mxu0 %vm1755_vm0, %v1752_v51  ;;  %3376 = vmatmul.msk.f32.gmra.mxu1 %vm1755_vm0, %v1752_v51 }
 0x494   : > { %v1753_v36 = vpop.trf.xlu0 }
 0x495   : > { %3361 = vmatmul.msk.f32.gmra.mxu0 %vm1755_vm0, %v1753_v36  ;;  %3377 = vmatmul.msk.f32.gmra.mxu1 %vm1755_vm0, %v1753_v36 }
 0x49c   : > { %v1754_v19 = vpop.trf.xlu0 }
 0x49d   : > { %3362 = vmatmul.msk.f32.gmra.mxu0 %vm1755_vm0, %v1754_v19  ;;  %3378 = vmatmul.msk.f32.gmra.mxu1 %vm1755_vm0, %v1754_v19 }
 0x4a2   : > { %v4801_v32 = vpop.f32.mrf.mxu0  ;;  %v4803_v54 = vpop.f32.mrf.mxu1 }
 0x4aa   : > { %v4805_v30 = vpop.f32.mrf.mxu0  ;;  %v4807_v26 = vpop.f32.mrf.mxu1 }
 0x4b2   : > { %v4809_v33 = vpop.f32.mrf.mxu0  ;;  %v4811_v43 = vpop.f32.mrf.mxu1 }
 0x4ba   : > { %v4813_v11 = vpop.f32.mrf.mxu0  ;;  %v4815_v39 = vpop.f32.mrf.mxu1 }
 0x4bb   : > { %v1943_v19 = vmax.f32 %v4813_v11, %v4815_v39 }
 0x4c2   : > { %v4817_v15 = vpop.f32.mrf.mxu0  ;;  %v4819_v52 = vpop.f32.mrf.mxu1 }
 0x4ca   : > { %v4821_v50 = vpop.f32.mrf.mxu0  ;;  %v4823_v56 = vpop.f32.mrf.mxu1 }
 0x4cb   : > { %v1949_v3 = vmax.f32 %v4821_v50, %v4823_v56 }
 0x4cd   : > { %1950 = vmax.xlane.f32.xlu2 %v1949_v3 }
 0x4d2   : > { %v4827_v34 = vpop.f32.mrf.mxu0  ;;  %v4829_v7 = vpop.f32.mrf.mxu1 }
 0x4d3   : > { %v1952_v45 = vmax.f32 %v4827_v34, %v4829_v7 }
 0x4d5   : > { %1953 = vmax.xlane.f32.xlu1 %v1952_v45 }
 0x4da   : > { %v4833_v1 = vpop.f32.mrf.mxu0  ;;  %v4835_v13 = vpop.f32.mrf.mxu1 }
 0x4db   : > { %v1955_v37 = vmax.f32 %v4833_v1, %v4835_v13 }
 0x4dd   : > { %1956 = vmax.xlane.f32.xlu0 %v1955_v37 }
 0x4e2   : > { %v4839_v10 = vpop.f32.mrf.mxu0  ;;  %v4841_v21 = vpop.f32.mrf.mxu1 }
 0x4e3   : > { %v1958_v22 = vmax.f32 %v4839_v10, %v4841_v21 }
 0x4e5   : > { %1959 = vmax.xlane.f32.xlu2 %v1958_v22 }
 0x4ea   : > { %v1848_v55 = vpop.f32.mrf.mxu0  ;;  %v1913_v46 = vpop.f32.mrf.mxu1 }
 0x4eb   : > { %v1961_v0 = vmax.f32 %v1848_v55, %v1913_v46 }
 0x4ed   : > { %1962 = vmax.xlane.f32.xlu1 %v1961_v0  ;;  %v1940_v0 = vmax.f32 %v4809_v33, %v4811_v43 }
 0x4f2   : > { %v1851_v48 = vpop.f32.mrf.mxu0  ;;  %v1916_v58 = vpop.f32.mrf.mxu1 }
 0x4f3   : > { %v1964_v17 = vmax.f32 %v1851_v48, %v1916_v58 }
 0x4f5   : > { %1965 = vmax.xlane.f32.xlu2 %v1964_v17  ;;  %v1937_v17 = vmax.f32 %v4805_v30, %v4807_v26 }
 0x4fa   : > { %v4845_v44 = vpop.f32.mrf.mxu0  ;;  %v4847_v16 = vpop.f32.mrf.mxu1 }
 0x4fb   : > { %v1967_v40 = vmax.f32 %v4845_v44, %v4847_v16 }
 0x4fd   : > { %1968 = vmax.xlane.f32.xlu1 %v1967_v40  ;;  %v1946_v40 = vmax.f32 %v4817_v15, %v4819_v52 }
 0x502   : > { %v4851_v6 = vpop.f32.mrf.mxu0  ;;  %v4853_v57 = vpop.f32.mrf.mxu1 }
 0x503   : > { %v1970_v12 = vmax.f32 %v4851_v6, %v4853_v57 }
 0x505   : > { %1971 = vmax.xlane.f32.xlu2 %v1970_v12  ;;  %v1934_v12 = vmax.f32 %v4801_v32, %v4803_v54 }
 0x50a   : > { %v4857_v42 = vpop.f32.mrf.mxu0  ;;  %v4859_v49 = vpop.f32.mrf.mxu1 }
 0x50b   : > { %v1973_v8 = vmax.f32 %v4857_v42, %v4859_v49 }
 0x50d   : > { %1974 = vmax.xlane.f32.xlu2 %v1973_v8 }
 0x512   : > { %v4863_v51 = vpop.f32.mrf.mxu0  ;;  %v4865_v36 = vpop.f32.mrf.mxu1 }
 0x513   : > { %v1976_v3 = vmax.f32 %v4863_v51, %v4865_v36 }
 0x515   : > { %1944 = vmax.xlane.f32.xlu2 %v1943_v19  ;;  %1977 = vmax.xlane.f32.xlu1 %v1976_v3  ;;  %v4888_v3 = vadd.s32 128, %v4554_v35 }
 0x51a   : > { %v4871_v45 = vpop.f32.mrf.mxu0  ;;  %v4873_v37 = vpop.f32.mrf.mxu1 }
 0x51b   : > { %v1979_v22 = vmax.f32 %v4871_v45, %v4873_v37 }
 0x51d   : > { %1941 = vmax.xlane.f32.xlu2 %v1940_v0  ;;  %1980 = vmax.xlane.f32.xlu1 %v1979_v22 }
 0x525   : > { %1938 = vmax.xlane.f32.xlu2 %v1937_v17  ;;  %1947 = vmax.xlane.f32.xlu1 %v1946_v40 }
 0x52d   : > { %1935 = vmax.xlane.f32.xlu2 %v1934_v12 }
 0x540   : > { %v1951_v8 = vpop.xlane.xlu2 %1950 }
 0x541   : > { %vm1993_vm13 = vcmp.ge.f32.partialorder %v4821_v50, %v1951_v8  ;;  %vm1994_vm14 = vcmp.ge.f32.partialorder %v4823_v56, %v1951_v8 }
 0x548   : > { %v4885_v19 = vpop.xlane.xlu1 %1953 }
 0x558   : > { %v4890_v0 = vpop.xlane.xlu2 %1959 }
 0x560   : > { %v1963_v22 = vpop.xlane.xlu1 %1962 }
 0x561   : > { %vm2001_vm2 = vcmp.ge.f32.partialorder %v1848_v55, %v1963_v22  ;;  %vm2002_vm3 = vcmp.ge.f32.partialorder %v1913_v46, %v1963_v22  ;;  %v1957_v46 = vpop.xlane.xlu0 %1956 }
 0x562   : > { %v2033_v4 = vsel %vm2001_vm2, %v4554_v35, 256  ;;  %v2034_v17 = vsel %vm2002_vm3, %v4888_v3, 256  ;;  %vm1997_vm1 = vcmp.ge.f32.partialorder %v4833_v1, %v1957_v46  ;;  %vm1998_vm8 = vcmp.ge.f32.partialorder %v4835_v13, %v1957_v46 }
 0x563   : > { %vm2191_vm4 = vcmp.lt.s32.totalorder %v2033_v4, %v2034_v17 }
 0x564   : > { %v4894_v40 = vsel %vm2191_vm4, %v2033_v4, %v2034_v17 }
 0x565   : > { %v2194_v12 = vshra.s32 %v4894_v40, 16 }
 0x567   : > { %v4897_v5 = vcvt.s32.f32 %v2194_v12 }
 0x568   : > { %v1966_v9 = vpop.xlane.xlu2 %1965 }
 0x569   : > { %vm2003_vm6 = vcmp.ge.f32.partialorder %v1851_v48, %v1966_v9  ;;  %vm2004_vm7 = vcmp.ge.f32.partialorder %v1916_v58, %v1966_v9  ;;  %2197 = vmin.xlane.f32.xlu2 %v4897_v5  ;;  %v2029_v9 = vsel %vm1997_vm1, %v4554_v35, 256 }
 0x56a   : > { %v2035_v24 = vsel %vm2003_vm6, %v4554_v35, 256  ;;  %v2036_v55 = vsel %vm2004_vm7, %v4888_v3, 256 }
 0x56b   : > { %vm2207_vm5 = vcmp.lt.s32.totalorder %v2035_v24, %v2036_v55 }
 0x56c   : > { %v4902_v22 = vsel %vm2207_vm5, %v2035_v24, %v2036_v55  ;;  %v2030_v24 = vsel %vm1998_vm8, %v4888_v3, 256 }
 0x56d   : > { %v2210_v4 = vshra.s32 %v4902_v22, 16  ;;  %vm2159_vm12 = vcmp.lt.s32.totalorder %v2029_v9, %v2030_v24 }
 0x56f   : > { %v4907_v17 = vcvt.s32.f32 %v2210_v4 }
 0x570   : > { %v1969_v48 = vpop.xlane.xlu1 %1968 }
 0x571   : > { %vm2005_vm9 = vcmp.ge.f32.partialorder %v4845_v44, %v1969_v48  ;;  %vm2006_vm10 = vcmp.ge.f32.partialorder %v4847_v16, %v1969_v48  ;;  %2213 = vmin.xlane.f32.xlu1 %v4907_v17  ;;  %v4923_v16 = vsel %vm2159_vm12, %v2029_v9, %v2030_v24  ;;  %v2025_v48 = vsel %vm1993_vm13, %v4554_v35, 256 }
 0x572   : > { %v2037_v58 = vsel %vm2005_vm9, %v4554_v35, 256  ;;  %v2038_v12 = vsel %vm2006_vm10, %v4888_v3, 256  ;;  %v2162_v50 = vshra.s32 %v4923_v16, 16  ;;  %vm1999_vm10 = vcmp.ge.f32.partialorder %v4839_v10, %v4890_v0 }
 0x573   : > { %vm2223_vm11 = vcmp.lt.s32.totalorder %v2037_v58, %v2038_v12 }
 0x574   : > { %v4916_v1 = vsel %vm2223_vm11, %v2037_v58, %v2038_v12  ;;  %v2026_v58 = vsel %vm1994_vm14, %v4888_v3, 256  ;;  %vm2000_vm11 = vcmp.ge.f32.partialorder %v4841_v21, %v4890_v0 }
 0x575   : > { %v2226_v13 = vshra.s32 %v4916_v1, 16  ;;  %vm2127_vm4 = vcmp.lt.s32.totalorder %v2025_v48, %v2026_v58 }
 0x576   : > { %v4944_v24 = vsel %vm2127_vm4, %v2025_v48, %v2026_v58 }
 0x577   : > { %v4919_v55 = vcvt.s32.f32 %v2226_v13 }
 0x578   : > { %v1972_v44 = vpop.xlane.xlu2 %1971 }
 0x579   : > { %vm2007_vm15 = vcmp.ge.f32.partialorder %v4851_v6, %v1972_v44  ;;  %vm2008_vm2 = vcmp.ge.f32.partialorder %v4853_v57, %v1972_v44  ;;  %2229 = vmin.xlane.f32.xlu2 %v4919_v55  ;;  %v4938_v57 = vcvt.s32.f32 %v2162_v50 }
 0x57a   : > { %v2039_v46 = vsel %vm2007_vm15, %v4554_v35, 256  ;;  %v2040_v4 = vsel %vm2008_vm2, %v4888_v3, 256  ;;  %vm1995_vm2 = vcmp.ge.f32.partialorder %v4827_v34, %v4885_v19 }
 0x57b   : > { %vm2239_vm3 = vcmp.lt.s32.totalorder %v2039_v46, %v2040_v4 }
 0x57c   : > { %v4933_v56 = vsel %vm2239_vm3, %v2039_v46, %v2040_v4  ;;  %v2130_v46 = vshra.s32 %v4944_v24, 16  ;;  %vm1996_vm3 = vcmp.ge.f32.partialorder %v4829_v7, %v4885_v19 }
 0x57d   : > { %v2242_v8 = vshra.s32 %v4933_v56, 16 }
 0x57e   : > { %v4954_v50 = vcvt.s32.f32 %v2130_v46  ;;  %v2032_v46 = vsel %vm2000_vm11, %v4888_v3, 256 }
 0x57f   : > { %v4936_v6 = vcvt.s32.f32 %v2242_v8 }
 0x580   : > { %v1975_v9 = vpop.xlane.xlu2 %1974 }
 0x581   : > { %vm2009_vm6 = vcmp.ge.f32.partialorder %v4857_v42, %v1975_v9  ;;  %vm2010_vm7 = vcmp.ge.f32.partialorder %v4859_v49, %v1975_v9  ;;  %2245 = vmin.xlane.f32.xlu1 %v4936_v6  ;;  %2165 = vmin.xlane.f32.xlu2 %v4938_v57 }
 0x582   : > { %v2041_v12 = vsel %vm2009_vm6, %v4554_v35, 256  ;;  %v2042_v13 = vsel %vm2010_vm7, %v4888_v3, 256 }
 0x583   : > { %vm2255_vm5 = vcmp.lt.s32.totalorder %v2041_v12, %v2042_v13 }
 0x584   : > { %v4948_v44 = vsel %vm2255_vm5, %v2041_v12, %v2042_v13  ;;  %v2031_v13 = vsel %vm1999_vm10, %v4554_v35, 256 }
 0x585   : > { %v2258_v4 = vshra.s32 %v4948_v44, 16  ;;  %vm2175_vm15 = vcmp.lt.s32.totalorder %v2031_v13, %v2032_v46 }
 0x587   : > { %v4952_v42 = vcvt.s32.f32 %v2258_v4 }
 0x588   : > { %v1978_v49 = vpop.xlane.xlu1 %1977  ;;  %v1945_v12 = vpop.xlane.xlu2 %1944 }
 0x589   : > { %vm2011_vm1 = vcmp.ge.f32.partialorder %v4863_v51, %v1978_v49  ;;  %vm2012_vm8 = vcmp.ge.f32.partialorder %v4865_v36, %v1978_v49  ;;  %2261 = vmin.xlane.f32.xlu1 %v4952_v42  ;;  %2133 = vmin.xlane.f32.xlu2 %v4954_v50  ;;  %vm1989_vm4 = vcmp.ge.f32.partialorder %v4813_v11, %v1945_v12 }
 0x58a   : > { %v2043_v48 = vsel %vm2011_vm1, %v4554_v35, 256  ;;  %v2044_v58 = vsel %vm2012_vm8, %v4888_v3, 256  ;;  %vm1990_vm6 = vcmp.ge.f32.partialorder %v4815_v39, %v1945_v12  ;;  %v2021_v11 = vsel %vm1989_vm4, %v4554_v35, 256 }
 0x58b   : > { %vm2271_vm9 = vcmp.lt.s32.totalorder %v2043_v48, %v2044_v58  ;;  %v2022_v39 = vsel %vm1990_vm6, %v4888_v3, 256 }
 0x58c   : > { %v4962_v8 = vsel %vm2271_vm9, %v2043_v48, %v2044_v58  ;;  %v4989_v48 = vsel %vm2175_vm15, %v2031_v13, %v2032_v46  ;;  %v2027_v58 = vsel %vm1995_vm2, %v4554_v35, 256  ;;  %vm2095_vm9 = vcmp.lt.s32.totalorder %v2021_v11, %v2022_v39 }
 0x58d   : > { %v2274_v9 = vshra.s32 %v4962_v8, 16  ;;  %v2178_v19 = vshra.s32 %v4989_v48, 16  ;;  %v5012_v46 = vsel %vm2095_vm9, %v2021_v11, %v2022_v39 }
 0x58f   : > { %v4969_v51 = vcvt.s32.f32 %v2274_v9  ;;  %v2028_v9 = vsel %vm1996_vm3, %v4888_v3, 256 }
 0x590   : > { %v1981_v36 = vpop.xlane.xlu1 %1980  ;;  %vm2143_vm8 = vcmp.lt.s32.totalorder %v2027_v58, %v2028_v9 }
 0x591   : > { %vm2013_vm12 = vcmp.ge.f32.partialorder %v4871_v45, %v1981_v36  ;;  %vm2014_vm13 = vcmp.ge.f32.partialorder %v4873_v37, %v1981_v36  ;;  %2277 = vmin.xlane.f32.xlu1 %v4969_v51  ;;  %v1942_v37 = vpop.xlane.xlu2 %1941  ;;  %v5010_v13 = vsel %vm2143_vm8, %v2027_v58, %v2028_v9 }
 0x592   : > { %v2045_v4 = vsel %vm2013_vm12, %v4554_v35, 256  ;;  %v2046_v10 = vsel %vm2014_vm13, %v4888_v3, 256  ;;  %vm1987_vm10 = vcmp.ge.f32.partialorder %v4809_v33, %v1942_v37  ;;  %vm1988_vm11 = vcmp.ge.f32.partialorder %v4811_v43, %v1942_v37 }
 0x593   : > { %vm2287_vm14 = vcmp.lt.s32.totalorder %v2045_v4, %v2046_v10  ;;  %v2146_v33 = vshra.s32 %v5010_v13, 16  ;;  %v2098_v43 = vshra.s32 %v5012_v46, 16 }
 0x594   : > { %v4978_v49 = vsel %vm2287_vm14, %v2045_v4, %v2046_v10  ;;  %v2019_v4 = vsel %vm1987_vm10, %v4554_v35, 256  ;;  %v2020_v10 = vsel %vm1988_vm11, %v4888_v3, 256 }
 0x595   : > { %v2290_v21 = vshra.s32 %v4978_v49, 16  ;;  %vm2079_vm12 = vcmp.lt.s32.totalorder %v2019_v4, %v2020_v10  ;;  %v5022_v37 = vcvt.s32.f32 %v2146_v33 }
 0x596   : > { %v5026_v58 = vsel %vm2079_vm12, %v2019_v4, %v2020_v10 }
 0x597   : > { %v4987_v45 = vcvt.s32.f32 %v2290_v21  ;;  %v2082_v39 = vshra.s32 %v5026_v58, 16 }
 0x598   : > { %v1948_v0 = vpop.xlane.xlu1 %1947 }
 0x599   : > { %vm1991_vm7 = vcmp.ge.f32.partialorder %v4817_v15, %v1948_v0  ;;  %vm1992_vm5 = vcmp.ge.f32.partialorder %v4819_v52, %v1948_v0  ;;  %2293 = vmin.xlane.f32.xlu1 %v4987_v45  ;;  %v5006_v52 = vcvt.s32.f32 %v2178_v19  ;;  %v1939_v21 = vpop.xlane.xlu2 %1938  ;;  %v5024_v0 = vcvt.s32.f32 %v2098_v43 }
 0x59a   : > { %v2023_v34 = vsel %vm1991_vm7, %v4554_v35, 256  ;;  %v2024_v7 = vsel %vm1992_vm5, %v4888_v3, 256  ;;  %vm1985_vm13 = vcmp.ge.f32.partialorder %v4805_v30, %v1939_v21  ;;  %vm1986_vm14 = vcmp.ge.f32.partialorder %v4807_v26, %v1939_v21 }
 0x59b   : > { %vm2111_vm1 = vcmp.lt.s32.totalorder %v2023_v34, %v2024_v7  ;;  %v2017_v9 = vsel %vm1985_vm13, %v4554_v35, 256  ;;  %v2018_v11 = vsel %vm1986_vm14, %v4888_v3, 256  ;;  %v5035_v30 = vcvt.s32.f32 %v2082_v39 }
 0x59c   : > { %v5001_v12 = vsel %vm2111_vm1, %v2023_v34, %v2024_v7  ;;  %vm2063_vm15 = vcmp.lt.s32.totalorder %v2017_v9, %v2018_v11  ;;  %v2193_v21 = vand.u32 65535, %v4894_v40 }
 0x59d   : > { %v2114_v15 = vshra.s32 %v5001_v12, 16  ;;  %v5037_v26 = vsel %vm2063_vm15, %v2017_v9, %v2018_v11 }
 0x59e   : > { %v2195_v43 = vcvt.s32.f32 %v2193_v21 }
 0x59f   : > { %v5008_v36 = vcvt.s32.f32 %v2114_v15  ;;  %v2066_v15 = vshra.s32 %v5037_v26, 16 }
 0x5a1   : > { %2181 = vmin.xlane.f32.xlu1 %v5006_v52  ;;  %2117 = vmin.xlane.f32.xlu2 %v5008_v36  ;;  %v1936_v34 = vpop.xlane.xlu2 %1935  ;;  %v5043_v4 = vcvt.s32.f32 %v2066_v15 }
 0x5a2   : > { %vm1983_vm2 = vcmp.ge.f32.partialorder %v4801_v32, %v1936_v34  ;;  %vm1984_vm3 = vcmp.ge.f32.partialorder %v4803_v54, %v1936_v34  ;;  %v2161_v34 = vand.u32 65535, %v4923_v16 }
 0x5a3   : > { %v2015_v7 = vsel %vm1983_vm2, %v4554_v35, 256  ;;  %v2016_v19 = vsel %vm1984_vm3, %v4888_v3, 256 }
 0x5a4   : > { %vm2047_vm4 = vcmp.lt.s32.totalorder %v2015_v7, %v2016_v19  ;;  %v2163_v15 = vcvt.s32.f32 %v2161_v34 }
 0x5a5   : > { %v5045_v10 = vsel %vm2047_vm4, %v2015_v7, %v2016_v19 }
 0x5a6   : > { %v2050_v32 = vshra.s32 %v5045_v10, 16 }
 0x5a8   : > { %v5049_v54 = vcvt.s32.f32 %v2050_v32  ;;  %v2129_v32 = vand.u32 65535, %v4944_v24 }
 0x5a9   : > { %2149 = vmin.xlane.f32.xlu1 %v5022_v37  ;;  %2101 = vmin.xlane.f32.xlu2 %v5024_v0 }
 0x5aa   : > { %v2131_v16 = vcvt.s32.f32 %v2129_v32 }
 0x5b1   : > { %2085 = vmin.xlane.f32.xlu2 %v5035_v30 }
 0x5b9   : > { %2069 = vmin.xlane.f32.xlu2 %v5043_v4 }
 0x5c1   : > { %2053 = vmin.xlane.f32.xlu2 %v5049_v54 }
 0x5dc   : > { %v5053_v33 = vpop.xlane.xlu2 %2197 }
 0x5dd   : > { %vm2199_vm6 = vcmp.eq.f32.partialorder %v4897_v5, %v5053_v33  ;;  %v2257_v5 = vand.u32 65535, %v4948_v44  ;;  %v2273_v44 = vand.u32 65535, %v4962_v8 }
 0x5de   : > { %v2200_v9 = vsel %vm2199_vm6, %v2195_v43, inf }
 0x5df   : > { %2201 = vmin.xlane.f32.xlu2 %v2200_v9  ;;  %v2259_v43 = vcvt.s32.f32 %v2257_v5  ;;  %v2275_v24 = vcvt.s32.f32 %v2273_v44  ;;  %v2209_v44 = vand.u32 65535, %v4902_v22 }
 0x5e4   : > { %v5057_v11 = vpop.xlane.xlu1 %2213 }
 0x5e5   : > { %vm2215_vm13 = vcmp.eq.f32.partialorder %v4907_v17, %v5057_v11 }
 0x5ec   : > { %v5059_v39 = vpop.xlane.xlu2 %2229 }
 0x5ed   : > { %vm2231_vm11 = vcmp.eq.f32.partialorder %v4919_v55, %v5059_v39 }
 0x5f4   : > { %v5062_v7 = vpop.xlane.xlu1 %2245  ;;  %v5064_v19 = vpop.xlane.xlu2 %2165 }
 0x5f5   : > { %vm2167_vm7 = vcmp.eq.f32.partialorder %v4938_v57, %v5064_v19  ;;  %vm2247_vm10 = vcmp.eq.f32.partialorder %v4936_v6, %v5062_v7 }
 0x5f6   : > { %v2168_v40 = vsel %vm2167_vm7, %v2163_v15, inf }
 0x5f7   : > { %2169 = vmin.xlane.f32.xlu2 %v2168_v40 }
 0x5fc   : > { %v5070_v21 = vpop.xlane.xlu1 %2261  ;;  %v5072_v9 = vpop.xlane.xlu2 %2133 }
 0x5fd   : > { %vm2263_vm5 = vcmp.eq.f32.partialorder %v4952_v42, %v5070_v21  ;;  %vm2135_vm1 = vcmp.eq.f32.partialorder %v4954_v50, %v5072_v9  ;;  %v2289_v42 = vand.u32 65535, %v4978_v49  ;;  %v2241_v50 = vand.u32 65535, %v4933_v56 }
 0x5fe   : > { %v2264_v27 = vsel %vm2263_vm5, %v2259_v43, inf  ;;  %v2136_v57 = vsel %vm2135_vm1, %v2131_v16, inf  ;;  %v2225_v49 = vand.u32 65535, %v4916_v1  ;;  %v2097_v43 = vand.u32 65535, %v5012_v46 }
 0x5ff   : > { %2265 = vmin.xlane.f32.xlu1 %v2264_v27  ;;  %2137 = vmin.xlane.f32.xlu2 %v2136_v57  ;;  %v2291_v5 = vcvt.s32.f32 %v2289_v42  ;;  %v2211_v46 = vcvt.s32.f32 %v2209_v44 }
 0x600   : > { %v2227_v16 = vcvt.s32.f32 %v2225_v49  ;;  %v2099_v57 = vcvt.s32.f32 %v2097_v43  ;;  %v2081_v49 = vand.u32 65535, %v5026_v58 }
 0x602   : > { %v2232_v56 = vsel %vm2231_vm11, %v2227_v16, inf  ;;  %v2049_v16 = vand.u32 65535, %v5045_v10 }
 0x604   : > { %v5079_v34 = vpop.xlane.xlu1 %2277 }
 0x605   : > { %vm2279_vm8 = vcmp.eq.f32.partialorder %v4969_v51, %v5079_v34  ;;  %v2243_v51 = vcvt.s32.f32 %v2241_v50 }
 0x606   : > { %v2280_v15 = vsel %vm2279_vm8, %v2275_v24, inf  ;;  %v2216_v24 = vsel %vm2215_vm13, %v2211_v46, inf }
 0x607   : > { %2281 = vmin.xlane.f32.xlu1 %v2280_v15  ;;  %v2248_v32 = vsel %vm2247_vm10, %v2243_v51, inf  ;;  %v2177_v15 = vand.u32 65535, %v4989_v48  ;;  %v2145_v48 = vand.u32 65535, %v5010_v13  ;;  %v2113_v51 = vand.u32 65535, %v5001_v12 }
 0x608   : > { %v2083_v13 = vcvt.s32.f32 %v2081_v49  ;;  %v2051_v12 = vcvt.s32.f32 %v2049_v16  ;;  %v2220_v49 = vcvt.f32.s32 %v5057_v11 }
 0x609   : > { %v2179_v22 = vcvt.s32.f32 %v2177_v15  ;;  %v2268_v15 = vcvt.f32.s32 %v5070_v21 }
 0x60a   : > { %v2221_v16 = vshll.u32 %v2220_v49, 16 }
 0x60c   : > { %v5084_v40 = vpop.xlane.xlu1 %2293 }
 0x60d   : > { %vm2295_vm9 = vcmp.eq.f32.partialorder %v4987_v45, %v5084_v40  ;;  %v2300_v58 = vcvt.f32.s32 %v5084_v40  ;;  %v2269_v40 = vshll.u32 %v2268_v15, 16 }
 0x60e   : > { %v2296_v27 = vsel %vm2295_vm9, %v2291_v5, inf }
 0x60f   : > { %2297 = vmin.xlane.f32.xlu1 %v2296_v27  ;;  %v2301_v44 = vshll.u32 %v2300_v58, 16 }
 0x614   : > { %v5091_v8 = vpop.xlane.xlu2 %2117  ;;  %v5106_v55 = vpop.xlane.xlu1 %2181 }
 0x615   : > { %vm2183_vm14 = vcmp.eq.f32.partialorder %v5006_v52, %v5106_v55  ;;  %vm2119_vm3 = vcmp.eq.f32.partialorder %v5008_v36, %v5091_v8  ;;  %v2188_v58 = vcvt.f32.s32 %v5106_v55 }
 0x616   : > { %v2184_v17 = vsel %vm2183_vm14, %v2179_v22, inf }
 0x617   : > { %2249 = vmin.xlane.f32.xlu1 %v2248_v32 }
 0x61c   : > { %v5097_v45 = vpop.xlane.xlu2 %2101  ;;  %v5116_v50 = vpop.xlane.xlu1 %2149 }
 0x61d   : > { %vm2103_vm12 = vcmp.eq.f32.partialorder %v5024_v0, %v5097_v45  ;;  %v2065_v0 = vand.u32 65535, %v5037_v26  ;;  %vm2151_vm2 = vcmp.eq.f32.partialorder %v5022_v37, %v5116_v50  ;;  %v2147_v26 = vcvt.s32.f32 %v2145_v48 }
 0x61e   : > { %v2104_v6 = vsel %vm2103_vm12, %v2099_v57, inf }
 0x61f   : > { %2233 = vmin.xlane.f32.xlu1 %v2232_v56  ;;  %2105 = vmin.xlane.f32.xlu2 %v2104_v6  ;;  %v2067_v5 = vcvt.s32.f32 %v2065_v0  ;;  %v2152_v52 = vsel %vm2151_vm2, %v2147_v26, inf  ;;  %v2284_v6 = vcvt.f32.s32 %v5079_v34  ;;  %v2252_v34 = vcvt.f32.s32 %v5062_v7 }
 0x620   : > { %v2236_v26 = vcvt.f32.s32 %v5059_v39 }
 0x621   : > { %v2285_v0 = vshll.u32 %v2284_v6, 16  ;;  %v2253_v21 = vshll.u32 %v2252_v34, 16 }
 0x624   : > { %v5104_v1 = vpop.xlane.xlu2 %2085 }
 0x625   : > { %vm2087_vm4 = vcmp.eq.f32.partialorder %v5035_v30, %v5104_v1 }
 0x626   : > { %v2088_v43 = vsel %vm2087_vm4, %v2083_v13, inf  ;;  %v2204_v13 = vcvt.f32.s32 %v5053_v33  ;;  %v2172_v33 = vcvt.f32.s32 %v5064_v19 }
 0x627   : > { %2217 = vmin.xlane.f32.xlu1 %v2216_v24 }
 0x628   : > { %v2173_v55 = vshll.u32 %v2172_v33, 16 }
 0x62c   : > { %v5112_v42 = vpop.xlane.xlu2 %2069 }
 0x62d   : > { %vm2071_vm15 = vcmp.eq.f32.partialorder %v5043_v4, %v5112_v42  ;;  %v2115_v4 = vcvt.s32.f32 %v2113_v51  ;;  %v2237_v51 = vshll.u32 %v2236_v26, 16  ;;  %v2108_v26 = vcvt.f32.s32 %v5097_v45 }
 0x62e   : > { %v2072_v27 = vsel %vm2071_vm15, %v2067_v5, inf }
 0x62f   : > { %2185 = vmin.xlane.f32.xlu1 %v2184_v17  ;;  %2073 = vmin.xlane.f32.xlu2 %v2072_v27  ;;  %v2120_v32 = vsel %vm2119_vm3, %v2115_v4, inf }
 0x634   : > { %v5127_v37 = vpop.xlane.xlu2 %2053 }
 0x635   : > { %vm2055_vm6 = vcmp.eq.f32.partialorder %v5049_v54, %v5127_v37  ;;  %v3640_v54 = vmov 1.0  }
 0x636   : > { %v2056_v36 = vsel %vm2055_vm6, %v2051_v12, inf }
 0x637   : > { %2153 = vmin.xlane.f32.xlu1 %v2152_v52 }
 0x63f   : > { %2121 = vmin.xlane.f32.xlu1 %v2120_v32 }
 0x647   : > { %2089 = vmin.xlane.f32.xlu1 %v2088_v43 }
 0x64f   : > { %2057 = vmin.xlane.f32.xlu1 %v2056_v36 }
 0x652   : > { %v2202_v32 = vpop.xlane.xlu2 %2201 }
 0x653   : > { %v2203_v12 = vcvt.f32.s32 %v2202_v32  ;;  %v2092_v32 = vcvt.f32.s32 %v5104_v1 }
 0x66a   : > { %v2170_v6 = vpop.xlane.xlu2 %2169 }
 0x672   : > { %v2266_v57 = vpop.xlane.xlu1 %2265  ;;  %v2138_v19 = vpop.xlane.xlu2 %2137 }
 0x673   : > { %v2267_v22 = vcvt.f32.s32 %v2266_v57  ;;  %v2205_v57 = vshll.u32 %v2204_v13, 16  ;;  %v2076_v13 = vcvt.f32.s32 %v5112_v42 }
 0x675   : > { %v2270_v27 = vadd.s32 %v2269_v40, %v2267_v22  ;;  %v2206_v11 = vadd.s32 %v2205_v57, %v2203_v12  ;;  %v2140_v22 = vcvt.f32.s32 %v5072_v9  ;;  %v2139_v40 = vcvt.f32.s32 %v2138_v19 }
 0x676   : > { %v2077_v1 = vshll.u32 %v2076_v13, 16 }
 0x677   : > { %vm2329_vm9 = vcmp.eq.s32.totalorder %v4554_v35, %v2270_v27  ;;  %vm2330_vm10 = vcmp.eq.s32.totalorder %v4888_v3, %v2270_v27  ;;  %vm2321_vm3 = vcmp.eq.s32.totalorder %v4554_v35, %v2206_v11  ;;  %vm2322_vm4 = vcmp.eq.s32.totalorder %v4888_v3, %v2206_v11 }
 0x67a   : > { %v2282_v56 = vpop.xlane.xlu1 %2281 }
 0x67b   : > { %v2283_v46 = vcvt.f32.s32 %v2282_v56 }
 0x67d   : > { %v2286_v5 = vadd.s32 %v2285_v0, %v2283_v46  ;;  %v2171_v46 = vcvt.f32.s32 %v2170_v6  ;;  %v2156_v0 = vcvt.f32.s32 %v5116_v50  ;;  %v2141_v50 = vshll.u32 %v2140_v22, 16 }
 0x67f   : > { %vm2331_vm1 = vcmp.eq.s32.totalorder %v4554_v35, %v2286_v5  ;;  %vm2332_vm8 = vcmp.eq.s32.totalorder %v4888_v3, %v2286_v5  ;;  %v2157_v5 = vshll.u32 %v2156_v0, 16 }
 0x682   : > { %v2298_v30 = vpop.xlane.xlu1 %2297 }
 0x683   : > { %v2299_v24 = vcvt.f32.s32 %v2298_v30  ;;  %v2189_v30 = vshll.u32 %v2188_v58, 16 }
 0x685   : > { %v2302_v10 = vadd.s32 %v2301_v44, %v2299_v24 }
 0x687   : > { %vm2333_vm7 = vcmp.eq.s32.totalorder %v4554_v35, %v2302_v10  ;;  %vm2334_vm5 = vcmp.eq.s32.totalorder %v4888_v3, %v2302_v10  ;;  %v2174_v10 = vadd.s32 %v2173_v55, %v2171_v46  ;;  %v2447_v46 = vld [vmem:[%s2446_s15] sm:$0xff] }
 0x688   : > { %3411 = vmatpush.xpose.msk.msra.mxu2 %vm2333_vm7, %v3640_v54  ;;  %3427 = vmatpush.xpose.msk.msra.mxu3 %vm2334_vm5, %v3640_v54 }
 0x689   : > { %vm2317_vm5 = vcmp.eq.s32.totalorder %v4554_v35, %v2174_v10 }
 0x68a   : > { %v2250_v17 = vpop.xlane.xlu1 %2249 }
 0x68b   : > { %v2251_v48 = vcvt.f32.s32 %v2250_v17 }
 0x68c   : > { %3412 = vmatpush.xpose.msk.msra.mxu2 %vm2331_vm1, %v3640_v54  ;;  %3428 = vmatpush.xpose.msk.msra.mxu3 %vm2332_vm8, %v3640_v54  ;;  %vm2318_vm1 = vcmp.eq.s32.totalorder %v4888_v3, %v2174_v10 }
 0x68d   : > { %v2254_v52 = vadd.s32 %v2253_v21, %v2251_v48  ;;  %v2124_v48 = vcvt.f32.s32 %v5091_v8  ;;  %v2142_v21 = vadd.s32 %v2141_v50, %v2139_v40  ;;  %v2109_v8 = vshll.u32 %v2108_v26, 16 }
 0x68f   : > { %vm2327_vm11 = vcmp.eq.s32.totalorder %v4554_v35, %v2254_v52  ;;  %vm2328_vm12 = vcmp.eq.s32.totalorder %v4888_v3, %v2254_v52  ;;  %v2125_v52 = vshll.u32 %v2124_v48, 16 }
 0x690   : > { %3413 = vmatpush.xpose.msk.msra.mxu2 %vm2329_vm9, %v3640_v54  ;;  %3429 = vmatpush.xpose.msk.msra.mxu3 %vm2330_vm10, %v3640_v54  ;;  %vm2313_vm10 = vcmp.eq.s32.totalorder %v4554_v35, %v2142_v21 }
 0x692   : > { %v2234_v7 = vpop.xlane.xlu1 %2233  ;;  %v2106_v9 = vpop.xlane.xlu2 %2105 }
 0x693   : > { %v2235_v4 = vcvt.f32.s32 %v2234_v7 }
 0x694   : > { %3414 = vmatpush.xpose.msk.msra.mxu2 %vm2327_vm11, %v3640_v54  ;;  %3430 = vmatpush.xpose.msk.msra.mxu3 %vm2328_vm12, %v3640_v54  ;;  %vm2314_vm11 = vcmp.eq.s32.totalorder %v4888_v3, %v2142_v21 }
 0x695   : > { %v2238_v39 = vadd.s32 %v2237_v51, %v2235_v4  ;;  %v2107_v51 = vcvt.f32.s32 %v2106_v9 }
 0x697   : > { %vm2325_vm13 = vcmp.eq.s32.totalorder %v4554_v35, %v2238_v39  ;;  %vm2326_vm14 = vcmp.eq.s32.totalorder %v4888_v3, %v2238_v39  ;;  %v2110_v49 = vadd.s32 %v2109_v8, %v2107_v51 }
 0x698   : > { %3415 = vmatpush.xpose.msk.msra.mxu2 %vm2325_vm13, %v3640_v54  ;;  %3431 = vmatpush.xpose.msk.msra.mxu3 %vm2326_vm14, %v3640_v54 }
 0x699   : > { %vm2309_vm14 = vcmp.eq.s32.totalorder %v4554_v35, %v2110_v49 }
 0x69a   : > { %v2218_v43 = vpop.xlane.xlu1 %2217 }
 0x69b   : > { %v2219_v36 = vcvt.f32.s32 %v2218_v43  ;;  %v2093_v43 = vshll.u32 %v2092_v32, 16 }
 0x69d   : > { %v2222_v56 = vadd.s32 %v2221_v16, %v2219_v36 }
 0x69f   : > { %vm2323_vm15 = vcmp.eq.s32.totalorder %v4554_v35, %v2222_v56  ;;  %vm2324_vm2 = vcmp.eq.s32.totalorder %v4888_v3, %v2222_v56  ;;  %v2060_v56 = vcvt.f32.s32 %v5127_v37 }
 0x6a0   : > { %3416 = vmatpush.xpose.msk.msra.mxu2 %vm2323_vm15, %v3640_v54  ;;  %3432 = vmatpush.xpose.msk.msra.mxu3 %vm2324_vm2, %v3640_v54  ;;  %vm2310_vm15 = vcmp.eq.s32.totalorder %v4888_v3, %v2110_v49 }
 0x6a1   : > { %v2061_v6 = vshll.u32 %v2060_v56, 16 }
 0x6a2   : > { %v2186_v44 = vpop.xlane.xlu1 %2185  ;;  %v2074_v45 = vpop.xlane.xlu2 %2073 }
 0x6a3   : > { %v2187_v24 = vcvt.f32.s32 %v2186_v44  ;;  %v2075_v12 = vcvt.f32.s32 %v2074_v45 }
 0x6a4   : > { %3417 = vmatpush.xpose.msk.msra.mxu2 %vm2321_vm3, %v3640_v54  ;;  %3433 = vmatpush.xpose.msk.msra.mxu3 %vm2322_vm4, %v3640_v54 }
 0x6a5   : > { %v2190_v15 = vadd.s32 %v2189_v30, %v2187_v24  ;;  %v2078_v58 = vadd.s32 %v2077_v1, %v2075_v12 }
 0x6a7   : > { %vm2319_vm6 = vcmp.eq.s32.totalorder %v4554_v35, %v2190_v15  ;;  %vm2320_vm7 = vcmp.eq.s32.totalorder %v4888_v3, %v2190_v15  ;;  %vm2305_vm4 = vcmp.eq.s32.totalorder %v4554_v35, %v2078_v58  ;;  %v2448_v15 = vld [vmem:[%s2446_s15 + $0x20] sm:$0xff] }
 0x6a8   : > { %3418 = vmatpush.xpose.msk.msra.mxu2 %vm2319_vm6, %v3640_v54  ;;  %3434 = vmatpush.xpose.msk.msra.mxu3 %vm2320_vm7, %v3640_v54  ;;  %vm2306_vm6 = vcmp.eq.s32.totalorder %v4888_v3, %v2078_v58 }
 0x6aa   : > { %v2154_v34 = vpop.xlane.xlu1 %2153 }
 0x6ab   : > { %v2155_v17 = vcvt.f32.s32 %v2154_v34 }
 0x6ac   : > { %3419 = vmatpush.xpose.msk.msra.mxu2 %vm2317_vm5, %v3640_v54  ;;  %3435 = vmatpush.xpose.msk.msra.mxu3 %vm2318_vm1, %v3640_v54 }
 0x6ad   : > { %v2158_v27 = vadd.s32 %v2157_v5, %v2155_v17 }
 0x6af   : > { %vm2315_vm8 = vcmp.eq.s32.totalorder %v4554_v35, %v2158_v27  ;;  %vm2316_vm9 = vcmp.eq.s32.totalorder %v4888_v3, %v2158_v27 }
 0x6b0   : > { %3420 = vmatpush.xpose.msk.msra.mxu2 %vm2315_vm8, %v3640_v54  ;;  %3436 = vmatpush.xpose.msk.msra.mxu3 %vm2316_vm9, %v3640_v54 }
 0x6b2   : > { %v2122_v7 = vpop.xlane.xlu1 %2121 }
 0x6b3   : > { %v2123_v4 = vcvt.f32.s32 %v2122_v7 }
 0x6b4   : > { %3421 = vmatpush.xpose.msk.msra.mxu2 %vm2313_vm10, %v3640_v54  ;;  %3437 = vmatpush.xpose.msk.msra.mxu3 %vm2314_vm11, %v3640_v54 }
 0x6b5   : > { %v2126_v39 = vadd.s32 %v2125_v52, %v2123_v4 }
 0x6b7   : > { %vm2311_vm12 = vcmp.eq.s32.totalorder %v4554_v35, %v2126_v39  ;;  %vm2312_vm13 = vcmp.eq.s32.totalorder %v4888_v3, %v2126_v39 }
 0x6b8   : > { %3422 = vmatpush.xpose.msk.msra.mxu2 %vm2311_vm12, %v3640_v54  ;;  %3438 = vmatpush.xpose.msk.msra.mxu3 %vm2312_vm13, %v3640_v54 }
 0x6ba   : > { %v2090_v16 = vpop.xlane.xlu1 %2089 }
 0x6bb   : > { %v2091_v36 = vcvt.f32.s32 %v2090_v16 }
 0x6bc   : > { %3423 = vmatpush.xpose.msk.msra.mxu2 %vm2309_vm14, %v3640_v54  ;;  %3439 = vmatpush.xpose.msk.msra.mxu3 %vm2310_vm15, %v3640_v54 }
 0x6bd   : > { %v2094_v57 = vadd.s32 %v2093_v43, %v2091_v36 }
 0x6bf   : > { %vm2307_vm2 = vcmp.eq.s32.totalorder %v4554_v35, %v2094_v57  ;;  %vm2308_vm3 = vcmp.eq.s32.totalorder %v4888_v3, %v2094_v57 }
 0x6c0   : > { %3424 = vmatpush.xpose.msk.msra.mxu2 %vm2307_vm2, %v3640_v54  ;;  %3440 = vmatpush.xpose.msk.msra.mxu3 %vm2308_vm3, %v3640_v54 }
 0x6c2   : > { %v2058_v42 = vpop.xlane.xlu1 %2057 }
 0x6c3   : > { %v2059_v11 = vcvt.f32.s32 %v2058_v42 }
 0x6c4   : > { %3425 = vmatpush.xpose.msk.msra.mxu2 %vm2305_vm4, %v3640_v54  ;;  %3441 = vmatpush.xpose.msk.msra.mxu3 %vm2306_vm6, %v3640_v54 }
 0x6c5   : > { %v2062_v37 = vadd.s32 %v2061_v6, %v2059_v11 }
 0x6c7   : > { %vm2303_vm7 = vcmp.eq.s32.totalorder %v4554_v35, %v2062_v37  ;;  %vm2304_vm5 = vcmp.eq.s32.totalorder %v4888_v3, %v2062_v37 }
 0x6c8   : > { %3426 = vmatpush.xpose.msk.msra.mxu2 %vm2303_vm7, %v3640_v54  ;;  %3442 = vmatpush.xpose.msk.msra.mxu3 %vm2304_vm5, %v3640_v54 }
 0x6cb   : > { %2415 = vmatmul.f32.vlgmr.msra.gmra.mxu2 %v4380_v20  ;;  %2438 = vmatmul.f32.vlgmr.msra.gmra.mxu3 %v4487_v14 }
 0x6d3   : > { %2418 = vmatmul.f32.gmra.mxu2 %v4383_v61  ;;  %2441 = vmatmul.f32.gmra.mxu3 %v4490_v29 }
 0x74e   : > { %v2416_v33 = vpop.f32.mrf.mxu2  ;;  %v2439_v30 = vpop.f32.mrf.mxu3 }
 0x74f   : > { %v2440_v44 = vadd.f32 %v2439_v30, %v2416_v33 }
 0x751   : > { %v2449_v10 = vmul.f32 %v2447_v46, %v2440_v44 }
 0x756   : > { %v2419_v24 = vpop.f32.mrf.mxu2  ;;  %v2442_v55 = vpop.f32.mrf.mxu3 }
 0x757   : > { %v2443_v0 = vadd.f32 %v2442_v55, %v2419_v24 }
 0x759   : > { %v2450_v54 = vmul.f32 %v2448_v15, %v2443_v0 }
 0x75b   : > { %v2451_v19 = vadd.f32 %v2450_v54, %v2449_v10 }
 0x75d   : > { %v2452_v22 = vrot.slane %v2451_v19, 4 }
 0x75f   : > { %v2453_v5 = vadd.f32 %v2452_v22, %v2451_v19 }
 0x761   : > { %v2454_v34 = vrot.slane %v2453_v5, 2 }
 0x763   : > { %v2455_v40 = vadd.f32 %v2454_v34, %v2453_v5 }
 0x765   : > { %v2456_v17 = vrot.slane %v2455_v40, 1 }
 0x767   : > { %v2457_v50 = vadd.f32 %v2456_v17, %v2455_v40  ;;  %1712 = sbr.rel (!%p1710_p0) target bundleno = 891 (0x37b), region = 88 }
 0x769   : > { %v2458_v27 = vmul.f32 14.285714, %v2457_v50 }
 0x76b   : > { %2461 = vst [vmem:[%s2460_s5 + $0x100] sm:$0x1] %v2458_v27 }
 0x76c LB: > { %2571 = vmatpush.msra.mxu0 %v4171_v2  ;;  %2636 = vmatpush.msra.mxu1 %v4213_v18  ;;  %s3445_s3 = sshll.u32 %s3635_s4, 7  ;;  %s2467_s4 = sadd.s32 1, %s3635_s4   ;;  %s3635_s4 = sphi %s5224_s4, %s2467_s4  }
 0x76d   : > { %s2469_s17 = sadd.s32 256, %s3445_s3  ;;  %p2464_p1 = scmp.ge.s32.totalorder %s2467_s4, 2  }
 0x76e   : > { %2572 = vmatpush.msra.mxu0 %v4168_v59  ;;  %2637 = vmatpush.msra.mxu1 %v4210_v23  ;;  %s2470_s18 = sshra.s32 %s2469_s17, 7 }
 0x76f   : > { %s5236_s9 = sshll.u32 %s2470_s18, 3 }
 0x770   : > { %2573 = vmatpush.msra.mxu0 %v4165_v25  ;;  %2638 = vmatpush.msra.mxu1 %v4207_v62  ;;  %s2473_s19 = scalar_lea.vmem [#allocation2], %s5236_s9  ;;  %s3201_s20 = scalar_lea.vmem [#allocation3], %s5236_s9 }
 0x771   : > { %v2474_v38 = vld [vmem:[%s2473_s19] sm:$0xff]  ;;  %s3215_s1 = scalar_lea.vmem %s5694_s7, %s5236_s9 }
 0x772   : > { %2574 = vmatpush.msra.mxu0 %v4162_v63  ;;  %2639 = vmatpush.msra.mxu1 %v4204_v60  ;;  %v2475_v41 = vld [vmem:[%s2473_s19 + $0x20] sm:$0xff] }
 0x773   : > { %2478 = vxpose.xlu0.b32.start [1/4] (short) %v2474_v38, 128  ;;  %v2476_v31 = vld [vmem:[%s2473_s19 + $0x40] sm:$0xff] }
 0x774   : > { %v2477_v20 = vld [vmem:[%s2473_s19 + $0x60] sm:$0xff] }
 0x77b   : > { %2479 = vxpose.xlu0.b32.cont [2/4] (short) %v2475_v41, 128 }
 0x783   : > { %2480 = vxpose.xlu0.b32.cont [3/4] (short) %v2476_v31, 128 }
 0x78b   : > { %2481 = vxpose.xlu0.b32.end [4/4] (short) %v2477_v20, 128 }
 0x817   : > { %v2494_v61 = vpop.trf.xlu0 }
 0x818   : > { %3447 = vmatmul.msk.f32.vlgmr.msra.gmra.mxu0 %vm1755_vm0, %v2494_v61  ;;  %3463 = vmatmul.msk.f32.vlgmr.msra.gmra.mxu1 %vm1755_vm0, %v2494_v61 }
 0x81f   : > { %v2495_v14 = vpop.trf.xlu0 }
 0x820   : > { %3448 = vmatmul.msk.f32.gmra.mxu0 %vm1755_vm0, %v2495_v14  ;;  %3464 = vmatmul.msk.f32.gmra.mxu1 %vm1755_vm0, %v2495_v14 }
 0x827   : > { %v2496_v29 = vpop.trf.xlu0 }
 0x828   : > { %3449 = vmatmul.msk.f32.gmra.mxu0 %vm1755_vm0, %v2496_v29  ;;  %3465 = vmatmul.msk.f32.gmra.mxu1 %vm1755_vm0, %v2496_v29 }
 0x82f   : > { %v2497_v48 = vpop.trf.xlu0 }
 0x830   : > { %3450 = vmatmul.msk.f32.gmra.mxu0 %vm1755_vm0, %v2497_v48  ;;  %3466 = vmatmul.msk.f32.gmra.mxu1 %vm1755_vm0, %v2497_v48 }
 0x837   : > { %v2498_v21 = vpop.trf.xlu0 }
 0x838   : > { %3451 = vmatmul.msk.f32.gmra.mxu0 %vm1755_vm0, %v2498_v21  ;;  %3467 = vmatmul.msk.f32.gmra.mxu1 %vm1755_vm0, %v2498_v21 }
 0x83f   : > { %v2499_v9 = vpop.trf.xlu0 }
 0x840   : > { %3452 = vmatmul.msk.f32.gmra.mxu0 %vm1755_vm0, %v2499_v9  ;;  %3468 = vmatmul.msk.f32.gmra.mxu1 %vm1755_vm0, %v2499_v9 }
 0x847   : > { %v2500_v26 = vpop.trf.xlu0 }
 0x848   : > { %3453 = vmatmul.msk.f32.gmra.mxu0 %vm1755_vm0, %v2500_v26  ;;  %3469 = vmatmul.msk.f32.gmra.mxu1 %vm1755_vm0, %v2500_v26 }
 0x84f   : > { %v2501_v52 = vpop.trf.xlu0 }
 0x850   : > { %3454 = vmatmul.msk.f32.gmra.mxu0 %vm1755_vm0, %v2501_v52  ;;  %3470 = vmatmul.msk.f32.gmra.mxu1 %vm1755_vm0, %v2501_v52 }
 0x857   : > { %v2502_v7 = vpop.trf.xlu0 }
 0x858   : > { %3455 = vmatmul.msk.f32.gmra.mxu0 %vm1755_vm0, %v2502_v7  ;;  %3471 = vmatmul.msk.f32.gmra.mxu1 %vm1755_vm0, %v2502_v7 }
 0x85f   : > { %v2503_v51 = vpop.trf.xlu0 }
 0x860   : > { %3456 = vmatmul.msk.f32.gmra.mxu0 %vm1755_vm0, %v2503_v51  ;;  %3472 = vmatmul.msk.f32.gmra.mxu1 %vm1755_vm0, %v2503_v51 }
 0x867   : > { %v2504_v4 = vpop.trf.xlu0 }
 0x868   : > { %3457 = vmatmul.msk.f32.gmra.mxu0 %vm1755_vm0, %v2504_v4  ;;  %3473 = vmatmul.msk.f32.gmra.mxu1 %vm1755_vm0, %v2504_v4 }
 0x86f   : > { %v2505_v8 = vpop.trf.xlu0 }
 0x870   : > { %3458 = vmatmul.msk.f32.gmra.mxu0 %vm1755_vm0, %v2505_v8  ;;  %3474 = vmatmul.msk.f32.gmra.mxu1 %vm1755_vm0, %v2505_v8 }
 0x877   : > { %v2506_v39 = vpop.trf.xlu0 }
 0x878   : > { %3459 = vmatmul.msk.f32.gmra.mxu0 %vm1755_vm0, %v2506_v39  ;;  %3475 = vmatmul.msk.f32.gmra.mxu1 %vm1755_vm0, %v2506_v39 }
 0x87f   : > { %v2507_v32 = vpop.trf.xlu0 }
 0x880   : > { %3460 = vmatmul.msk.f32.gmra.mxu0 %vm1755_vm0, %v2507_v32  ;;  %3476 = vmatmul.msk.f32.gmra.mxu1 %vm1755_vm0, %v2507_v32 }
 0x887   : > { %v2508_v49 = vpop.trf.xlu0 }
 0x888   : > { %3461 = vmatmul.msk.f32.gmra.mxu0 %vm1755_vm0, %v2508_v49  ;;  %3477 = vmatmul.msk.f32.gmra.mxu1 %vm1755_vm0, %v2508_v49 }
 0x88f   : > { %v2509_v45 = vpop.trf.xlu0 }
 0x890   : > { %3462 = vmatmul.msk.f32.gmra.mxu0 %vm1755_vm0, %v2509_v45  ;;  %3478 = vmatmul.msk.f32.gmra.mxu1 %vm1755_vm0, %v2509_v45 }
 0x895   : > { %v5273_v13 = vpop.f32.mrf.mxu0  ;;  %v5275_v43 = vpop.f32.mrf.mxu1 }
 0x896   : > { %v2689_v39 = vmax.f32 %v5273_v13, %v5275_v43 }
 0x89d   : > { %v5277_v16 = vpop.f32.mrf.mxu0  ;;  %v5279_v12 = vpop.f32.mrf.mxu1 }
 0x89e   : > { %v2692_v4 = vmax.f32 %v5277_v16, %v5279_v12 }
 0x8a5   : > { %v5281_v36 = vpop.f32.mrf.mxu0  ;;  %v5283_v1 = vpop.f32.mrf.mxu1 }
 0x8a6   : > { %v2695_v51 = vmax.f32 %v5281_v36, %v5283_v1 }
 0x8ad   : > { %v5285_v57 = vpop.f32.mrf.mxu0  ;;  %v5287_v56 = vpop.f32.mrf.mxu1 }
 0x8ae   : > { %v2698_v21 = vmax.f32 %v5285_v57, %v5287_v56 }
 0x8b5   : > { %v5289_v58 = vpop.f32.mrf.mxu0  ;;  %v5291_v42 = vpop.f32.mrf.mxu1 }
 0x8b6   : > { %v2701_v8 = vmax.f32 %v5289_v58, %v5291_v42 }
 0x8bd   : > { %v5293_v6 = vpop.f32.mrf.mxu0  ;;  %v5295_v11 = vpop.f32.mrf.mxu1 }
 0x8be   : > { %v2704_v37 = vmax.f32 %v5293_v6, %v5295_v11 }
 0x8c0   : > { %2705 = vmax.xlane.f32.xlu2 %v2704_v37 }
 0x8c5   : > { %v5299_v33 = vpop.f32.mrf.mxu0  ;;  %v5301_v30 = vpop.f32.mrf.mxu1 }
 0x8c6   : > { %v2707_v44 = vmax.f32 %v5299_v33, %v5301_v30 }
 0x8c8   : > { %2708 = vmax.xlane.f32.xlu1 %v2707_v44 }
 0x8cd   : > { %v5305_v46 = vpop.f32.mrf.mxu0  ;;  %v5307_v24 = vpop.f32.mrf.mxu1 }
 0x8ce   : > { %v2710_v55 = vmax.f32 %v5305_v46, %v5307_v24 }
 0x8d0   : > { %2711 = vmax.xlane.f32.xlu0 %v2710_v55 }
 0x8d5   : > { %v5311_v15 = vpop.f32.mrf.mxu0  ;;  %v5313_v0 = vpop.f32.mrf.mxu1 }
 0x8d6   : > { %v2713_v10 = vmax.f32 %v5311_v15, %v5313_v0 }
 0x8d8   : > { %2714 = vmax.xlane.f32.xlu2 %v2713_v10 }
 0x8dd   : > { %v2603_v54 = vpop.f32.mrf.mxu0  ;;  %v2668_v19 = vpop.f32.mrf.mxu1 }
 0x8de   : > { %v2716_v22 = vmax.f32 %v2603_v54, %v2668_v19 }
 0x8e0   : > { %2717 = vmax.xlane.f32.xlu1 %v2716_v22 }
 0x8e5   : > { %v2606_v5 = vpop.f32.mrf.mxu0  ;;  %v2671_v34 = vpop.f32.mrf.mxu1 }
 0x8e6   : > { %v2719_v40 = vmax.f32 %v2606_v5, %v2671_v34 }
 0x8e8   : > { %2720 = vmax.xlane.f32.xlu2 %v2719_v40 }
 0x8ed   : > { %v2609_v17 = vpop.f32.mrf.mxu0  ;;  %v2674_v50 = vpop.f32.mrf.mxu1 }
 0x8ee   : > { %v2722_v27 = vmax.f32 %v2609_v17, %v2674_v50 }
 0x8f0   : > { %2723 = vmax.xlane.f32.xlu1 %v2722_v27 }
 0x8f5   : > { %v5317_v38 = vpop.f32.mrf.mxu0  ;;  %v5319_v41 = vpop.f32.mrf.mxu1 }
 0x8f6   : > { %v2725_v31 = vmax.f32 %v5317_v38, %v5319_v41 }
 0x8f8   : > { %2726 = vmax.xlane.f32.xlu2 %v2725_v31 }
 0x8fd   : > { %v5323_v20 = vpop.f32.mrf.mxu0  ;;  %v5325_v61 = vpop.f32.mrf.mxu1 }
 0x8fe   : > { %v2728_v14 = vmax.f32 %v5323_v20, %v5325_v61 }
 0x900   : > { %2729 = vmax.xlane.f32.xlu2 %v2728_v14 }
 0x905   : > { %v5329_v29 = vpop.f32.mrf.mxu0  ;;  %v5331_v48 = vpop.f32.mrf.mxu1 }
 0x906   : > { %v2731_v9 = vmax.f32 %v5329_v29, %v5331_v48 }
 0x908   : > { %2699 = vmax.xlane.f32.xlu2 %v2698_v21  ;;  %2732 = vmax.xlane.f32.xlu1 %v2731_v9 }
 0x90d   : > { %v5337_v26 = vpop.f32.mrf.mxu0  ;;  %v5339_v52 = vpop.f32.mrf.mxu1 }
 0x90e   : > { %v2734_v7 = vmax.f32 %v5337_v26, %v5339_v52 }
 0x910   : > { %2696 = vmax.xlane.f32.xlu2 %v2695_v51  ;;  %2735 = vmax.xlane.f32.xlu1 %v2734_v7 }
 0x918   : > { %2693 = vmax.xlane.f32.xlu2 %v2692_v4  ;;  %2702 = vmax.xlane.f32.xlu1 %v2701_v8 }
 0x920   : > { %2690 = vmax.xlane.f32.xlu2 %v2689_v39 }
 0x933   : > { %v2706_v32 = vpop.xlane.xlu2 %2705 }
 0x934   : > { %vm2748_vm6 = vcmp.ge.f32.partialorder %v5293_v6, %v2706_v32  ;;  %vm2749_vm7 = vcmp.ge.f32.partialorder %v5295_v11, %v2706_v32 }
 0x93b   : > { %v5351_v49 = vpop.xlane.xlu1 %2708 }
 0x94b   : > { %v5353_v45 = vpop.xlane.xlu2 %2714 }
 0x953   : > { %v2718_v37 = vpop.xlane.xlu1 %2717 }
 0x954   : > { %vm2756_vm1 = vcmp.ge.f32.partialorder %v2603_v54, %v2718_v37  ;;  %vm2757_vm8 = vcmp.ge.f32.partialorder %v2668_v19, %v2718_v37  ;;  %v2712_v19 = vpop.xlane.xlu0 %2711 }
 0x955   : > { %v2788_v44 = vsel %vm2756_vm1, %v4554_v35, 256  ;;  %v2789_v55 = vsel %vm2757_vm8, %v4888_v3, 256  ;;  %vm2752_vm13 = vcmp.ge.f32.partialorder %v5305_v46, %v2712_v19  ;;  %vm2753_vm14 = vcmp.ge.f32.partialorder %v5307_v24, %v2712_v19 }
 0x956   : > { %vm2946_vm9 = vcmp.lt.s32.totalorder %v2788_v44, %v2789_v55  ;;  %v2785_v7 = vsel %vm2753_vm14, %v4888_v3, 256 }
 0x957   : > { %v5357_v10 = vsel %vm2946_vm9, %v2788_v44, %v2789_v55  ;;  %v2780_v44 = vsel %vm2748_vm6, %v4554_v35, 256  ;;  %v2781_v55 = vsel %vm2749_vm7, %v4888_v3, 256 }
 0x958   : > { %v2949_v22 = vshra.s32 %v5357_v10, 16  ;;  %vm2882_vm9 = vcmp.lt.s32.totalorder %v2780_v44, %v2781_v55 }
 0x95a   : > { %v5360_v40 = vcvt.s32.f32 %v2949_v22 }
 0x95b   : > { %v2721_v27 = vpop.xlane.xlu2 %2720 }
 0x95c   : > { %vm2758_vm10 = vcmp.ge.f32.partialorder %v2606_v5, %v2721_v27  ;;  %vm2759_vm11 = vcmp.ge.f32.partialorder %v2671_v34, %v2721_v27  ;;  %2952 = vmin.xlane.f32.xlu2 %v5360_v40  ;;  %v2784_v34 = vsel %vm2752_vm13, %v4554_v35, 256  ;;  %v5405_v27 = vsel %vm2882_vm9, %v2780_v44, %v2781_v55 }
 0x95d   : > { %v2790_v31 = vsel %vm2758_vm10, %v4554_v35, 256  ;;  %v2791_v54 = vsel %vm2759_vm11, %v4888_v3, 256  ;;  %vm2914_vm4 = vcmp.lt.s32.totalorder %v2784_v34, %v2785_v7 }
 0x95e   : > { %vm2962_vm12 = vcmp.lt.s32.totalorder %v2790_v31, %v2791_v54 }
 0x95f   : > { %v5365_v14 = vsel %vm2962_vm12, %v2790_v31, %v2791_v54 }
 0x960   : > { %v2965_v21 = vshra.s32 %v5365_v14, 16 }
 0x962   : > { %v5370_v9 = vcvt.s32.f32 %v2965_v21  ;;  %v2885_v21 = vshra.s32 %v5405_v27, 16 }
 0x963   : > { %v2724_v5 = vpop.xlane.xlu1 %2723 }
 0x964   : > { %vm2760_vm15 = vcmp.ge.f32.partialorder %v2609_v17, %v2724_v5  ;;  %vm2761_vm2 = vcmp.ge.f32.partialorder %v2674_v50, %v2724_v5  ;;  %2968 = vmin.xlane.f32.xlu1 %v5370_v9  ;;  %v5384_v50 = vsel %vm2914_vm4, %v2784_v34, %v2785_v7  ;;  %v5415_v34 = vcvt.s32.f32 %v2885_v21 }
 0x965   : > { %v2792_v51 = vsel %vm2760_vm15, %v4554_v35, 256  ;;  %v2793_v4 = vsel %vm2761_vm2, %v4888_v3, 256  ;;  %v2917_v6 = vshra.s32 %v5384_v50, 16  ;;  %vm2754_vm2 = vcmp.ge.f32.partialorder %v5311_v15, %v5353_v45 }
 0x966   : > { %vm2978_vm3 = vcmp.lt.s32.totalorder %v2792_v51, %v2793_v4 }
 0x967   : > { %v5377_v8 = vsel %vm2978_vm3, %v2792_v51, %v2793_v4  ;;  %vm2755_vm3 = vcmp.ge.f32.partialorder %v5313_v0, %v5353_v45 }
 0x968   : > { %v2981_v46 = vshra.s32 %v5377_v8, 16 }
 0x96a   : > { %v5380_v24 = vcvt.s32.f32 %v2981_v46 }
 0x96b   : > { %v2727_v17 = vpop.xlane.xlu2 %2726 }
 0x96c   : > { %vm2762_vm5 = vcmp.ge.f32.partialorder %v5317_v38, %v2727_v17  ;;  %vm2763_vm1 = vcmp.ge.f32.partialorder %v5319_v41, %v2727_v17  ;;  %2984 = vmin.xlane.f32.xlu2 %v5380_v24  ;;  %v5399_v41 = vcvt.s32.f32 %v2917_v6 }
 0x96d   : > { %v2794_v39 = vsel %vm2762_vm5, %v4554_v35, 256  ;;  %v2795_v37 = vsel %vm2763_vm1, %v4888_v3, 256  ;;  %vm2750_vm1 = vcmp.ge.f32.partialorder %v5299_v33, %v5351_v49 }
 0x96e   : > { %vm2994_vm8 = vcmp.lt.s32.totalorder %v2794_v39, %v2795_v37 }
 0x96f   : > { %v5394_v11 = vsel %vm2994_vm8, %v2794_v39, %v2795_v37  ;;  %v2786_v39 = vsel %vm2754_vm2, %v4554_v35, 256  ;;  %v2787_v37 = vsel %vm2755_vm3, %v4888_v3, 256  ;;  %vm2751_vm8 = vcmp.ge.f32.partialorder %v5301_v30, %v5351_v49 }
 0x970   : > { %v2997_v32 = vshra.s32 %v5394_v11, 16  ;;  %vm2930_vm5 = vcmp.lt.s32.totalorder %v2786_v39, %v2787_v37 }
 0x971   : > { %v5450_v6 = vsel %vm2930_vm5, %v2786_v39, %v2787_v37 }
 0x972   : > { %v5397_v38 = vcvt.s32.f32 %v2997_v32  ;;  %v2782_v32 = vsel %vm2750_vm1, %v4554_v35, 256  ;;  %v2933_v49 = vshra.s32 %v5450_v6, 16 }
 0x973   : > { %v2730_v22 = vpop.xlane.xlu2 %2729 }
 0x974   : > { %vm2764_vm10 = vcmp.ge.f32.partialorder %v5323_v20, %v2730_v22  ;;  %vm2765_vm11 = vcmp.ge.f32.partialorder %v5325_v61, %v2730_v22  ;;  %3000 = vmin.xlane.f32.xlu1 %v5397_v38  ;;  %2920 = vmin.xlane.f32.xlu2 %v5399_v41  ;;  %v2783_v22 = vsel %vm2751_vm8, %v4888_v3, 256 }
 0x975   : > { %v2796_v31 = vsel %vm2764_vm10, %v4554_v35, 256  ;;  %v2797_v54 = vsel %vm2765_vm11, %v4888_v3, 256 }
 0x976   : > { %vm3010_vm12 = vcmp.lt.s32.totalorder %v2796_v31, %v2797_v54 }
 0x977   : > { %v5409_v19 = vsel %vm3010_vm12, %v2796_v31, %v2797_v54 }
 0x978   : > { %v3013_v5 = vshra.s32 %v5409_v19, 16 }
 0x97a   : > { %v5413_v20 = vcvt.s32.f32 %v3013_v5 }
 0x97b   : > { %v2733_v61 = vpop.xlane.xlu1 %2732  ;;  %v2700_v17 = vpop.xlane.xlu2 %2699 }
 0x97c   : > { %vm2766_vm13 = vcmp.ge.f32.partialorder %v5329_v29, %v2733_v61  ;;  %vm2767_vm14 = vcmp.ge.f32.partialorder %v5331_v48, %v2733_v61  ;;  %3016 = vmin.xlane.f32.xlu1 %v5413_v20  ;;  %2888 = vmin.xlane.f32.xlu2 %v5415_v34  ;;  %vm2744_vm9 = vcmp.ge.f32.partialorder %v5285_v57, %v2700_v17 }
 0x97d   : > { %v2798_v7 = vsel %vm2766_vm13, %v4554_v35, 256  ;;  %v2799_v51 = vsel %vm2767_vm14, %v4888_v3, 256  ;;  %vm2745_vm10 = vcmp.ge.f32.partialorder %v5287_v56, %v2700_v17  ;;  %v2776_v57 = vsel %vm2744_vm9, %v4554_v35, 256 }
 0x97e   : > { %vm3026_vm15 = vcmp.lt.s32.totalorder %v2798_v7, %v2799_v51  ;;  %v2777_v56 = vsel %vm2745_vm10, %v4888_v3, 256  ;;  %vm2898_vm14 = vcmp.lt.s32.totalorder %v2782_v32, %v2783_v22 }
 0x97f   : > { %v5423_v4 = vsel %vm3026_vm15, %v2798_v7, %v2799_v51  ;;  %vm2850_vm15 = vcmp.lt.s32.totalorder %v2776_v57, %v2777_v56  ;;  %v5471_v21 = vsel %vm2898_vm14, %v2782_v32, %v2783_v22 }
 0x980   : > { %v3029_v46 = vshra.s32 %v5423_v4, 16  ;;  %v5473_v5 = vsel %vm2850_vm15, %v2776_v57, %v2777_v56  ;;  %v2948_v57 = vand.u32 65535, %v5357_v10 }
 0x982   : > { %v5430_v29 = vcvt.s32.f32 %v3029_v46 }
 0x983   : > { %v2736_v48 = vpop.xlane.xlu1 %2735 }
 0x984   : > { %vm2768_vm4 = vcmp.ge.f32.partialorder %v5337_v26, %v2736_v48  ;;  %vm2769_vm6 = vcmp.ge.f32.partialorder %v5339_v52, %v2736_v48  ;;  %3032 = vmin.xlane.f32.xlu1 %v5430_v29  ;;  %v2697_v52 = vpop.xlane.xlu2 %2696 }
 0x985   : > { %v2800_v44 = vsel %vm2768_vm4, %v4554_v35, 256  ;;  %v2801_v15 = vsel %vm2769_vm6, %v4888_v3, 256  ;;  %vm2742_vm2 = vcmp.ge.f32.partialorder %v5281_v36, %v2697_v52  ;;  %vm2743_vm3 = vcmp.ge.f32.partialorder %v5283_v1, %v2697_v52 }
 0x986   : > { %vm3042_vm7 = vcmp.lt.s32.totalorder %v2800_v44, %v2801_v15  ;;  %v2774_v61 = vsel %vm2742_vm2, %v4554_v35, 256  ;;  %v2775_v7 = vsel %vm2743_vm3, %v4888_v3, 256  ;;  %v2901_v36 = vshra.s32 %v5471_v21, 16 }
 0x987   : > { %v5439_v55 = vsel %vm3042_vm7, %v2800_v44, %v2801_v15  ;;  %v2853_v1 = vshra.s32 %v5473_v5, 16  ;;  %vm2834_vm4 = vcmp.lt.s32.totalorder %v2774_v61, %v2775_v7 }
 0x988   : > { %v3045_v0 = vshra.s32 %v5439_v55, 16  ;;  %v5483_v46 = vcvt.s32.f32 %v2901_v36  ;;  %v5487_v48 = vsel %vm2834_vm4, %v2774_v61, %v2775_v7  ;;  %v2916_v61 = vand.u32 65535, %v5384_v50 }
 0x989   : > { %v5485_v17 = vcvt.s32.f32 %v2853_v1  ;;  %v2837_v44 = vshra.s32 %v5487_v48, 16  ;;  %v2884_v1 = vand.u32 65535, %v5405_v27 }
 0x98a   : > { %v5448_v26 = vcvt.s32.f32 %v3045_v0  ;;  %v2918_v36 = vcvt.s32.f32 %v2916_v61 }
 0x98b   : > { %v2703_v45 = vpop.xlane.xlu1 %2702  ;;  %v2886_v50 = vcvt.s32.f32 %v2884_v1  ;;  %v2932_v1 = vand.u32 65535, %v5450_v6  ;;  %v2900_v6 = vand.u32 65535, %v5471_v21 }
 0x98c   : > { %vm2746_vm11 = vcmp.ge.f32.partialorder %v5289_v58, %v2703_v45  ;;  %vm2747_vm12 = vcmp.ge.f32.partialorder %v5291_v42, %v2703_v45  ;;  %3048 = vmin.xlane.f32.xlu1 %v5448_v26  ;;  %v5467_v42 = vcvt.s32.f32 %v2933_v49  ;;  %v2694_v51 = vpop.xlane.xlu2 %2693 }
 0x98d   : > { %v2778_v33 = vsel %vm2746_vm11, %v4554_v35, 256  ;;  %v2779_v30 = vsel %vm2747_vm12, %v4888_v3, 256  ;;  %vm2740_vm6 = vcmp.ge.f32.partialorder %v5277_v16, %v2694_v51  ;;  %vm2741_vm7 = vcmp.ge.f32.partialorder %v5279_v12, %v2694_v51 }
 0x98e   : > { %vm2866_vm13 = vcmp.lt.s32.totalorder %v2778_v33, %v2779_v30  ;;  %v2772_v39 = vsel %vm2740_vm6, %v4554_v35, 256  ;;  %v2773_v37 = vsel %vm2741_vm7, %v4888_v3, 256  ;;  %v5496_v16 = vcvt.s32.f32 %v2837_v44 }
 0x98f   : > { %v5462_v31 = vsel %vm2866_vm13, %v2778_v33, %v2779_v30  ;;  %vm2818_vm5 = vcmp.lt.s32.totalorder %v2772_v39, %v2773_v37  ;;  %v2950_v33 = vcvt.s32.f32 %v2948_v57 }
 0x990   : > { %v2869_v58 = vshra.s32 %v5462_v31, 16  ;;  %v5498_v12 = vsel %vm2818_vm5, %v2772_v39, %v2773_v37 }
 0x991   : > { %v2821_v45 = vshra.s32 %v5498_v12, 16 }
 0x992   : > { %v5469_v54 = vcvt.s32.f32 %v2869_v58 }
 0x993   : > { %v5504_v32 = vcvt.s32.f32 %v2821_v45 }
 0x994   : > { %2936 = vmin.xlane.f32.xlu1 %v5467_v42  ;;  %2872 = vmin.xlane.f32.xlu2 %v5469_v54  ;;  %v2691_v15 = vpop.xlane.xlu2 %2690 }
 0x995   : > { %vm2738_vm1 = vcmp.ge.f32.partialorder %v5273_v13, %v2691_v15  ;;  %vm2739_vm8 = vcmp.ge.f32.partialorder %v5275_v43, %v2691_v15 }
 0x996   : > { %v2770_v0 = vsel %vm2738_vm1, %v4554_v35, 256  ;;  %v2771_v52 = vsel %vm2739_vm8, %v4888_v3, 256 }
 0x997   : > { %vm2802_vm9 = vcmp.lt.s32.totalorder %v2770_v0, %v2771_v52 }
 0x998   : > { %v5506_v22 = vsel %vm2802_vm9, %v2770_v0, %v2771_v52 }
 0x999   : > { %v2805_v13 = vshra.s32 %v5506_v22, 16 }
 0x99b   : > { %v5510_v43 = vcvt.s32.f32 %v2805_v13 }
 0x99c   : > { %2904 = vmin.xlane.f32.xlu1 %v5483_v46  ;;  %2856 = vmin.xlane.f32.xlu2 %v5485_v17 }
 0x9a4   : > { %2840 = vmin.xlane.f32.xlu2 %v5496_v16 }
 0x9ac   : > { %2824 = vmin.xlane.f32.xlu2 %v5504_v32 }
 0x9b4   : > { %2808 = vmin.xlane.f32.xlu2 %v5510_v43 }
 0x9cf   : > { %v5514_v56 = vpop.xlane.xlu2 %2952 }
 0x9d0   : > { %vm2954_vm10 = vcmp.eq.f32.partialorder %v5360_v40, %v5514_v56  ;;  %v3012_v40 = vand.u32 65535, %v5409_v19  ;;  %v3028_v19 = vand.u32 65535, %v5423_v4  ;;  %v2996_v4 = vand.u32 65535, %v5394_v11 }
 0x9d1   : > { %v2955_v30 = vsel %vm2954_vm10, %v2950_v33, inf }
 0x9d2   : > { %2956 = vmin.xlane.f32.xlu2 %v2955_v30  ;;  %v3014_v37 = vcvt.s32.f32 %v3012_v40  ;;  %v3030_v27 = vcvt.s32.f32 %v3028_v19  ;;  %v2852_v30 = vand.u32 65535, %v5473_v5  ;;  %v2868_v19 = vand.u32 65535, %v5462_v31 }
 0x9d7   : > { %v5518_v49 = vpop.xlane.xlu1 %2968 }
 0x9d8   : > { %vm2970_vm6 = vcmp.eq.f32.partialorder %v5370_v9, %v5518_v49 }
 0x9df   : > { %v5520_v58 = vpop.xlane.xlu2 %2984 }
 0x9e0   : > { %vm2986_vm3 = vcmp.eq.f32.partialorder %v5380_v24, %v5520_v58 }
 0x9e7   : > { %v5523_v7 = vpop.xlane.xlu1 %3000  ;;  %v5525_v51 = vpop.xlane.xlu2 %2920 }
 0x9e8   : > { %vm2922_vm11 = vcmp.eq.f32.partialorder %v5399_v41, %v5525_v51  ;;  %vm3002_vm2 = vcmp.eq.f32.partialorder %v5397_v38, %v5523_v7 }
 0x9e9   : > { %v2923_v10 = vsel %vm2922_vm11, %v2918_v36, inf  ;;  %v2854_v36 = vcvt.s32.f32 %v2852_v30 }
 0x9ea   : > { %2924 = vmin.xlane.f32.xlu2 %v2923_v10  ;;  %v2964_v10 = vand.u32 65535, %v5365_v14  ;;  %v2934_v14 = vcvt.s32.f32 %v2932_v1  ;;  %v2991_v1 = vcvt.f32.s32 %v5520_v58 }
 0x9ec   : > { %v2966_v5 = vcvt.s32.f32 %v2964_v10 }
 0x9ee   : > { %v2971_v40 = vsel %vm2970_vm6, %v2966_v5, inf }
 0x9ef   : > { %v5531_v39 = vpop.xlane.xlu1 %3016  ;;  %v5533_v44 = vpop.xlane.xlu2 %2888 }
 0x9f0   : > { %vm3018_vm12 = vcmp.eq.f32.partialorder %v5413_v20, %v5531_v39  ;;  %vm2890_vm13 = vcmp.eq.f32.partialorder %v5415_v34, %v5533_v44  ;;  %v3044_v20 = vand.u32 65535, %v5439_v55  ;;  %v2980_v55 = vand.u32 65535, %v5377_v8 }
 0x9f1   : > { %v3019_v15 = vsel %vm3018_vm12, %v3014_v37, inf  ;;  %v2891_v41 = vsel %vm2890_vm13, %v2886_v50, inf }
 0x9f2   : > { %3020 = vmin.xlane.f32.xlu1 %v3019_v15  ;;  %2892 = vmin.xlane.f32.xlu2 %v2891_v41  ;;  %v3046_v13 = vcvt.s32.f32 %v3044_v20  ;;  %v2982_v61 = vcvt.s32.f32 %v2980_v55 }
 0x9f4   : > { %v2987_v11 = vsel %vm2986_vm3, %v2982_v61, inf  ;;  %v3023_v61 = vcvt.f32.s32 %v5531_v39 }
 0x9f7   : > { %v5540_v0 = vpop.xlane.xlu1 %3032 }
 0x9f8   : > { %vm3034_vm14 = vcmp.eq.f32.partialorder %v5430_v29, %v5540_v0  ;;  %v2998_v29 = vcvt.s32.f32 %v2996_v4 }
 0x9f9   : > { %v3035_v52 = vsel %vm3034_vm14, %v3030_v27, inf }
 0x9fa   : > { %3036 = vmin.xlane.f32.xlu1 %v3035_v52  ;;  %v3003_v33 = vsel %vm3002_vm2, %v2998_v29, inf  ;;  %v2836_v52 = vand.u32 65535, %v5487_v48  ;;  %v3039_v29 = vcvt.f32.s32 %v5540_v0  ;;  %v3007_v0 = vcvt.f32.s32 %v5523_v7 }
 0x9fc   : > { %v2838_v21 = vcvt.s32.f32 %v2836_v52  ;;  %v3008_v39 = vshll.u32 %v3007_v0, 16 }
 0x9ff   : > { %v5545_v45 = vpop.xlane.xlu1 %3048 }
 0xa00   : > { %vm3050_vm15 = vcmp.eq.f32.partialorder %v5448_v26, %v5545_v45  ;;  %v3055_v48 = vcvt.f32.s32 %v5545_v45  ;;  %v3024_v45 = vshll.u32 %v3023_v61, 16 }
 0xa01   : > { %v3051_v34 = vsel %vm3050_vm15, %v3046_v13, inf  ;;  %v2804_v13 = vand.u32 65535, %v5506_v22 }
 0xa02   : > { %3052 = vmin.xlane.f32.xlu1 %v3051_v34 }
 0xa03   : > { %v2806_v31 = vcvt.s32.f32 %v2804_v13 }
 0xa07   : > { %v5552_v57 = vpop.xlane.xlu2 %2872  ;;  %v5567_v24 = vpop.xlane.xlu1 %2936 }
 0xa08   : > { %vm2938_vm7 = vcmp.eq.f32.partialorder %v5467_v42, %v5567_v24  ;;  %vm2874_vm8 = vcmp.eq.f32.partialorder %v5469_v54, %v5552_v57 }
 0xa09   : > { %v2939_v9 = vsel %vm2938_vm7, %v2934_v14, inf  ;;  %v2992_v14 = vshll.u32 %v2991_v1, 16 }
 0xa0a   : > { %3004 = vmin.xlane.f32.xlu1 %v3003_v33  ;;  %v3056_v33 = vshll.u32 %v3055_v48, 16 }
 0xa0f   : > { %v5558_v26 = vpop.xlane.xlu2 %2856  ;;  %v5577_v41 = vpop.xlane.xlu1 %2904 }
 0xa10   : > { %vm2858_vm4 = vcmp.eq.f32.partialorder %v5485_v17, %v5558_v26  ;;  %v2820_v17 = vand.u32 65535, %v5498_v12  ;;  %vm2906_vm1 = vcmp.eq.f32.partialorder %v5483_v46, %v5577_v41  ;;  %v2902_v12 = vcvt.s32.f32 %v2900_v6 }
 0xa11   : > { %v2859_v38 = vsel %vm2858_vm4, %v2854_v36, inf  ;;  %v3040_v36 = vshll.u32 %v3039_v29, 16  ;;  %v2959_v6 = vcvt.f32.s32 %v5514_v56  ;;  %v2927_v56 = vcvt.f32.s32 %v5525_v51 }
 0xa12   : > { %2988 = vmin.xlane.f32.xlu1 %v2987_v11  ;;  %2860 = vmin.xlane.f32.xlu2 %v2859_v38  ;;  %v2822_v50 = vcvt.s32.f32 %v2820_v17  ;;  %v2907_v42 = vsel %vm2906_vm1, %v2902_v12, inf  ;;  %v2911_v48 = vcvt.f32.s32 %v5577_v41 }
 0xa17   : > { %v5565_v8 = vpop.xlane.xlu2 %2840 }
 0xa18   : > { %vm2842_vm9 = vcmp.eq.f32.partialorder %v5496_v16, %v5565_v8 }
 0xa19   : > { %v2843_v20 = vsel %vm2842_vm9, %v2838_v21, inf  ;;  %v2943_v21 = vcvt.f32.s32 %v5567_v24  ;;  %v2928_v24 = vshll.u32 %v2927_v56, 16  ;;  %v3203_v56 = vld [vmem:[%s3201_s20 + $0x20] sm:$0xff] }
 0xa1a   : > { %2972 = vmin.xlane.f32.xlu1 %v2971_v40 }
 0xa1b   : > { %v2944_v13 = vshll.u32 %v2943_v21, 16  ;;  %v3202_v21 = vld [vmem:[%s3201_s20] sm:$0xff] }
 0xa1f   : > { %v5573_v37 = vpop.xlane.xlu2 %2824 }
 0xa20   : > { %vm2826_vm5 = vcmp.eq.f32.partialorder %v5504_v32, %v5573_v37  ;;  %v2870_v32 = vcvt.s32.f32 %v2868_v19 }
 0xa21   : > { %v2827_v15 = vsel %vm2826_vm5, %v2822_v50, inf }
 0xa22   : > { %2940 = vmin.xlane.f32.xlu1 %v2939_v9  ;;  %2828 = vmin.xlane.f32.xlu2 %v2827_v15  ;;  %v2875_v27 = vsel %vm2874_vm8, %v2870_v32, inf  ;;  %v2975_v15 = vcvt.f32.s32 %v5518_v49 }
 0xa27   : > { %v5588_v46 = vpop.xlane.xlu2 %2808 }
 0xa28   : > { %vm2810_vm10 = vcmp.eq.f32.partialorder %v5510_v43, %v5588_v46  ;;  %v3641_v43 = vmov 1.0  }
 0xa29   : > { %v2811_v54 = vsel %vm2810_vm10, %v2806_v31, inf }
 0xa2a   : > { %2908 = vmin.xlane.f32.xlu1 %v2907_v42  ;;  %v2976_v42 = vshll.u32 %v2975_v15, 16  ;;  %v2815_v15 = vcvt.f32.s32 %v5588_v46 }
 0xa32   : > { %2876 = vmin.xlane.f32.xlu1 %v2875_v27  ;;  %v2960_v27 = vshll.u32 %v2959_v6, 16 }
 0xa3a   : > { %2844 = vmin.xlane.f32.xlu1 %v2843_v20 }
 0xa42   : > { %2812 = vmin.xlane.f32.xlu1 %v2811_v54 }
 0xa45   : > { %v2957_v9 = vpop.xlane.xlu2 %2956 }
 0xa46   : > { %v2958_v19 = vcvt.f32.s32 %v2957_v9 }
 0xa48   : > { %v2961_v49 = vadd.s32 %v2960_v27, %v2958_v19  ;;  %v5710_v19 = vld [vmem:[#allocation10_spill] sm:$0xff] }
 0xa4a   : > { %vm3076_vm8 = vcmp.eq.s32.totalorder %v4554_v35, %v2961_v49  ;;  %vm3077_vm9 = vcmp.eq.s32.totalorder %v4888_v3, %v2961_v49 }
 0xa5d   : > { %v2925_v20 = vpop.xlane.xlu2 %2924 }
 0xa5e   : > { %v2926_v54 = vcvt.f32.s32 %v2925_v20 }
 0xa60   : > { %v2929_v29 = vadd.s32 %v2928_v24, %v2926_v54 }
 0xa65   : > { %v3021_v34 = vpop.xlane.xlu1 %3020  ;;  %v2893_v51 = vpop.xlane.xlu2 %2892 }
 0xa66   : > { %v3022_v11 = vcvt.f32.s32 %v3021_v34 }
 0xa68   : > { %v3025_v5 = vadd.s32 %v3024_v45, %v3022_v11 }
 0xa6a   : > { %vm3084_vm15 = vcmp.eq.s32.totalorder %v4554_v35, %v3025_v5  ;;  %vm3085_vm2 = vcmp.eq.s32.totalorder %v4888_v3, %v3025_v5 }
 0xa6d   : > { %v3037_v4 = vpop.xlane.xlu1 %3036 }
 0xa6e   : > { %v3038_v55 = vcvt.f32.s32 %v3037_v4 }
 0xa70   : > { %v3041_v38 = vadd.s32 %v3040_v36, %v3038_v55 }
 0xa72   : > { %vm3086_vm13 = vcmp.eq.s32.totalorder %v4554_v35, %v3041_v38  ;;  %vm3087_vm14 = vcmp.eq.s32.totalorder %v4888_v3, %v3041_v38  ;;  %v2863_v38 = vcvt.f32.s32 %v5558_v26 }
 0xa75   : > { %v3053_v16 = vpop.xlane.xlu1 %3052 }
 0xa76   : > { %v3054_v30 = vcvt.f32.s32 %v3053_v16  ;;  %v2895_v16 = vcvt.f32.s32 %v5533_v44 }
 0xa78   : > { %v3057_v22 = vadd.s32 %v3056_v33, %v3054_v30  ;;  %v2912_v33 = vshll.u32 %v2911_v48, 16  ;;  %v2894_v30 = vcvt.f32.s32 %v2893_v51  ;;  %v2896_v41 = vshll.u32 %v2895_v16, 16 }
 0xa7a   : > { %vm3088_vm11 = vcmp.eq.s32.totalorder %v4554_v35, %v3057_v22  ;;  %vm3089_vm12 = vcmp.eq.s32.totalorder %v4888_v3, %v3057_v22  ;;  %v2879_v22 = vcvt.f32.s32 %v5552_v57  ;;  %v2897_v11 = vadd.s32 %v2896_v41, %v2894_v30 }
 0xa7b   : > { %3511 = vmatpush.xpose.msk.msra.mxu2 %vm3088_vm11, %v3641_v43  ;;  %3527 = vmatpush.xpose.msk.msra.mxu3 %vm3089_vm12, %v3641_v43  ;;  %vm3072_vm12 = vcmp.eq.s32.totalorder %v4554_v35, %v2929_v29  ;;  %v2864_v57 = vshll.u32 %v2863_v38, 16 }
 0xa7c   : > { %v2880_v0 = vshll.u32 %v2879_v22, 16 }
 0xa7d   : > { %v3005_v10 = vpop.xlane.xlu1 %3004 }
 0xa7e   : > { %v3006_v40 = vcvt.f32.s32 %v3005_v10 }
 0xa7f   : > { %3512 = vmatpush.xpose.msk.msra.mxu2 %vm3086_vm13, %v3641_v43  ;;  %3528 = vmatpush.xpose.msk.msra.mxu3 %vm3087_vm14, %v3641_v43  ;;  %vm3073_vm13 = vcmp.eq.s32.totalorder %v4888_v3, %v2929_v29 }
 0xa80   : > { %v3009_v17 = vadd.s32 %v3008_v39, %v3006_v40  ;;  %v2847_v39 = vcvt.f32.s32 %v5565_v8 }
 0xa82   : > { %vm3082_vm3 = vcmp.eq.s32.totalorder %v4554_v35, %v3009_v17  ;;  %vm3083_vm4 = vcmp.eq.s32.totalorder %v4888_v3, %v3009_v17  ;;  %v2831_v17 = vcvt.f32.s32 %v5573_v37 }
 0xa83   : > { %3513 = vmatpush.xpose.msk.msra.mxu2 %vm3084_vm15, %v3641_v43  ;;  %3529 = vmatpush.xpose.msk.msra.mxu3 %vm3085_vm2, %v3641_v43  ;;  %vm3068_vm2 = vcmp.eq.s32.totalorder %v4554_v35, %v2897_v11 }
 0xa84   : > { %v2832_v8 = vshll.u32 %v2831_v17, 16 }
 0xa85   : > { %v2989_v7 = vpop.xlane.xlu1 %2988  ;;  %v2861_v44 = vpop.xlane.xlu2 %2860 }
 0xa86   : > { %v2990_v50 = vcvt.f32.s32 %v2989_v7  ;;  %v2862_v10 = vcvt.f32.s32 %v2861_v44  ;;  %v2848_v7 = vshll.u32 %v2847_v39, 16 }
 0xa87   : > { %3514 = vmatpush.xpose.msk.msra.mxu2 %vm3082_vm3, %v3641_v43  ;;  %3530 = vmatpush.xpose.msk.msra.mxu3 %vm3083_vm4, %v3641_v43  ;;  %vm3069_vm3 = vcmp.eq.s32.totalorder %v4888_v3, %v2897_v11 }
 0xa88   : > { %v2993_v58 = vadd.s32 %v2992_v14, %v2990_v50  ;;  %v2865_v1 = vadd.s32 %v2864_v57, %v2862_v10 }
 0xa8a   : > { %vm3080_vm6 = vcmp.eq.s32.totalorder %v4554_v35, %v2993_v58  ;;  %vm3081_vm7 = vcmp.eq.s32.totalorder %v4888_v3, %v2993_v58 }
 0xa8b   : > { %3515 = vmatpush.xpose.msk.msra.mxu2 %vm3080_vm6, %v3641_v43  ;;  %3531 = vmatpush.xpose.msk.msra.mxu3 %vm3081_vm7, %v3641_v43  ;;  %vm3064_vm7 = vcmp.eq.s32.totalorder %v4554_v35, %v2865_v1 }
 0xa8d   : > { %v2973_v12 = vpop.xlane.xlu1 %2972 }
 0xa8e   : > { %v2974_v32 = vcvt.f32.s32 %v2973_v12  ;;  %v2816_v12 = vshll.u32 %v2815_v15, 16 }
 0xa90   : > { %v2977_v52 = vadd.s32 %v2976_v42, %v2974_v32 }
 0xa92   : > { %vm3078_vm5 = vcmp.eq.s32.totalorder %v4554_v35, %v2977_v52  ;;  %vm3079_vm1 = vcmp.eq.s32.totalorder %v4888_v3, %v2977_v52 }
 0xa93   : > { %3516 = vmatpush.xpose.msk.msra.mxu2 %vm3078_vm5, %v3641_v43  ;;  %3532 = vmatpush.xpose.msk.msra.mxu3 %vm3079_vm1, %v3641_v43  ;;  %vm3065_vm5 = vcmp.eq.s32.totalorder %v4888_v3, %v2865_v1 }
 0xa95   : > { %v2941_v31 = vpop.xlane.xlu1 %2940  ;;  %v2829_v26 = vpop.xlane.xlu2 %2828 }
 0xa96   : > { %v2942_v34 = vcvt.f32.s32 %v2941_v31  ;;  %v2830_v50 = vcvt.f32.s32 %v2829_v26 }
 0xa97   : > { %3517 = vmatpush.xpose.msk.msra.mxu2 %vm3076_vm8, %v3641_v43  ;;  %3533 = vmatpush.xpose.msk.msra.mxu3 %vm3077_vm9, %v3641_v43 }
 0xa98   : > { %v2945_v4 = vadd.s32 %v2944_v13, %v2942_v34  ;;  %v2833_v6 = vadd.s32 %v2832_v8, %v2830_v50 }
 0xa9a   : > { %vm3074_vm10 = vcmp.eq.s32.totalorder %v4554_v35, %v2945_v4  ;;  %vm3075_vm11 = vcmp.eq.s32.totalorder %v4888_v3, %v2945_v4  ;;  %vm3060_vm9 = vcmp.eq.s32.totalorder %v4554_v35, %v2833_v6 }
 0xa9b   : > { %3518 = vmatpush.xpose.msk.msra.mxu2 %vm3074_vm10, %v3641_v43  ;;  %3534 = vmatpush.xpose.msk.msra.mxu3 %vm3075_vm11, %v3641_v43  ;;  %vm3061_vm10 = vcmp.eq.s32.totalorder %v4888_v3, %v2833_v6 }
 0xa9d   : > { %v2909_v55 = vpop.xlane.xlu1 %2908 }
 0xa9e   : > { %v2910_v61 = vcvt.f32.s32 %v2909_v55 }
 0xa9f   : > { %3519 = vmatpush.xpose.msk.msra.mxu2 %vm3072_vm12, %v3641_v43  ;;  %3535 = vmatpush.xpose.msk.msra.mxu3 %vm3073_vm13, %v3641_v43 }
 0xaa0   : > { %v2913_v36 = vadd.s32 %v2912_v33, %v2910_v61 }
 0xaa2   : > { %vm3070_vm14 = vcmp.eq.s32.totalorder %v4554_v35, %v2913_v36  ;;  %vm3071_vm15 = vcmp.eq.s32.totalorder %v4888_v3, %v2913_v36 }
 0xaa3   : > { %3520 = vmatpush.xpose.msk.msra.mxu2 %vm3070_vm14, %v3641_v43  ;;  %3536 = vmatpush.xpose.msk.msra.mxu3 %vm3071_vm15, %v3641_v43 }
 0xaa5   : > { %v2877_v45 = vpop.xlane.xlu1 %2876 }
 0xaa6   : > { %v2878_v5 = vcvt.f32.s32 %v2877_v45 }
 0xaa7   : > { %3521 = vmatpush.xpose.msk.msra.mxu2 %vm3068_vm2, %v3641_v43  ;;  %3537 = vmatpush.xpose.msk.msra.mxu3 %vm3069_vm3, %v3641_v43 }
 0xaa8   : > { %v2881_v40 = vadd.s32 %v2880_v0, %v2878_v5 }
 0xaaa   : > { %vm3066_vm4 = vcmp.eq.s32.totalorder %v4554_v35, %v2881_v40  ;;  %vm3067_vm6 = vcmp.eq.s32.totalorder %v4888_v3, %v2881_v40 }
 0xaab   : > { %3522 = vmatpush.xpose.msk.msra.mxu2 %vm3066_vm4, %v3641_v43  ;;  %3538 = vmatpush.xpose.msk.msra.mxu3 %vm3067_vm6, %v3641_v43 }
 0xaad   : > { %v2845_v14 = vpop.xlane.xlu1 %2844 }
 0xaae   : > { %v2846_v58 = vcvt.f32.s32 %v2845_v14 }
 0xaaf   : > { %3523 = vmatpush.xpose.msk.msra.mxu2 %vm3064_vm7, %v3641_v43  ;;  %3539 = vmatpush.xpose.msk.msra.mxu3 %vm3065_vm5, %v3641_v43 }
 0xab0   : > { %v2849_v9 = vadd.s32 %v2848_v7, %v2846_v58 }
 0xab2   : > { %vm3062_vm1 = vcmp.eq.s32.totalorder %v4554_v35, %v2849_v9  ;;  %vm3063_vm8 = vcmp.eq.s32.totalorder %v4888_v3, %v2849_v9 }
 0xab3   : > { %3524 = vmatpush.xpose.msk.msra.mxu2 %vm3062_vm1, %v3641_v43  ;;  %3540 = vmatpush.xpose.msk.msra.mxu3 %vm3063_vm8, %v3641_v43 }
 0xab5   : > { %v2813_v37 = vpop.xlane.xlu1 %2812 }
 0xab6   : > { %v2814_v42 = vcvt.f32.s32 %v2813_v37 }
 0xab7   : > { %3525 = vmatpush.xpose.msk.msra.mxu2 %vm3060_vm9, %v3641_v43  ;;  %3541 = vmatpush.xpose.msk.msra.mxu3 %vm3061_vm10, %v3641_v43 }
 0xab8   : > { %v2817_v46 = vadd.s32 %v2816_v12, %v2814_v42 }
 0xaba   : > { %vm3058_vm11 = vcmp.eq.s32.totalorder %v4554_v35, %v2817_v46  ;;  %vm3059_vm12 = vcmp.eq.s32.totalorder %v4888_v3, %v2817_v46 }
 0xabb   : > { %3526 = vmatpush.xpose.msk.msra.mxu2 %vm3058_vm11, %v3641_v43  ;;  %3542 = vmatpush.xpose.msk.msra.mxu3 %vm3059_vm12, %v3641_v43 }
 0xabe   : > { %3170 = vmatmul.f32.vlgmr.msra.gmra.mxu2 %v4366_v53  ;;  %3193 = vmatmul.f32.vlgmr.msra.gmra.mxu3 %v4404_v28 }
 0xac6   : > { %3173 = vmatmul.f32.gmra.mxu2 %v4369_v47  ;;  %3196 = vmatmul.f32.gmra.mxu3 %v5710_v19 }
 0xb41   : > { %v3171_v32 = vpop.f32.mrf.mxu2  ;;  %v3194_v27 = vpop.f32.mrf.mxu3 }
 0xb42   : > { %v3195_v52 = vadd.f32 %v3194_v27, %v3171_v32 }
 0xb44   : > { %v3204_v31 = vmul.f32 %v3202_v21, %v3195_v52 }
 0xb49   : > { %v3174_v20 = vpop.f32.mrf.mxu2  ;;  %v3197_v49 = vpop.f32.mrf.mxu3 }
 0xb4a   : > { %v3198_v13 = vadd.f32 %v3197_v49, %v3174_v20 }
 0xb4c   : > { %v3205_v43 = vmul.f32 %v3203_v56, %v3198_v13 }
 0xb4e   : > { %v3206_v54 = vadd.f32 %v3205_v43, %v3204_v31 }
 0xb50   : > { %v3207_v34 = vrot.slane %v3206_v54, 4 }
 0xb52   : > { %v3208_v24 = vadd.f32 %v3207_v34, %v3206_v54 }
 0xb54   : > { %v3209_v4 = vrot.slane %v3208_v24, 2 }
 0xb56   : > { %v3210_v48 = vadd.f32 %v3209_v4, %v3208_v24 }
 0xb58   : > { %v3211_v29 = vrot.slane %v3210_v48, 1 }
 0xb5a   : > { %v3212_v51 = vadd.f32 %v3211_v29, %v3210_v48  ;;  %2466 = sbr.rel (!%p2464_p1) target bundleno = 1900 (0x76c), region = 99 }
 0xb5c   : > { %v3213_v16 = vmul.f32 14.285714, %v3212_v51 }
 0xb5e   : > { %3216 = vst [vmem:[%s3215_s1 + $0x100] sm:$0x1] %v3213_v16 }

</bundles_post_ra>
